<compile_context>
chip_gen: v7x
topology: tpu7x:2x2x1
jax: 0.10.0
libtpu: 0.0.40
codegen_flags: <defaults>
</compile_context>

<pallas_src>
import numpy as np
import jax
import jax.numpy as jnp
from jax import lax
from jax.experimental import pallas as pl
from jax.experimental.pallas import tpu as pltpu

# ---------------- configuration (small synthetic shapes) ----------------
IMG_SIZE = 32          # input image H = W
PATCH = 8              # patch size of the ViT image encoder
FEAT = IMG_SIZE // PATCH   # 4x4 feature grid (SAM: 64x64)
EMBED_DIM = 32         # ViT embedding dim
OUT_CHANS = 32         # prompt / mask-decoder transformer dim
NUM_MASK_TOKENS = 4    # SAM: num_multimask_outputs(3) + 1

_F32 = jnp.float32
_BF16 = jnp.bfloat16

_PARALLEL = pltpu.CompilerParams(dimension_semantics=("parallel",))


# ======================= in-kernel helpers (values, not refs) =======================

def _dot(a, b):
    """bf16 MXU matmul, f32 accumulation."""
    return jnp.dot(a.astype(_BF16), b.astype(_BF16), preferred_element_type=_F32)


def _dot_nt(a, b):
    """a @ b.T (contract last dims of both), bf16 operands, f32 accumulation."""
    return lax.dot_general(a.astype(_BF16), b.astype(_BF16),
                           (((1,), (1,)), ((), ())),
                           preferred_element_type=_F32)


def _ln(x, g, b, eps=1e-5):
    mu = jnp.mean(x, axis=-1, keepdims=True)
    var = jnp.mean((x - mu) ** 2, axis=-1, keepdims=True)
    return (x - mu) * lax.rsqrt(var + eps) * g + b


def _softmax(s):
    m = jnp.max(s, axis=-1, keepdims=True)
    p = jnp.exp(s - m)
    return p / jnp.sum(p, axis=-1, keepdims=True)


def _mha(q_in, k_in, v_in, w_qkv, b_qkv, wo, bo, packed):
    """Fused single-head attention; 1/sqrt(D) is pre-folded into the Q slice of w_qkv/b_qkv."""
    dd = w_qkv.shape[0]
    if packed:  # q_in is k_in is v_in -> one packed QKV matmul
        qkv = _dot(q_in, w_qkv) + b_qkv
        q, k, v = qkv[:, :dd], qkv[:, dd:2 * dd], qkv[:, 2 * dd:]
    else:
        q = _dot(q_in, w_qkv[:, :dd]) + b_qkv[:, :dd]
        k = _dot(k_in, w_qkv[:, dd:2 * dd]) + b_qkv[:, dd:2 * dd]
        v = _dot(v_in, w_qkv[:, 2 * dd:]) + b_qkv[:, 2 * dd:]
    p = _softmax(_dot_nt(q, k))         # f32 softmax
    return _dot(_dot(p, v), wo) + bo


# ======================= Pallas kernels =======================

def _image_encoder_kernel(
        patches_ref, pw_ref, pb_ref,
        ln1g_ref, ln1b_ref, wqkv_ref, bqkv_ref, wo_ref, bo_ref,
        ln2g_ref, ln2b_ref, w1_ref, b1_ref, w2_ref, b2_ref,
        nw_ref, nb_ref, ng_ref, ngb_ref,
        out_ref):
    """patch-embed -> (LN, self-attn, residual) -> (LN, MLP, residual) -> neck linear -> LN."""
    x = _dot(patches_ref[0], pw_ref[...]) + pb_ref[...]                      # (16, D)
    h = _ln(x, ln1g_ref[...], ln1b_ref[...])
    x = x + _mha(h, h, h, wqkv_ref[...], bqkv_ref[...], wo_ref[...], bo_ref[...], packed=True)
    h = _ln(x, ln2g_ref[...], ln2b_ref[...])
    h = jax.nn.gelu(_dot(h, w1_ref[...]) + b1_ref[...])                      # hidden = 4D = 128 lanes
    x = x + _dot(h, w2_ref[...]) + b2_ref[...]
    x = _dot(x, nw_ref[...]) + nb_ref[...]                                   # 1x1 conv neck
    out_ref[0] = _ln(x, ng_ref[...], ngb_ref[...])


def _mask_decoder_kernel(
        tok_ref, src_ref, pos_ref,
        wqkv_ref, bqkv_ref, wo_ref, bo_ref,
        lng_ref, lnb_ref,
        mw1_ref, mb1_ref, mw2_ref, mb2_ref,
        hw1_ref, hb1_ref, hw2_ref, hb2_ref, hw3_ref, hb3_ref,
        src_out_ref, hyper_ref, iou_ref):
    """Simplified two-way transformer block + fused IoU head + hypernet MLP (mask token 0)."""
    t = tok_ref[0]      # (7, C)
    s = src_ref[0]      # (16, C)
    pe = pos_ref[...]   # (16, C)

    def attn(i, q_in, k_in, v_in, packed=False):
        return _mha(q_in, k_in, v_in, wqkv_ref[i], bqkv_ref[i], wo_ref[i], bo_ref[i], packed)

    def ln(x, i):
        return _ln(x, lng_ref[i], lnb_ref[i])

    t = ln(t + attn(0, t, t, t, packed=True), 0)          # token self-attn
    t = ln(t + attn(1, t, s + pe, s), 1)                  # cross: tokens -> image
    mlp = _dot(jax.nn.relu(_dot(t, mw1_ref[...]) + mb1_ref[...]), mw2_ref[...]) + mb2_ref[...]
    t = ln(t + mlp, 2)
    s = ln(s + attn(2, s + pe, t, t), 3)                  # cross: image -> tokens
    t = ln(t + attn(3, t, s + pe, s), 4)                  # cross: tokens -> image

    src_out_ref[0] = s

    # fused heads: j=0 IoU-prediction MLP, j=1 hypernetwork MLP for mask token 0 only
    heads_in = (t[0:1, :], t[1:2, :])
    for j in range(2):
        h = jax.nn.relu(_dot(heads_in[j], hw1_ref[j]) + hb1_ref[j])
        h = jax.nn.relu(_dot(h, hw2_ref[j]) + hb2_ref[j])
        o = _dot(h, hw3_ref[j]) + hb3_ref[j]              # (1, 4)
        if j == 0:
            iou_ref[0] = o
        else:
            hyper_ref[0] = o


def _make_rowmm_kernel(act):
    def kernel(x_ref, w_ref, b_ref, o_ref):
        y = _dot(x_ref[0], w_ref[...]) + b_ref[...]
        if act == "gelu":
            y = jax.nn.gelu(y)
        elif act == "relu":
            y = jax.nn.relu(y)
        o_ref[0] = y
    return kernel


def _mask_resize_kernel(hyper_ref, up_ref, rh_ref, rwT_ref, o_ref):
    """masks = Rh @ (sum_c hyper_c * upscaled[..., c]) @ Rw^T  -- mask product + bilinear fused."""
    mask_low = jnp.sum(up_ref[0] * hyper_ref[...], axis=-1)                  # (h2, w2) f32
    t = jnp.dot(rh_ref[...], mask_low, preferred_element_type=_F32)          # exact interp in f32
    o_ref[0] = jnp.dot(t, rwT_ref[...], preferred_element_type=_F32)


# ======================= pallas_call wrappers =======================

def _bcast_spec(shape):
    nd = len(shape)
    return pl.BlockSpec(tuple(shape), lambda b, _nd=nd: (0,) * _nd)


def _batch_spec(shape):
    nd = len(shape)
    return pl.BlockSpec((1,) + tuple(shape[1:]), lambda b, _nd=nd: (b,) + (0,) * (_nd - 1))


def image_encoder(p, image):
    B = image.shape[0]
    # patch extraction: layout plumbing kept as one XLA transpose in the jitted wrapper
    x = image.reshape(B, 3, FEAT, PATCH, FEAT, PATCH)
    x = x.transpose(0, 2, 4, 1, 3, 5).reshape(B, FEAT * FEAT, 3 * PATCH * PATCH)
    e = p["enc"]
    args = (x, p["patch_w"], p["patch_b"],
            e["ln1_g"], e["ln1_b"], e["w_qkv"], e["b_qkv"], e["wo"], e["bo"],
            e["ln2_g"], e["ln2_b"], e["w1"], e["b1"], e["w2"], e["b2"],
            p["neck_w"], p["neck_b"], p["neck_g"], p["neck_bb"])
    in_specs = [_batch_spec(x.shape)] + [_bcast_spec(a.shape) for a in args[1:]]
    return pl.pallas_call(
        _image_encoder_kernel,
        out_shape=jax.ShapeDtypeStruct((B, FEAT * FEAT, OUT_CHANS), _F32),
        grid=(B,),
        in_specs=in_specs,
        out_specs=_batch_spec((B, FEAT * FEAT, OUT_CHANS)),
        compiler_params=_PARALLEL,
    )(*args)


def pallas_rowmm(x, w, b, act=None):
    """(B, M, K) @ (K, N) + b with fused activation; one launch, grid over batch."""
    B, M, K = x.shape
    N = w.shape[1]
    return pl.pallas_call(
        _make_rowmm_kernel(act),
        out_shape=jax.ShapeDtypeStruct((B, M, N), _F32),
        grid=(B,),
        in_specs=[_batch_spec(x.shape), _bcast_spec(w.shape), _bcast_spec(b.shape)],
        out_specs=_batch_spec((B, M, N)),
        compiler_params=_PARALLEL,
    )(x, w, b)


def _pixel_shuffle(y, h, w, cout):
    """(B, h*w, cout*4) with last-dim order (cout, di, dj) -> (B, 2h, 2w, cout) NHWC."""
    B = y.shape[0]
    y = y.reshape(B, h, w, cout, 2, 2)
    y = y.transpose(0, 1, 4, 2, 5, 3)
    return y.reshape(B, 2 * h, 2 * w, cout)


def _interp_matrix(out_size, in_size):
    """Row-interp matrix matching F.interpolate(mode='bilinear', align_corners=False)."""
    scale = in_size / out_size
    i = np.arange(out_size)
    src = np.maximum((i + 0.5) * scale - 0.5, 0.0)
    i0 = np.minimum(np.floor(src).astype(np.int64), in_size - 1)
    i1 = np.minimum(i0 + 1, in_size - 1)
    lam = (src - i0).astype(np.float32)
    R = np.zeros((out_size, in_size), dtype=np.float32)
    R[np.arange(out_size), i0] += (1.0 - lam)
    R[np.arange(out_size), i1] += lam
    return jnp.asarray(R)


def fused_mask_and_resize(hyper, upscaled, out_hw):
    """Fused: low-res mask product (hypernet weights x upscaled features) + bilinear resize."""
    B, h2, w2, _ = upscaled.shape
    H, W = out_hw
    rh = _interp_matrix(H, h2)           # (H, h2)
    rwT = _interp_matrix(W, w2).T        # (w2, W)
    out = pl.pallas_call(
        _mask_resize_kernel,
        out_shape=jax.ShapeDtypeStruct((B, H, W), _F32),
        grid=(B,),
        in_specs=[_batch_spec(hyper.shape), _batch_spec(upscaled.shape),
                  _bcast_spec(rh.shape), _bcast_spec(rwT.shape)],
        out_specs=_batch_spec((B, H, W)),
        compiler_params=_PARALLEL,
    )(hyper, upscaled, rh, rwT)
    return out.reshape(B, 1, H, W)


# ======================= plain-JAX glue (tiny, runs under jit) =======================

def _pe_encoding(coords, gauss):
    """SAM PositionEmbeddingRandom._pe_encoding; coords in [0,1], (..., 2)."""
    c = 2.0 * coords - 1.0
    proj = 2.0 * jnp.pi * (c @ gauss)
    return jnp.concatenate([jnp.sin(proj), jnp.cos(proj)], axis=-1)


def get_dense_pe(gauss):
    h = w = FEAT
    ys = (jnp.arange(h, dtype=_F32) + 0.5) / h
    xs = (jnp.arange(w, dtype=_F32) + 0.5) / w
    gx, gy = jnp.meshgrid(xs, ys)
    coords = jnp.stack([gx, gy], axis=-1)               # (h, w, 2) as (x, y)
    pe = _pe_encoding(coords, gauss)                    # (h, w, C)
    return pe.reshape(h * w, OUT_CHANS)                 # tokens-first layout (hw, C)


def prompt_encoder(p, box):
    """box: (B, 1, 4) pixel coords -> sparse (B, 2, C). Dense no_mask_embed is added to src directly."""
    B = box.shape[0]
    coords = (box.reshape(B, 2, 2) + 0.5) / jnp.float32(IMG_SIZE)
    return _pe_encoding(coords, p["pe_gauss"]) + p["corner_embed"][None, :, :]


def mask_decoder(p, img_tokens, pos, sparse):
    d = p["dec"]
    B = sparse.shape[0]
    C = OUT_CHANS
    hw = FEAT * FEAT

    output_tokens = jnp.concatenate([p["iou_token"], p["mask_tokens"]], axis=0)  # (5, C)
    tokens = jnp.concatenate(
        [jnp.broadcast_to(output_tokens[None], (B,) + output_tokens.shape), sparse], axis=1)
    src = img_tokens + p["no_mask_embed"][None, None, :]    # dense prompt embedding folded in

    args = (tokens, src, pos,
            d["wqkv"], d["bqkv"], d["wo"], d["bo"], d["ln_g"], d["ln_b"],
            d["mlp_w1"], d["mlp_b1"], d["mlp_w2"], d["mlp_b2"],
            d["hw1"], d["hb1"], d["hw2"], d["hb2"], d["hw3"], d["hb3"])
    in_specs = ([_batch_spec(tokens.shape), _batch_spec(src.shape)]
                + [_bcast_spec(a.shape) for a in args[2:]])
    src_out, hyper, iou_pred = pl.pallas_call(
        _mask_decoder_kernel,
        out_shape=(jax.ShapeDtypeStruct((B, hw, C), _F32),
                   jax.ShapeDtypeStruct((B, 1, C // 8), _F32),
                   jax.ShapeDtypeStruct((B, 1, NUM_MASK_TOKENS), _F32)),
        grid=(B,),
        in_specs=in_specs,
        out_specs=(_batch_spec((B, hw, C)),
                   _batch_spec((B, 1, C // 8)),
                   _batch_spec((B, 1, NUM_MASK_TOKENS))),
        compiler_params=_PARALLEL,
    )(*args)

    # output upscaling: two stride-2 transposed convs as fused matmul+GELU kernels (channels-last)
    up = pallas_rowmm(src_out, p["up1_w"], p["up1_b"], act="gelu")           # (B, hw, (C//4)*4)
    up = _pixel_shuffle(up, FEAT, FEAT, C // 4)                              # (B, 2h, 2w, C//4)
    up = up.reshape(B, 4 * hw, C // 4)
    up = pallas_rowmm(up, p["up2_w"], p["up2_b"], act="gelu")                # (B, 4hw, (C//8)*4)
    upscaled = _pixel_shuffle(up, 2 * FEAT, 2 * FEAT, C // 8)                # (B, 4h, 4w, C//8)

    # multimask_output=False: only mask token 0's hypernet output is returned
    return hyper, upscaled, iou_pred


def _medsam_forward(params, image, box):
    img_tokens = image_encoder(params, image)               # (B, hw, C) channels-last
    box_arr = jnp.asarray(box, _F32)
    if box_arr.ndim == 2:
        box_arr = box_arr[:, None, :]
    sparse = prompt_encoder(params, box_arr)                 # frozen prompt encoder (inference only)
    pos = get_dense_pe(params["pe_gauss"])                   # (hw, C)
    hyper, upscaled, _iou = mask_decoder(params, img_tokens, pos, sparse)
    # mask product + bilinear upsample fused: low-res masks never materialized in HBM
    return fused_mask_and_resize(hyper, upscaled, (image.shape[2], image.shape[3]))


medsam_forward = jax.jit(_medsam_forward)


# ======================= deterministic parameter init (packed for the fused kernels) =======================

def init_params(key):
    D, C = EMBED_DIM, OUT_CHANS
    assert NUM_MASK_TOKENS == C // 8, "head packing assumes equal final widths"
    state = {"key": key}

    def nrm(shape, s=0.02):
        state["key"], sub = jax.random.split(state["key"])
        return (s * jax.random.normal(sub, shape)).astype(_F32)

    def zeros(*shape):
        return jnp.zeros(shape, _F32)

    def ones(*shape):
        return jnp.ones(shape, _F32)

    def packed_attn(dd):
        # pack Wq|Wk|Wv into one matrix; fold the 1/sqrt(dd) attention scale into the Q slice
        scale = dd ** -0.5
        wq, wk, wv, wo = nrm((dd, dd)), nrm((dd, dd)), nrm((dd, dd)), nrm((dd, dd))
        w_qkv = jnp.concatenate([wq * scale, wk, wv], axis=1)       # (dd, 3dd)
        b_qkv = zeros(1, 3 * dd)                                    # zero biases (scale is a no-op)
        return w_qkv, b_qkv, wo, zeros(1, dd)

    e_wqkv, e_bqkv, e_wo, e_bo = packed_attn(D)

    dec_attn = [packed_attn(C) for _ in range(4)]                   # sa, c1, c2, c3
    d_wqkv = jnp.stack([a[0] for a in dec_attn]).astype(_BF16)      # (4, C, 3C)
    d_bqkv = jnp.stack([a[1] for a in dec_attn])                    # (4, 1, 3C)
    d_wo = jnp.stack([a[2] for a in dec_attn]).astype(_BF16)        # (4, C, C)
    d_bo = jnp.stack([a[3] for a in dec_attn])                      # (4, 1, C)

    def mlp3(din, dh, dout):
        return (nrm((din, dh)), zeros(1, dh),
                nrm((dh, dh)), zeros(1, dh),
                nrm((dh, dout)), zeros(1, dout))

    iou_w1, iou_b1, iou_w2, iou_b2, iou_w3, iou_b3 = mlp3(C, C, NUM_MASK_TOKENS)
    hyp_w1, hyp_b1, hyp_w2, hyp_b2, hyp_w3, hyp_b3 = mlp3(C, C, C // 8)   # hypernet for mask token 0
    hw1 = jnp.stack([iou_w1, hyp_w1]).astype(_BF16)
    hb1 = jnp.stack([iou_b1, hyp_b1])
    hw2 = jnp.stack([iou_w2, hyp_w2]).astype(_BF16)
    hb2 = jnp.stack([iou_b2, hyp_b2])
    hw3 = jnp.stack([iou_w3, hyp_w3]).astype(_BF16)
    hb3 = jnp.stack([iou_b3, hyp_b3])

    p = {
        "patch_w": nrm((3 * PATCH * PATCH, D)).astype(_BF16), "patch_b": zeros(1, D),
        "enc": {
            "ln1_g": ones(1, D), "ln1_b": zeros(1, D),
            "w_qkv": e_wqkv.astype(_BF16), "b_qkv": e_bqkv,
            "wo": e_wo.astype(_BF16), "bo": e_bo,
            "ln2_g": ones(1, D), "ln2_b": zeros(1, D),
            "w1": nrm((D, 4 * D)).astype(_BF16), "b1": zeros(1, 4 * D),
            "w2": nrm((4 * D, D)).astype(_BF16), "b2": zeros(1, D),
        },
        "neck_w": nrm((D, C)).astype(_BF16), "neck_b": zeros(1, C),
        "neck_g": ones(1, C), "neck_bb": zeros(1, C),
        "pe_gauss": nrm((2, C // 2), s=1.0),
        "corner_embed": nrm((2, C)),
        "no_mask_embed": nrm((C,)),
        "iou_token": nrm((1, C)),
        "mask_tokens": nrm((NUM_MASK_TOKENS, C)),
        "dec": {
            "wqkv": d_wqkv, "bqkv": d_bqkv, "wo": d_wo, "bo": d_bo,
            "ln_g": ones(5, 1, C), "ln_b": zeros(5, 1, C),
            "mlp_w1": nrm((C, 2 * C)).astype(_BF16), "mlp_b1": zeros(1, 2 * C),
            "mlp_w2": nrm((2 * C, C)).astype(_BF16), "mlp_b2": zeros(1, C),
            "hw1": hw1, "hb1": hb1, "hw2": hw2, "hb2": hb2, "hw3": hw3, "hb3": hb3,
        },
        # ConvTranspose2d(k=2, s=2) weights (Cin, Cout, 2, 2) flattened to (Cin, Cout*4),
        # column order (cout, di, dj); zero conv biases (would be jnp.repeat(b, 4)).
        "up1_w": nrm((C, C // 4, 2, 2)).reshape(C, (C // 4) * 4).astype(_BF16),
        "up1_b": zeros(1, (C // 4) * 4),
        "up2_w": nrm((C // 4, C // 8, 2, 2)).reshape(C // 4, (C // 8) * 4).astype(_BF16),
        "up2_b": zeros(1, (C // 8) * 4),
    }
    return p


# ======================= main =======================

if __name__ == "__main__":
    key = jax.random.PRNGKey(0)
    k_img, k_par = jax.random.split(key, 2)

    B = 2
    image = jax.random.normal(k_img, (B, 3, IMG_SIZE, IMG_SIZE), _F32)      # NCHW
    box = jnp.array([[4.0, 5.0, 20.0, 24.0],
                     [2.0, 3.0, 30.0, 28.0]], _F32)                          # (B, 4) xyxy

    params = init_params(k_par)
    out = medsam_forward(params, image, box)
    out = jax.block_until_ready(out)

    assert out.shape == (B, 1, IMG_SIZE, IMG_SIZE), out.shape
    assert out.dtype == jnp.float32
    assert bool(jnp.all(jnp.isfinite(out)))
    print("KERNEL_OK")
</pallas_src>

<mosaic_0001>
module attributes {stable_mosaic.version = 11 : i64} {
  func.func @_image_encoder_kernel(%arg0: i32, %arg1: memref<1x16x192xf32, #tpu.memory_space<vmem>>, %arg2: memref<192x32xbf16, #tpu.memory_space<vmem>>, %arg3: memref<1x32xf32, #tpu.memory_space<vmem>>, %arg4: memref<1x32xf32, #tpu.memory_space<vmem>>, %arg5: memref<1x32xf32, #tpu.memory_space<vmem>>, %arg6: memref<32x96xbf16, #tpu.memory_space<vmem>>, %arg7: memref<1x96xf32, #tpu.memory_space<vmem>>, %arg8: memref<32x32xbf16, #tpu.memory_space<vmem>>, %arg9: memref<1x32xf32, #tpu.memory_space<vmem>>, %arg10: memref<1x32xf32, #tpu.memory_space<vmem>>, %arg11: memref<1x32xf32, #tpu.memory_space<vmem>>, %arg12: memref<32x128xbf16, #tpu.memory_space<vmem>>, %arg13: memref<1x128xf32, #tpu.memory_space<vmem>>, %arg14: memref<128x32xbf16, #tpu.memory_space<vmem>>, %arg15: memref<1x32xf32, #tpu.memory_space<vmem>>, %arg16: memref<32x32xbf16, #tpu.memory_space<vmem>>, %arg17: memref<1x32xf32, #tpu.memory_space<vmem>>, %arg18: memref<1x32xf32, #tpu.memory_space<vmem>>, %arg19: memref<1x32xf32, #tpu.memory_space<vmem>>, %arg20: memref<1x16x32xf32, #tpu.memory_space<vmem>>) attributes {dimension_semantics = [#tpu.dimension_semantics<parallel>], iteration_bounds = array<i64: 2>, scalar_prefetch = 0 : i64, scratch_operands = 0 : i64, tpu.core_type = #tpu.core_type<tc>, window_params = [{transform_indices = @transform_0, window_bounds = array<i64: 1, 16, 192>}, {pipeline_mode = #tpu.pipeline_mode<synchronous>, transform_indices = @transform_1, window_bounds = array<i64: 192, 32>}, {pipeline_mode = #tpu.pipeline_mode<synchronous>, transform_indices = @transform_2, window_bounds = array<i64: 1, 32>}, {pipeline_mode = #tpu.pipeline_mode<synchronous>, transform_indices = @transform_3, window_bounds = array<i64: 1, 32>}, {pipeline_mode = #tpu.pipeline_mode<synchronous>, transform_indices = @transform_4, window_bounds = array<i64: 1, 32>}, {pipeline_mode = #tpu.pipeline_mode<synchronous>, transform_indices = @transform_5, window_bounds = array<i64: 32, 96>}, {pipeline_mode = #tpu.pipeline_mode<synchronous>, transform_indices = @transform_6, window_bounds = array<i64: 1, 96>}, {pipeline_mode = #tpu.pipeline_mode<synchronous>, transform_indices = @transform_7, window_bounds = array<i64: 32, 32>}, {pipeline_mode = #tpu.pipeline_mode<synchronous>, transform_indices = @transform_8, window_bounds = array<i64: 1, 32>}, {pipeline_mode = #tpu.pipeline_mode<synchronous>, transform_indices = @transform_9, window_bounds = array<i64: 1, 32>}, {pipeline_mode = #tpu.pipeline_mode<synchronous>, transform_indices = @transform_10, window_bounds = array<i64: 1, 32>}, {pipeline_mode = #tpu.pipeline_mode<synchronous>, transform_indices = @transform_11, window_bounds = array<i64: 32, 128>}, {pipeline_mode = #tpu.pipeline_mode<synchronous>, transform_indices = @transform_12, window_bounds = array<i64: 1, 128>}, {pipeline_mode = #tpu.pipeline_mode<synchronous>, transform_indices = @transform_13, window_bounds = array<i64: 128, 32>}, {pipeline_mode = #tpu.pipeline_mode<synchronous>, transform_indices = @transform_14, window_bounds = array<i64: 1, 32>}, {pipeline_mode = #tpu.pipeline_mode<synchronous>, transform_indices = @transform_15, window_bounds = array<i64: 32, 32>}, {pipeline_mode = #tpu.pipeline_mode<synchronous>, transform_indices = @transform_16, window_bounds = array<i64: 1, 32>}, {pipeline_mode = #tpu.pipeline_mode<synchronous>, transform_indices = @transform_17, window_bounds = array<i64: 1, 32>}, {pipeline_mode = #tpu.pipeline_mode<synchronous>, transform_indices = @transform_18, window_bounds = array<i64: 1, 32>}, {transform_indices = @transform_19, window_bounds = array<i64: 1, 16, 32>}]} {
    %c0 = arith.constant 0 : index
    %c0_0 = arith.constant 0 : index
    %c0_1 = arith.constant 0 : index
    %0 = vector.load %arg1[%c0, %c0_0, %c0_1] : memref<1x16x192xf32, #tpu.memory_space<vmem>>, vector<1x16x192xf32>
    %1 = vector.shape_cast %0 : vector<1x16x192xf32> to vector<16x192xf32>
    %c0_2 = arith.constant 0 : index
    %c0_3 = arith.constant 0 : index
    %2 = vector.load %arg2[%c0_2, %c0_3] : memref<192x32xbf16, #tpu.memory_space<vmem>>, vector<192x32xbf16>
    %3 = arith.truncf %1 : vector<16x192xf32> to vector<16x192xbf16>
    %cst = arith.constant dense<0.000000e+00> : vector<16x32xf32>
    %4 = tpu.matmul %3, %2, %cst {dimension_numbers = #tpu.dot_dimension_numbers<[1], [0], [0], [1], [0, 0, 1, 1], [], []>} : vector<16x192xbf16>, vector<192x32xbf16>, vector<16x32xf32> -> vector<16x32xf32>
    %c0_4 = arith.constant 0 : index
    %c0_5 = arith.constant 0 : index
    %5 = vector.load %arg3[%c0_4, %c0_5] : memref<1x32xf32, #tpu.memory_space<vmem>>, vector<1x32xf32>
    %6 = vector.broadcast %5 : vector<1x32xf32> to vector<16x32xf32>
    %7 = arith.addf %4, %6 : vector<16x32xf32>
    %c0_6 = arith.constant 0 : index
    %c0_7 = arith.constant 0 : index
    %8 = vector.load %arg4[%c0_6, %c0_7] : memref<1x32xf32, #tpu.memory_space<vmem>>, vector<1x32xf32>
    %c0_8 = arith.constant 0 : index
    %c0_9 = arith.constant 0 : index
    %9 = vector.load %arg5[%c0_8, %c0_9] : memref<1x32xf32, #tpu.memory_space<vmem>>, vector<1x32xf32>
    %cst_10 = arith.constant dense<0.000000e+00> : vector<16xf32>
    %10 = vector.multi_reduction <add>, %7, %cst_10 [1] : vector<16x32xf32> to vector<16xf32>
    %11 = vector.shape_cast %10 : vector<16xf32> to vector<16x1xf32>
    %cst_11 = arith.constant 3.200000e+01 : f32
    %12 = vector.broadcast %cst_11 : f32 to vector<16x1xf32>
    %13 = arith.divf %11, %12 : vector<16x1xf32>
    %14 = vector.broadcast %13 : vector<16x1xf32> to vector<16x32xf32>
    %15 = arith.subf %7, %14 : vector<16x32xf32>
    %16 = arith.mulf %15, %15 : vector<16x32xf32>
    %cst_12 = arith.constant dense<0.000000e+00> : vector<16xf32>
    %17 = vector.multi_reduction <add>, %16, %cst_12 [1] : vector<16x32xf32> to vector<16xf32>
    %18 = vector.shape_cast %17 : vector<16xf32> to vector<16x1xf32>
    %cst_13 = arith.constant 3.200000e+01 : f32
    %19 = vector.broadcast %cst_13 : f32 to vector<16x1xf32>
    %20 = arith.divf %18, %19 : vector<16x1xf32>
    %21 = vector.broadcast %13 : vector<16x1xf32> to vector<16x32xf32>
    %22 = arith.subf %7, %21 : vector<16x32xf32>
    %cst_14 = arith.constant 9.99999974E-6 : f32
    %23 = vector.broadcast %cst_14 : f32 to vector<16x1xf32>
    %24 = arith.addf %20, %23 : vector<16x1xf32>
    %25 = math.rsqrt %24 : vector<16x1xf32>
    %26 = vector.broadcast %25 : vector<16x1xf32> to vector<16x32xf32>
    %27 = arith.mulf %22, %26 : vector<16x32xf32>
    %28 = vector.broadcast %8 : vector<1x32xf32> to vector<16x32xf32>
    %29 = arith.mulf %27, %28 : vector<16x32xf32>
    %30 = vector.broadcast %9 : vector<1x32xf32> to vector<16x32xf32>
    %31 = arith.addf %29, %30 : vector<16x32xf32>
    %c0_15 = arith.constant 0 : index
    %c0_16 = arith.constant 0 : index
    %32 = vector.load %arg6[%c0_15, %c0_16] : memref<32x96xbf16, #tpu.memory_space<vmem>>, vector<32x96xbf16>
    %c0_17 = arith.constant 0 : index
    %c0_18 = arith.constant 0 : index
    %33 = vector.load %arg7[%c0_17, %c0_18] : memref<1x96xf32, #tpu.memory_space<vmem>>, vector<1x96xf32>
    %c0_19 = arith.constant 0 : index
    %c0_20 = arith.constant 0 : index
    %34 = vector.load %arg8[%c0_19, %c0_20] : memref<32x32xbf16, #tpu.memory_space<vmem>>, vector<32x32xbf16>
    %c0_21 = arith.constant 0 : index
    %c0_22 = arith.constant 0 : index
    %35 = vector.load %arg9[%c0_21, %c0_22] : memref<1x32xf32, #tpu.memory_space<vmem>>, vector<1x32xf32>
    %36 = arith.truncf %31 : vector<16x32xf32> to vector<16x32xbf16>
    %cst_23 = arith.constant dense<0.000000e+00> : vector<16x96xf32>
    %37 = tpu.matmul %36, %32, %cst_23 {dimension_numbers = #tpu.dot_dimension_numbers<[1], [0], [0], [1], [0, 0, 1, 1], [], []>} : vector<16x32xbf16>, vector<32x96xbf16>, vector<16x96xf32> -> vector<16x96xf32>
    %38 = vector.broadcast %33 : vector<1x96xf32> to vector<16x96xf32>
    %39 = arith.addf %37, %38 : vector<16x96xf32>
    %40 = vector.extract_strided_slice %39 {offsets = [0, 0], sizes = [16, 32], strides = [1, 1]} : vector<16x96xf32> to vector<16x32xf32>
    %41 = vector.extract_strided_slice %39 {offsets = [0, 32], sizes = [16, 32], strides = [1, 1]} : vector<16x96xf32> to vector<16x32xf32>
    %42 = vector.extract_strided_slice %39 {offsets = [0, 64], sizes = [16, 32], strides = [1, 1]} : vector<16x96xf32> to vector<16x32xf32>
    %43 = arith.truncf %40 : vector<16x32xf32> to vector<16x32xbf16>
    %44 = arith.truncf %41 : vector<16x32xf32> to vector<16x32xbf16>
    %cst_24 = arith.constant dense<0.000000e+00> : vector<16x16xf32>
    %45 = tpu.matmul %43, %44, %cst_24 {dimension_numbers = #tpu.dot_dimension_numbers<[1], [1], [0], [0], [0, 0, 1, 0], [], []>} : vector<16x32xbf16>, vector<16x32xbf16>, vector<16x16xf32> -> vector<16x16xf32>
    %cst_25 = arith.constant dense<0xFF800000> : vector<16xf32>
    %46 = vector.multi_reduction <maximumf>, %45, %cst_25 [1] : vector<16x16xf32> to vector<16xf32>
    %47 = vector.shape_cast %46 : vector<16xf32> to vector<16x1xf32>
    %48 = vector.broadcast %47 : vector<16x1xf32> to vector<16x16xf32>
    %49 = arith.subf %45, %48 : vector<16x16xf32>
    %50 = math.exp %49 : vector<16x16xf32>
    %cst_26 = arith.constant dense<0.000000e+00> : vector<16xf32>
    %51 = vector.multi_reduction <add>, %50, %cst_26 [1] : vector<16x16xf32> to vector<16xf32>
    %52 = vector.shape_cast %51 : vector<16xf32> to vector<16x1xf32>
    %53 = vector.broadcast %52 : vector<16x1xf32> to vector<16x16xf32>
    %54 = arith.divf %50, %53 : vector<16x16xf32>
    %55 = arith.truncf %54 : vector<16x16xf32> to vector<16x16xbf16>
    %56 = arith.truncf %42 : vector<16x32xf32> to vector<16x32xbf16>
    %cst_27 = arith.constant dense<0.000000e+00> : vector<16x32xf32>
    %57 = tpu.matmul %55, %56, %cst_27 {dimension_numbers = #tpu.dot_dimension_numbers<[1], [0], [0], [1], [0, 0, 1, 1], [], []>} : vector<16x16xbf16>, vector<16x32xbf16>, vector<16x32xf32> -> vector<16x32xf32>
    %58 = arith.truncf %57 : vector<16x32xf32> to vector<16x32xbf16>
    %cst_28 = arith.constant dense<0.000000e+00> : vector<16x32xf32>
    %59 = tpu.matmul %58, %34, %cst_28 {dimension_numbers = #tpu.dot_dimension_numbers<[1], [0], [0], [1], [0, 0, 1, 1], [], []>} : vector<16x32xbf16>, vector<32x32xbf16>, vector<16x32xf32> -> vector<16x32xf32>
    %60 = vector.broadcast %35 : vector<1x32xf32> to vector<16x32xf32>
    %61 = arith.addf %59, %60 : vector<16x32xf32>
    %62 = arith.addf %7, %61 : vector<16x32xf32>
    %c0_29 = arith.constant 0 : index
    %c0_30 = arith.constant 0 : index
    %63 = vector.load %arg10[%c0_29, %c0_30] : memref<1x32xf32, #tpu.memory_space<vmem>>, vector<1x32xf32>
    %c0_31 = arith.constant 0 : index
    %c0_32 = arith.constant 0 : index
    %64 = vector.load %arg11[%c0_31, %c0_32] : memref<1x32xf32, #tpu.memory_space<vmem>>, vector<1x32xf32>
    %cst_33 = arith.constant dense<0.000000e+00> : vector<16xf32>
    %65 = vector.multi_reduction <add>, %62, %cst_33 [1] : vector<16x32xf32> to vector<16xf32>
    %66 = vector.shape_cast %65 : vector<16xf32> to vector<16x1xf32>
    %cst_34 = arith.constant 3.200000e+01 : f32
    %67 = vector.broadcast %cst_34 : f32 to vector<16x1xf32>
    %68 = arith.divf %66, %67 : vector<16x1xf32>
    %69 = vector.broadcast %68 : vector<16x1xf32> to vector<16x32xf32>
    %70 = arith.subf %62, %69 : vector<16x32xf32>
    %71 = arith.mulf %70, %70 : vector<16x32xf32>
    %cst_35 = arith.constant dense<0.000000e+00> : vector<16xf32>
    %72 = vector.multi_reduction <add>, %71, %cst_35 [1] : vector<16x32xf32> to vector<16xf32>
    %73 = vector.shape_cast %72 : vector<16xf32> to vector<16x1xf32>
    %cst_36 = arith.constant 3.200000e+01 : f32
    %74 = vector.broadcast %cst_36 : f32 to vector<16x1xf32>
    %75 = arith.divf %73, %74 : vector<16x1xf32>
    %76 = vector.broadcast %68 : vector<16x1xf32> to vector<16x32xf32>
    %77 = arith.subf %62, %76 : vector<16x32xf32>
    %cst_37 = arith.constant 9.99999974E-6 : f32
    %78 = vector.broadcast %cst_37 : f32 to vector<16x1xf32>
    %79 = arith.addf %75, %78 : vector<16x1xf32>
    %80 = math.rsqrt %79 : vector<16x1xf32>
    %81 = vector.broadcast %80 : vector<16x1xf32> to vector<16x32xf32>
    %82 = arith.mulf %77, %81 : vector<16x32xf32>
    %83 = vector.broadcast %63 : vector<1x32xf32> to vector<16x32xf32>
    %84 = arith.mulf %82, %83 : vector<16x32xf32>
    %85 = vector.broadcast %64 : vector<1x32xf32> to vector<16x32xf32>
    %86 = arith.addf %84, %85 : vector<16x32xf32>
    %c0_38 = arith.constant 0 : index
    %c0_39 = arith.constant 0 : index
    %87 = vector.load %arg12[%c0_38, %c0_39] : memref<32x128xbf16, #tpu.memory_space<vmem>>, vector<32x128xbf16>
    %88 = arith.truncf %86 : vector<16x32xf32> to vector<16x32xbf16>
    %cst_40 = arith.constant dense<0.000000e+00> : vector<16x128xf32>
    %89 = tpu.matmul %88, %87, %cst_40 {dimension_numbers = #tpu.dot_dimension_numbers<[1], [0], [0], [1], [0, 0, 1, 1], [], []>} : vector<16x32xbf16>, vector<32x128xbf16>, vector<16x128xf32> -> vector<16x128xf32>
    %c0_41 = arith.constant 0 : index
    %c0_42 = arith.constant 0 : index
    %90 = vector.load %arg13[%c0_41, %c0_42] : memref<1x128xf32, #tpu.memory_space<vmem>>, vector<1x128xf32>
    %91 = vector.broadcast %90 : vector<1x128xf32> to vector<16x128xf32>
    %92 = arith.addf %89, %91 : vector<16x128xf32>
    %93 = arith.mulf %92, %92 : vector<16x128xf32>
    %94 = arith.mulf %92, %93 : vector<16x128xf32>
    %cst_43 = arith.constant 4.471500e-02 : f32
    %95 = vector.broadcast %cst_43 : f32 to vector<16x128xf32>
    %96 = arith.mulf %95, %94 : vector<16x128xf32>
    %97 = arith.addf %92, %96 : vector<16x128xf32>
    %cst_44 = arith.constant 0.797884583 : f32
    %98 = vector.broadcast %cst_44 : f32 to vector<16x128xf32>
    %99 = arith.mulf %98, %97 : vector<16x128xf32>
    %100 = math.tanh %99 : vector<16x128xf32>
    %cst_45 = arith.constant 1.000000e+00 : f32
    %101 = vector.broadcast %cst_45 : f32 to vector<16x128xf32>
    %102 = arith.addf %101, %100 : vector<16x128xf32>
    %cst_46 = arith.constant 5.000000e-01 : f32
    %103 = vector.broadcast %cst_46 : f32 to vector<16x128xf32>
    %104 = arith.mulf %103, %102 : vector<16x128xf32>
    %105 = arith.mulf %92, %104 : vector<16x128xf32>
    %c0_47 = arith.constant 0 : index
    %c0_48 = arith.constant 0 : index
    %106 = vector.load %arg14[%c0_47, %c0_48] : memref<128x32xbf16, #tpu.memory_space<vmem>>, vector<128x32xbf16>
    %107 = arith.truncf %105 : vector<16x128xf32> to vector<16x128xbf16>
    %cst_49 = arith.constant dense<0.000000e+00> : vector<16x32xf32>
    %108 = tpu.matmul %107, %106, %cst_49 {dimension_numbers = #tpu.dot_dimension_numbers<[1], [0], [0], [1], [0, 0, 1, 1], [], []>} : vector<16x128xbf16>, vector<128x32xbf16>, vector<16x32xf32> -> vector<16x32xf32>
    %109 = arith.addf %62, %108 : vector<16x32xf32>
    %c0_50 = arith.constant 0 : index
    %c0_51 = arith.constant 0 : index
    %110 = vector.load %arg15[%c0_50, %c0_51] : memref<1x32xf32, #tpu.memory_space<vmem>>, vector<1x32xf32>
    %111 = vector.broadcast %110 : vector<1x32xf32> to vector<16x32xf32>
    %112 = arith.addf %109, %111 : vector<16x32xf32>
    %c0_52 = arith.constant 0 : index
    %c0_53 = arith.constant 0 : index
    %113 = vector.load %arg16[%c0_52, %c0_53] : memref<32x32xbf16, #tpu.memory_space<vmem>>, vector<32x32xbf16>
    %114 = arith.truncf %112 : vector<16x32xf32> to vector<16x32xbf16>
    %cst_54 = arith.constant dense<0.000000e+00> : vector<16x32xf32>
    %115 = tpu.matmul %114, %113, %cst_54 {dimension_numbers = #tpu.dot_dimension_numbers<[1], [0], [0], [1], [0, 0, 1, 1], [], []>} : vector<16x32xbf16>, vector<32x32xbf16>, vector<16x32xf32> -> vector<16x32xf32>
    %c0_55 = arith.constant 0 : index
    %c0_56 = arith.constant 0 : index
    %116 = vector.load %arg17[%c0_55, %c0_56] : memref<1x32xf32, #tpu.memory_space<vmem>>, vector<1x32xf32>
    %117 = vector.broadcast %116 : vector<1x32xf32> to vector<16x32xf32>
    %118 = arith.addf %115, %117 : vector<16x32xf32>
    %c0_57 = arith.constant 0 : index
    %c0_58 = arith.constant 0 : index
    %119 = vector.load %arg18[%c0_57, %c0_58] : memref<1x32xf32, #tpu.memory_space<vmem>>, vector<1x32xf32>
    %c0_59 = arith.constant 0 : index
    %c0_60 = arith.constant 0 : index
    %120 = vector.load %arg19[%c0_59, %c0_60] : memref<1x32xf32, #tpu.memory_space<vmem>>, vector<1x32xf32>
    %cst_61 = arith.constant dense<0.000000e+00> : vector<16xf32>
    %121 = vector.multi_reduction <add>, %118, %cst_61 [1] : vector<16x32xf32> to vector<16xf32>
    %122 = vector.shape_cast %121 : vector<16xf32> to vector<16x1xf32>
    %cst_62 = arith.constant 3.200000e+01 : f32
    %123 = vector.broadcast %cst_62 : f32 to vector<16x1xf32>
    %124 = arith.divf %122, %123 : vector<16x1xf32>
    %125 = vector.broadcast %124 : vector<16x1xf32> to vector<16x32xf32>
    %126 = arith.subf %118, %125 : vector<16x32xf32>
    %127 = arith.mulf %126, %126 : vector<16x32xf32>
    %cst_63 = arith.constant dense<0.000000e+00> : vector<16xf32>
    %128 = vector.multi_reduction <add>, %127, %cst_63 [1] : vector<16x32xf32> to vector<16xf32>
    %129 = vector.shape_cast %128 : vector<16xf32> to vector<16x1xf32>
    %cst_64 = arith.constant 3.200000e+01 : f32
    %130 = vector.broadcast %cst_64 : f32 to vector<16x1xf32>
    %131 = arith.divf %129, %130 : vector<16x1xf32>
    %132 = vector.broadcast %124 : vector<16x1xf32> to vector<16x32xf32>
    %133 = arith.subf %118, %132 : vector<16x32xf32>
    %cst_65 = arith.constant 9.99999974E-6 : f32
    %134 = vector.broadcast %cst_65 : f32 to vector<16x1xf32>
    %135 = arith.addf %131, %134 : vector<16x1xf32>
    %136 = math.rsqrt %135 : vector<16x1xf32>
    %137 = vector.broadcast %136 : vector<16x1xf32> to vector<16x32xf32>
    %138 = arith.mulf %133, %137 : vector<16x32xf32>
    %139 = vector.broadcast %119 : vector<1x32xf32> to vector<16x32xf32>
    %140 = arith.mulf %138, %139 : vector<16x32xf32>
    %141 = vector.broadcast %120 : vector<1x32xf32> to vector<16x32xf32>
    %142 = arith.addf %140, %141 : vector<16x32xf32>
    %c0_66 = arith.constant 0 : index
    %c0_67 = arith.constant 0 : index
    %c0_68 = arith.constant 0 : index
    %143 = vector.load %arg20[%c0_66, %c0_67, %c0_68] : memref<1x16x32xf32, #tpu.memory_space<vmem>>, vector<1x16x32xf32>
    %144 = vector.shape_cast %143 : vector<1x16x32xf32> to vector<16x32xf32>
    %145 = vector.shape_cast %142 : vector<16x32xf32> to vector<1x16x32xf32>
    tpu.vector_store %arg20[%c0_66, %c0_67, %c0_68], %145 {strides = array<i32>} : memref<1x16x32xf32, #tpu.memory_space<vmem>>, vector<1x16x32xf32>,
    return
  }
  func.func @transform_0(%arg0: i32) -> (i32, i32, i32) {
    %c0_i32 = arith.constant 0 : i32
    %c0_i32_0 = arith.constant 0 : i32
    %c0_i32_1 = arith.constant 0 : i32
    return %arg0, %c0_i32, %c0_i32_0 : i32, i32, i32
  }
  func.func @transform_1(%arg0: i32) -> (i32, i32) {
    %c0_i32 = arith.constant 0 : i32
    %c0_i32_0 = arith.constant 0 : i32
    %c0_i32_1 = arith.constant 0 : i32
    return %c0_i32, %c0_i32_0 : i32, i32
  }
  func.func @transform_2(%arg0: i32) -> (i32, i32) {
    %c0_i32 = arith.constant 0 : i32
    %c0_i32_0 = arith.constant 0 : i32
    %c0_i32_1 = arith.constant 0 : i32
    return %c0_i32, %c0_i32_0 : i32, i32
  }
  func.func @transform_3(%arg0: i32) -> (i32, i32) {
    %c0_i32 = arith.constant 0 : i32
    %c0_i32_0 = arith.constant 0 : i32
    %c0_i32_1 = arith.constant 0 : i32
    return %c0_i32, %c0_i32_0 : i32, i32
  }
  func.func @transform_4(%arg0: i32) -> (i32, i32) {
    %c0_i32 = arith.constant 0 : i32
    %c0_i32_0 = arith.constant 0 : i32
    %c0_i32_1 = arith.constant 0 : i32
    return %c0_i32, %c0_i32_0 : i32, i32
  }
  func.func @transform_5(%arg0: i32) -> (i32, i32) {
    %c0_i32 = arith.constant 0 : i32
    %c0_i32_0 = arith.constant 0 : i32
    %c0_i32_1 = arith.constant 0 : i32
    return %c0_i32, %c0_i32_0 : i32, i32
  }
  func.func @transform_6(%arg0: i32) -> (i32, i32) {
    %c0_i32 = arith.constant 0 : i32
    %c0_i32_0 = arith.constant 0 : i32
    %c0_i32_1 = arith.constant 0 : i32
    return %c0_i32, %c0_i32_0 : i32, i32
  }
  func.func @transform_7(%arg0: i32) -> (i32, i32) {
    %c0_i32 = arith.constant 0 : i32
    %c0_i32_0 = arith.constant 0 : i32
    %c0_i32_1 = arith.constant 0 : i32
    return %c0_i32, %c0_i32_0 : i32, i32
  }
  func.func @transform_8(%arg0: i32) -> (i32, i32) {
    %c0_i32 = arith.constant 0 : i32
    %c0_i32_0 = arith.constant 0 : i32
    %c0_i32_1 = arith.constant 0 : i32
    return %c0_i32, %c0_i32_0 : i32, i32
  }
  func.func @transform_9(%arg0: i32) -> (i32, i32) {
    %c0_i32 = arith.constant 0 : i32
    %c0_i32_0 = arith.constant 0 : i32
    %c0_i32_1 = arith.constant 0 : i32
    return %c0_i32, %c0_i32_0 : i32, i32
  }
  func.func @transform_10(%arg0: i32) -> (i32, i32) {
    %c0_i32 = arith.constant 0 : i32
    %c0_i32_0 = arith.constant 0 : i32
    %c0_i32_1 = arith.constant 0 : i32
    return %c0_i32, %c0_i32_0 : i32, i32
  }
  func.func @transform_11(%arg0: i32) -> (i32, i32) {
    %c0_i32 = arith.constant 0 : i32
    %c0_i32_0 = arith.constant 0 : i32
    %c0_i32_1 = arith.constant 0 : i32
    return %c0_i32, %c0_i32_0 : i32, i32
  }
  func.func @transform_12(%arg0: i32) -> (i32, i32) {
    %c0_i32 = arith.constant 0 : i32
    %c0_i32_0 = arith.constant 0 : i32
    %c0_i32_1 = arith.constant 0 : i32
    return %c0_i32, %c0_i32_0 : i32, i32
  }
  func.func @transform_13(%arg0: i32) -> (i32, i32) {
    %c0_i32 = arith.constant 0 : i32
    %c0_i32_0 = arith.constant 0 : i32
    %c0_i32_1 = arith.constant 0 : i32
    return %c0_i32, %c0_i32_0 : i32, i32
  }
  func.func @transform_14(%arg0: i32) -> (i32, i32) {
    %c0_i32 = arith.constant 0 : i32
    %c0_i32_0 = arith.constant 0 : i32
    %c0_i32_1 = arith.constant 0 : i32
    return %c0_i32, %c0_i32_0 : i32, i32
  }
  func.func @transform_15(%arg0: i32) -> (i32, i32) {
    %c0_i32 = arith.constant 0 : i32
    %c0_i32_0 = arith.constant 0 : i32
    %c0_i32_1 = arith.constant 0 : i32
    return %c0_i32, %c0_i32_0 : i32, i32
  }
  func.func @transform_16(%arg0: i32) -> (i32, i32) {
    %c0_i32 = arith.constant 0 : i32
    %c0_i32_0 = arith.constant 0 : i32
    %c0_i32_1 = arith.constant 0 : i32
    return %c0_i32, %c0_i32_0 : i32, i32
  }
  func.func @transform_17(%arg0: i32) -> (i32, i32) {
    %c0_i32 = arith.constant 0 : i32
    %c0_i32_0 = arith.constant 0 : i32
    %c0_i32_1 = arith.constant 0 : i32
    return %c0_i32, %c0_i32_0 : i32, i32
  }
  func.func @transform_18(%arg0: i32) -> (i32, i32) {
    %c0_i32 = arith.constant 0 : i32
    %c0_i32_0 = arith.constant 0 : i32
    %c0_i32_1 = arith.constant 0 : i32
    return %c0_i32, %c0_i32_0 : i32, i32
  }
  func.func @transform_19(%arg0: i32) -> (i32, i32, i32) {
    %c0_i32 = arith.constant 0 : i32
    %c0_i32_0 = arith.constant 0 : i32
    %c0_i32_1 = arith.constant 0 : i32
    return %arg0, %c0_i32, %c0_i32_0 : i32, i32, i32
  }
}

module attributes {stable_mosaic.version = 11 : i64} {
  func.func @_mask_decoder_kernel(%arg0: i32, %arg1: memref<1x7x32xf32, #tpu.memory_space<vmem>>, %arg2: memref<1x16x32xf32, #tpu.memory_space<vmem>>, %arg3: memref<16x32xf32, #tpu.memory_space<vmem>>, %arg4: memref<4x32x96xbf16, #tpu.memory_space<vmem>>, %arg5: memref<4x1x96xf32, #tpu.memory_space<vmem>>, %arg6: memref<4x32x32xbf16, #tpu.memory_space<vmem>>, %arg7: memref<4x1x32xf32, #tpu.memory_space<vmem>>, %arg8: memref<5x1x32xf32, #tpu.memory_space<vmem>>, %arg9: memref<5x1x32xf32, #tpu.memory_space<vmem>>, %arg10: memref<32x64xbf16, #tpu.memory_space<vmem>>, %arg11: memref<1x64xf32, #tpu.memory_space<vmem>>, %arg12: memref<64x32xbf16, #tpu.memory_space<vmem>>, %arg13: memref<1x32xf32, #tpu.memory_space<vmem>>, %arg14: memref<2x32x32xbf16, #tpu.memory_space<vmem>>, %arg15: memref<2x1x32xf32, #tpu.memory_space<vmem>>, %arg16: memref<2x32x32xbf16, #tpu.memory_space<vmem>>, %arg17: memref<2x1x32xf32, #tpu.memory_space<vmem>>, %arg18: memref<2x32x4xbf16, #tpu.memory_space<vmem>>, %arg19: memref<2x1x4xf32, #tpu.memory_space<vmem>>, %arg20: memref<1x16x32xf32, #tpu.memory_space<vmem>>, %arg21: memref<1x1x4xf32, #tpu.memory_space<vmem>>, %arg22: memref<1x1x4xf32, #tpu.memory_space<vmem>>) attributes {dimension_semantics = [#tpu.dimension_semantics<parallel>], iteration_bounds = array<i64: 2>, scalar_prefetch = 0 : i64, scratch_operands = 0 : i64, tpu.core_type = #tpu.core_type<tc>, window_params = [{transform_indices = @transform_0, window_bounds = array<i64: 1, 7, 32>}, {transform_indices = @transform_1, window_bounds = array<i64: 1, 16, 32>}, {pipeline_mode = #tpu.pipeline_mode<synchronous>, transform_indices = @transform_2, window_bounds = array<i64: 16, 32>}, {pipeline_mode = #tpu.pipeline_mode<synchronous>, transform_indices = @transform_3, window_bounds = array<i64: 4, 32, 96>}, {pipeline_mode = #tpu.pipeline_mode<synchronous>, transform_indices = @transform_4, window_bounds = array<i64: 4, 1, 96>}, {pipeline_mode = #tpu.pipeline_mode<synchronous>, transform_indices = @transform_5, window_bounds = array<i64: 4, 32, 32>}, {pipeline_mode = #tpu.pipeline_mode<synchronous>, transform_indices = @transform_6, window_bounds = array<i64: 4, 1, 32>}, {pipeline_mode = #tpu.pipeline_mode<synchronous>, transform_indices = @transform_7, window_bounds = array<i64: 5, 1, 32>}, {pipeline_mode = #tpu.pipeline_mode<synchronous>, transform_indices = @transform_8, window_bounds = array<i64: 5, 1, 32>}, {pipeline_mode = #tpu.pipeline_mode<synchronous>, transform_indices = @transform_9, window_bounds = array<i64: 32, 64>}, {pipeline_mode = #tpu.pipeline_mode<synchronous>, transform_indices = @transform_10, window_bounds = array<i64: 1, 64>}, {pipeline_mode = #tpu.pipeline_mode<synchronous>, transform_indices = @transform_11, window_bounds = array<i64: 64, 32>}, {pipeline_mode = #tpu.pipeline_mode<synchronous>, transform_indices = @transform_12, window_bounds = array<i64: 1, 32>}, {pipeline_mode = #tpu.pipeline_mode<synchronous>, transform_indices = @transform_13, window_bounds = array<i64: 2, 32, 32>}, {pipeline_mode = #tpu.pipeline_mode<synchronous>, transform_indices = @transform_14, window_bounds = array<i64: 2, 1, 32>}, {pipeline_mode = #tpu.pipeline_mode<synchronous>, transform_indices = @transform_15, window_bounds = array<i64: 2, 32, 32>}, {pipeline_mode = #tpu.pipeline_mode<synchronous>, transform_indices = @transform_16, window_bounds = array<i64: 2, 1, 32>}, {pipeline_mode = #tpu.pipeline_mode<synchronous>, transform_indices = @transform_17, window_bounds = array<i64: 2, 32, 4>}, {pipeline_mode = #tpu.pipeline_mode<synchronous>, transform_indices = @transform_18, window_bounds = array<i64: 2, 1, 4>}, {transform_indices = @transform_19, window_bounds = array<i64: 1, 16, 32>}, {transform_indices = @transform_20, window_bounds = array<i64: 1, 1, 4>}, {transform_indices = @transform_21, window_bounds = array<i64: 1, 1, 4>}]} {
    %c0 = arith.constant 0 : index
    %c0_0 = arith.constant 0 : index
    %c0_1 = arith.constant 0 : index
    %0 = vector.load %arg1[%c0, %c0_0, %c0_1] : memref<1x7x32xf32, #tpu.memory_space<vmem>>, vector<1x7x32xf32>
    %1 = vector.shape_cast %0 : vector<1x7x32xf32> to vector<7x32xf32>
    %c0_2 = arith.constant 0 : index
    %c0_3 = arith.constant 0 : index
    %c0_4 = arith.constant 0 : index
    %2 = vector.load %arg2[%c0_2, %c0_3, %c0_4] : memref<1x16x32xf32, #tpu.memory_space<vmem>>, vector<1x16x32xf32>
    %3 = vector.shape_cast %2 : vector<1x16x32xf32> to vector<16x32xf32>
    %c0_5 = arith.constant 0 : index
    %c0_6 = arith.constant 0 : index
    %4 = vector.load %arg3[%c0_5, %c0_6] : memref<16x32xf32, #tpu.memory_space<vmem>>, vector<16x32xf32>
    %c0_7 = arith.constant 0 : index
    %c0_8 = arith.constant 0 : index
    %c0_9 = arith.constant 0 : index
    %5 = vector.load %arg4[%c0_7, %c0_8, %c0_9] : memref<4x32x96xbf16, #tpu.memory_space<vmem>>, vector<1x32x96xbf16>
    %6 = vector.shape_cast %5 : vector<1x32x96xbf16> to vector<32x96xbf16>
    %c0_10 = arith.constant 0 : index
    %c0_11 = arith.constant 0 : index
    %c0_12 = arith.constant 0 : index
    %7 = vector.load %arg5[%c0_10, %c0_11, %c0_12] : memref<4x1x96xf32, #tpu.memory_space<vmem>>, vector<1x1x96xf32>
    %8 = vector.shape_cast %7 : vector<1x1x96xf32> to vector<1x96xf32>
    %c0_13 = arith.constant 0 : index
    %c0_14 = arith.constant 0 : index
    %c0_15 = arith.constant 0 : index
    %9 = vector.load %arg6[%c0_13, %c0_14, %c0_15] : memref<4x32x32xbf16, #tpu.memory_space<vmem>>, vector<1x32x32xbf16>
    %10 = vector.shape_cast %9 : vector<1x32x32xbf16> to vector<32x32xbf16>
    %c0_16 = arith.constant 0 : index
    %c0_17 = arith.constant 0 : index
    %c0_18 = arith.constant 0 : index
    %11 = vector.load %arg7[%c0_16, %c0_17, %c0_18] : memref<4x1x32xf32, #tpu.memory_space<vmem>>, vector<1x1x32xf32>
    %12 = vector.shape_cast %11 : vector<1x1x32xf32> to vector<1x32xf32>
    %13 = arith.truncf %1 : vector<7x32xf32> to vector<7x32xbf16>
    %cst = arith.constant dense<0.000000e+00> : vector<7x96xf32>
    %14 = tpu.matmul %13, %6, %cst {dimension_numbers = #tpu.dot_dimension_numbers<[1], [0], [0], [1], [0, 0, 1, 1], [], []>} : vector<7x32xbf16>, vector<32x96xbf16>, vector<7x96xf32> -> vector<7x96xf32>
    %15 = vector.broadcast %8 : vector<1x96xf32> to vector<7x96xf32>
    %16 = arith.addf %14, %15 : vector<7x96xf32>
    %17 = vector.extract_strided_slice %16 {offsets = [0, 0], sizes = [7, 32], strides = [1, 1]} : vector<7x96xf32> to vector<7x32xf32>
    %18 = vector.extract_strided_slice %16 {offsets = [0, 32], sizes = [7, 32], strides = [1, 1]} : vector<7x96xf32> to vector<7x32xf32>
    %19 = vector.extract_strided_slice %16 {offsets = [0, 64], sizes = [7, 32], strides = [1, 1]} : vector<7x96xf32> to vector<7x32xf32>
    %20 = arith.truncf %17 : vector<7x32xf32> to vector<7x32xbf16>
    %21 = arith.truncf %18 : vector<7x32xf32> to vector<7x32xbf16>
    %cst_19 = arith.constant dense<0.000000e+00> : vector<7x7xf32>
    %22 = tpu.matmul %20, %21, %cst_19 {dimension_numbers = #tpu.dot_dimension_numbers<[1], [1], [0], [0], [0, 0, 1, 0], [], []>} : vector<7x32xbf16>, vector<7x32xbf16>, vector<7x7xf32> -> vector<7x7xf32>
    %cst_20 = arith.constant dense<0xFF800000> : vector<7xf32>
    %23 = vector.multi_reduction <maximumf>, %22, %cst_20 [1] : vector<7x7xf32> to vector<7xf32>
    %24 = vector.shape_cast %23 : vector<7xf32> to vector<7x1xf32>
    %25 = vector.broadcast %24 : vector<7x1xf32> to vector<7x7xf32>
    %26 = arith.subf %22, %25 : vector<7x7xf32>
    %27 = math.exp %26 : vector<7x7xf32>
    %cst_21 = arith.constant dense<0.000000e+00> : vector<7xf32>
    %28 = vector.multi_reduction <add>, %27, %cst_21 [1] : vector<7x7xf32> to vector<7xf32>
    %29 = vector.shape_cast %28 : vector<7xf32> to vector<7x1xf32>
    %30 = vector.broadcast %29 : vector<7x1xf32> to vector<7x7xf32>
    %31 = arith.divf %27, %30 : vector<7x7xf32>
    %32 = arith.truncf %31 : vector<7x7xf32> to vector<7x7xbf16>
    %33 = arith.truncf %19 : vector<7x32xf32> to vector<7x32xbf16>
    %cst_22 = arith.constant dense<0.000000e+00> : vector<7x32xf32>
    %34 = tpu.matmul %32, %33, %cst_22 {dimension_numbers = #tpu.dot_dimension_numbers<[1], [0], [0], [1], [0, 0, 1, 1], [], []>} : vector<7x7xbf16>, vector<7x32xbf16>, vector<7x32xf32> -> vector<7x32xf32>
    %35 = arith.truncf %34 : vector<7x32xf32> to vector<7x32xbf16>
    %cst_23 = arith.constant dense<0.000000e+00> : vector<7x32xf32>
    %36 = tpu.matmul %35, %10, %cst_23 {dimension_numbers = #tpu.dot_dimension_numbers<[1], [0], [0], [1], [0, 0, 1, 1], [], []>} : vector<7x32xbf16>, vector<32x32xbf16>, vector<7x32xf32> -> vector<7x32xf32>
    %37 = vector.broadcast %12 : vector<1x32xf32> to vector<7x32xf32>
    %38 = arith.addf %36, %37 : vector<7x32xf32>
    %39 = arith.addf %1, %38 : vector<7x32xf32>
    %c0_24 = arith.constant 0 : index
    %c0_25 = arith.constant 0 : index
    %c0_26 = arith.constant 0 : index
    %40 = vector.load %arg8[%c0_24, %c0_25, %c0_26] : memref<5x1x32xf32, #tpu.memory_space<vmem>>, vector<1x1x32xf32>
    %41 = vector.shape_cast %40 : vector<1x1x32xf32> to vector<1x32xf32>
    %c0_27 = arith.constant 0 : index
    %c0_28 = arith.constant 0 : index
    %c0_29 = arith.constant 0 : index
    %42 = vector.load %arg9[%c0_27, %c0_28, %c0_29] : memref<5x1x32xf32, #tpu.memory_space<vmem>>, vector<1x1x32xf32>
    %43 = vector.shape_cast %42 : vector<1x1x32xf32> to vector<1x32xf32>
    %cst_30 = arith.constant dense<0.000000e+00> : vector<7xf32>
    %44 = vector.multi_reduction <add>, %39, %cst_30 [1] : vector<7x32xf32> to vector<7xf32>
    %45 = vector.shape_cast %44 : vector<7xf32> to vector<7x1xf32>
    %cst_31 = arith.constant 3.200000e+01 : f32
    %46 = vector.broadcast %cst_31 : f32 to vector<7x1xf32>
    %47 = arith.divf %45, %46 : vector<7x1xf32>
    %48 = vector.broadcast %47 : vector<7x1xf32> to vector<7x32xf32>
    %49 = arith.subf %39, %48 : vector<7x32xf32>
    %50 = arith.mulf %49, %49 : vector<7x32xf32>
    %cst_32 = arith.constant dense<0.000000e+00> : vector<7xf32>
    %51 = vector.multi_reduction <add>, %50, %cst_32 [1] : vector<7x32xf32> to vector<7xf32>
    %52 = vector.shape_cast %51 : vector<7xf32> to vector<7x1xf32>
    %cst_33 = arith.constant 3.200000e+01 : f32
    %53 = vector.broadcast %cst_33 : f32 to vector<7x1xf32>
    %54 = arith.divf %52, %53 : vector<7x1xf32>
    %55 = vector.broadcast %47 : vector<7x1xf32> to vector<7x32xf32>
    %56 = arith.subf %39, %55 : vector<7x32xf32>
    %cst_34 = arith.constant 9.99999974E-6 : f32
    %57 = vector.broadcast %cst_34 : f32 to vector<7x1xf32>
    %58 = arith.addf %54, %57 : vector<7x1xf32>
    %59 = math.rsqrt %58 : vector<7x1xf32>
    %60 = vector.broadcast %59 : vector<7x1xf32> to vector<7x32xf32>
    %61 = arith.mulf %56, %60 : vector<7x32xf32>
    %62 = vector.broadcast %41 : vector<1x32xf32> to vector<7x32xf32>
    %63 = arith.mulf %61, %62 : vector<7x32xf32>
    %64 = vector.broadcast %43 : vector<1x32xf32> to vector<7x32xf32>
    %65 = arith.addf %63, %64 : vector<7x32xf32>
    %66 = arith.addf %3, %4 : vector<16x32xf32>
    %c1 = arith.constant 1 : index
    %c0_35 = arith.constant 0 : index
    %c0_36 = arith.constant 0 : index
    %67 = vector.load %arg4[%c1, %c0_35, %c0_36] : memref<4x32x96xbf16, #tpu.memory_space<vmem>>, vector<1x32x96xbf16>
    %68 = vector.shape_cast %67 : vector<1x32x96xbf16> to vector<32x96xbf16>
    %c1_37 = arith.constant 1 : index
    %c0_38 = arith.constant 0 : index
    %c0_39 = arith.constant 0 : index
    %69 = vector.load %arg5[%c1_37, %c0_38, %c0_39] : memref<4x1x96xf32, #tpu.memory_space<vmem>>, vector<1x1x96xf32>
    %70 = vector.shape_cast %69 : vector<1x1x96xf32> to vector<1x96xf32>
    %c1_40 = arith.constant 1 : index
    %c0_41 = arith.constant 0 : index
    %c0_42 = arith.constant 0 : index
    %71 = vector.load %arg6[%c1_40, %c0_41, %c0_42] : memref<4x32x32xbf16, #tpu.memory_space<vmem>>, vector<1x32x32xbf16>
    %72 = vector.shape_cast %71 : vector<1x32x32xbf16> to vector<32x32xbf16>
    %c1_43 = arith.constant 1 : index
    %c0_44 = arith.constant 0 : index
    %c0_45 = arith.constant 0 : index
    %73 = vector.load %arg7[%c1_43, %c0_44, %c0_45] : memref<4x1x32xf32, #tpu.memory_space<vmem>>, vector<1x1x32xf32>
    %74 = vector.shape_cast %73 : vector<1x1x32xf32> to vector<1x32xf32>
    %75 = vector.extract_strided_slice %68 {offsets = [0, 0], sizes = [32, 32], strides = [1, 1]} : vector<32x96xbf16> to vector<32x32xbf16>
    %76 = arith.truncf %65 : vector<7x32xf32> to vector<7x32xbf16>
    %cst_46 = arith.constant dense<0.000000e+00> : vector<7x32xf32>
    %77 = tpu.matmul %76, %75, %cst_46 {dimension_numbers = #tpu.dot_dimension_numbers<[1], [0], [0], [1], [0, 0, 1, 1], [], []>} : vector<7x32xbf16>, vector<32x32xbf16>, vector<7x32xf32> -> vector<7x32xf32>
    %78 = vector.extract_strided_slice %70 {offsets = [0, 0], sizes = [1, 32], strides = [1, 1]} : vector<1x96xf32> to vector<1x32xf32>
    %79 = vector.broadcast %78 : vector<1x32xf32> to vector<7x32xf32>
    %80 = arith.addf %77, %79 : vector<7x32xf32>
    %81 = vector.extract_strided_slice %68 {offsets = [0, 32], sizes = [32, 32], strides = [1, 1]} : vector<32x96xbf16> to vector<32x32xbf16>
    %82 = arith.truncf %66 : vector<16x32xf32> to vector<16x32xbf16>
    %cst_47 = arith.constant dense<0.000000e+00> : vector<16x32xf32>
    %83 = tpu.matmul %82, %81, %cst_47 {dimension_numbers = #tpu.dot_dimension_numbers<[1], [0], [0], [1], [0, 0, 1, 1], [], []>} : vector<16x32xbf16>, vector<32x32xbf16>, vector<16x32xf32> -> vector<16x32xf32>
    %84 = vector.extract_strided_slice %70 {offsets = [0, 32], sizes = [1, 32], strides = [1, 1]} : vector<1x96xf32> to vector<1x32xf32>
    %85 = vector.broadcast %84 : vector<1x32xf32> to vector<16x32xf32>
    %86 = arith.addf %83, %85 : vector<16x32xf32>
    %87 = vector.extract_strided_slice %68 {offsets = [0, 64], sizes = [32, 32], strides = [1, 1]} : vector<32x96xbf16> to vector<32x32xbf16>
    %88 = arith.truncf %3 : vector<16x32xf32> to vector<16x32xbf16>
    %cst_48 = arith.constant dense<0.000000e+00> : vector<16x32xf32>
    %89 = tpu.matmul %88, %87, %cst_48 {dimension_numbers = #tpu.dot_dimension_numbers<[1], [0], [0], [1], [0, 0, 1, 1], [], []>} : vector<16x32xbf16>, vector<32x32xbf16>, vector<16x32xf32> -> vector<16x32xf32>
    %90 = vector.extract_strided_slice %70 {offsets = [0, 64], sizes = [1, 32], strides = [1, 1]} : vector<1x96xf32> to vector<1x32xf32>
    %91 = vector.broadcast %90 : vector<1x32xf32> to vector<16x32xf32>
    %92 = arith.addf %89, %91 : vector<16x32xf32>
    %93 = arith.truncf %80 : vector<7x32xf32> to vector<7x32xbf16>
    %94 = arith.truncf %86 : vector<16x32xf32> to vector<16x32xbf16>
    %cst_49 = arith.constant dense<0.000000e+00> : vector<7x16xf32>
    %95 = tpu.matmul %93, %94, %cst_49 {dimension_numbers = #tpu.dot_dimension_numbers<[1], [1], [0], [0], [0, 0, 1, 0], [], []>} : vector<7x32xbf16>, vector<16x32xbf16>, vector<7x16xf32> -> vector<7x16xf32>
    %cst_50 = arith.constant dense<0xFF800000> : vector<7xf32>
    %96 = vector.multi_reduction <maximumf>, %95, %cst_50 [1] : vector<7x16xf32> to vector<7xf32>
    %97 = vector.shape_cast %96 : vector<7xf32> to vector<7x1xf32>
    %98 = vector.broadcast %97 : vector<7x1xf32> to vector<7x16xf32>
    %99 = arith.subf %95, %98 : vector<7x16xf32>
    %100 = math.exp %99 : vector<7x16xf32>
    %cst_51 = arith.constant dense<0.000000e+00> : vector<7xf32>
    %101 = vector.multi_reduction <add>, %100, %cst_51 [1] : vector<7x16xf32> to vector<7xf32>
    %102 = vector.shape_cast %101 : vector<7xf32> to vector<7x1xf32>
    %103 = vector.broadcast %102 : vector<7x1xf32> to vector<7x16xf32>
    %104 = arith.divf %100, %103 : vector<7x16xf32>
    %105 = arith.truncf %104 : vector<7x16xf32> to vector<7x16xbf16>
    %106 = arith.truncf %92 : vector<16x32xf32> to vector<16x32xbf16>
    %cst_52 = arith.constant dense<0.000000e+00> : vector<7x32xf32>
    %107 = tpu.matmul %105, %106, %cst_52 {dimension_numbers = #tpu.dot_dimension_numbers<[1], [0], [0], [1], [0, 0, 1, 1], [], []>} : vector<7x16xbf16>, vector<16x32xbf16>, vector<7x32xf32> -> vector<7x32xf32>
    %108 = arith.truncf %107 : vector<7x32xf32> to vector<7x32xbf16>
    %cst_53 = arith.constant dense<0.000000e+00> : vector<7x32xf32>
    %109 = tpu.matmul %108, %72, %cst_53 {dimension_numbers = #tpu.dot_dimension_numbers<[1], [0], [0], [1], [0, 0, 1, 1], [], []>} : vector<7x32xbf16>, vector<32x32xbf16>, vector<7x32xf32> -> vector<7x32xf32>
    %110 = vector.broadcast %74 : vector<1x32xf32> to vector<7x32xf32>
    %111 = arith.addf %109, %110 : vector<7x32xf32>
    %112 = arith.addf %65, %111 : vector<7x32xf32>
    %c1_54 = arith.constant 1 : index
    %c0_55 = arith.constant 0 : index
    %c0_56 = arith.constant 0 : index
    %113 = vector.load %arg8[%c1_54, %c0_55, %c0_56] : memref<5x1x32xf32, #tpu.memory_space<vmem>>, vector<1x1x32xf32>
    %114 = vector.shape_cast %113 : vector<1x1x32xf32> to vector<1x32xf32>
    %c1_57 = arith.constant 1 : index
    %c0_58 = arith.constant 0 : index
    %c0_59 = arith.constant 0 : index
    %115 = vector.load %arg9[%c1_57, %c0_58, %c0_59] : memref<5x1x32xf32, #tpu.memory_space<vmem>>, vector<1x1x32xf32>
    %116 = vector.shape_cast %115 : vector<1x1x32xf32> to vector<1x32xf32>
    %cst_60 = arith.constant dense<0.000000e+00> : vector<7xf32>
    %117 = vector.multi_reduction <add>, %112, %cst_60 [1] : vector<7x32xf32> to vector<7xf32>
    %118 = vector.shape_cast %117 : vector<7xf32> to vector<7x1xf32>
    %cst_61 = arith.constant 3.200000e+01 : f32
    %119 = vector.broadcast %cst_61 : f32 to vector<7x1xf32>
    %120 = arith.divf %118, %119 : vector<7x1xf32>
    %121 = vector.broadcast %120 : vector<7x1xf32> to vector<7x32xf32>
    %122 = arith.subf %112, %121 : vector<7x32xf32>
    %123 = arith.mulf %122, %122 : vector<7x32xf32>
    %cst_62 = arith.constant dense<0.000000e+00> : vector<7xf32>
    %124 = vector.multi_reduction <add>, %123, %cst_62 [1] : vector<7x32xf32> to vector<7xf32>
    %125 = vector.shape_cast %124 : vector<7xf32> to vector<7x1xf32>
    %cst_63 = arith.constant 3.200000e+01 : f32
    %126 = vector.broadcast %cst_63 : f32 to vector<7x1xf32>
    %127 = arith.divf %125, %126 : vector<7x1xf32>
    %128 = vector.broadcast %120 : vector<7x1xf32> to vector<7x32xf32>
    %129 = arith.subf %112, %128 : vector<7x32xf32>
    %cst_64 = arith.constant 9.99999974E-6 : f32
    %130 = vector.broadcast %cst_64 : f32 to vector<7x1xf32>
    %131 = arith.addf %127, %130 : vector<7x1xf32>
    %132 = math.rsqrt %131 : vector<7x1xf32>
    %133 = vector.broadcast %132 : vector<7x1xf32> to vector<7x32xf32>
    %134 = arith.mulf %129, %133 : vector<7x32xf32>
    %135 = vector.broadcast %114 : vector<1x32xf32> to vector<7x32xf32>
    %136 = arith.mulf %134, %135 : vector<7x32xf32>
    %137 = vector.broadcast %116 : vector<1x32xf32> to vector<7x32xf32>
    %138 = arith.addf %136, %137 : vector<7x32xf32>
    %c0_65 = arith.constant 0 : index
    %c0_66 = arith.constant 0 : index
    %139 = vector.load %arg10[%c0_65, %c0_66] : memref<32x64xbf16, #tpu.memory_space<vmem>>, vector<32x64xbf16>
    %140 = arith.truncf %138 : vector<7x32xf32> to vector<7x32xbf16>
    %cst_67 = arith.constant dense<0.000000e+00> : vector<7x64xf32>
    %141 = tpu.matmul %140, %139, %cst_67 {dimension_numbers = #tpu.dot_dimension_numbers<[1], [0], [0], [1], [0, 0, 1, 1], [], []>} : vector<7x32xbf16>, vector<32x64xbf16>, vector<7x64xf32> -> vector<7x64xf32>
    %c0_68 = arith.constant 0 : index
    %c0_69 = arith.constant 0 : index
    %142 = vector.load %arg11[%c0_68, %c0_69] : memref<1x64xf32, #tpu.memory_space<vmem>>, vector<1x64xf32>
    %143 = vector.broadcast %142 : vector<1x64xf32> to vector<7x64xf32>
    %144 = arith.addf %141, %143 : vector<7x64xf32>
    %cst_70 = arith.constant 0.000000e+00 : f32
    %145 = vector.broadcast %cst_70 : f32 to vector<7x64xf32>
    %146 = arith.maximumf %144, %145 : vector<7x64xf32>
    %c0_71 = arith.constant 0 : index
    %c0_72 = arith.constant 0 : index
    %147 = vector.load %arg12[%c0_71, %c0_72] : memref<64x32xbf16, #tpu.memory_space<vmem>>, vector<64x32xbf16>
    %148 = arith.truncf %146 : vector<7x64xf32> to vector<7x64xbf16>
    %cst_73 = arith.constant dense<0.000000e+00> : vector<7x32xf32>
    %149 = tpu.matmul %148, %147, %cst_73 {dimension_numbers = #tpu.dot_dimension_numbers<[1], [0], [0], [1], [0, 0, 1, 1], [], []>} : vector<7x64xbf16>, vector<64x32xbf16>, vector<7x32xf32> -> vector<7x32xf32>
    %c0_74 = arith.constant 0 : index
    %c0_75 = arith.constant 0 : index
    %150 = vector.load %arg13[%c0_74, %c0_75] : memref<1x32xf32, #tpu.memory_space<vmem>>, vector<1x32xf32>
    %151 = vector.broadcast %150 : vector<1x32xf32> to vector<7x32xf32>
    %152 = arith.addf %149, %151 : vector<7x32xf32>
    %153 = arith.addf %138, %152 : vector<7x32xf32>
    %c2 = arith.constant 2 : index
    %c0_76 = arith.constant 0 : index
    %c0_77 = arith.constant 0 : index
    %154 = vector.load %arg8[%c2, %c0_76, %c0_77] : memref<5x1x32xf32, #tpu.memory_space<vmem>>, vector<1x1x32xf32>
    %155 = vector.shape_cast %154 : vector<1x1x32xf32> to vector<1x32xf32>
    %c2_78 = arith.constant 2 : index
    %c0_79 = arith.constant 0 : index
    %c0_80 = arith.constant 0 : index
    %156 = vector.load %arg9[%c2_78, %c0_79, %c0_80] : memref<5x1x32xf32, #tpu.memory_space<vmem>>, vector<1x1x32xf32>
    %157 = vector.shape_cast %156 : vector<1x1x32xf32> to vector<1x32xf32>
    %cst_81 = arith.constant dense<0.000000e+00> : vector<7xf32>
    %158 = vector.multi_reduction <add>, %153, %cst_81 [1] : vector<7x32xf32> to vector<7xf32>
    %159 = vector.shape_cast %158 : vector<7xf32> to vector<7x1xf32>
    %cst_82 = arith.constant 3.200000e+01 : f32
    %160 = vector.broadcast %cst_82 : f32 to vector<7x1xf32>
    %161 = arith.divf %159, %160 : vector<7x1xf32>
    %162 = vector.broadcast %161 : vector<7x1xf32> to vector<7x32xf32>
    %163 = arith.subf %153, %162 : vector<7x32xf32>
    %164 = arith.mulf %163, %163 : vector<7x32xf32>
    %cst_83 = arith.constant dense<0.000000e+00> : vector<7xf32>
    %165 = vector.multi_reduction <add>, %164, %cst_83 [1] : vector<7x32xf32> to vector<7xf32>
    %166 = vector.shape_cast %165 : vector<7xf32> to vector<7x1xf32>
    %cst_84 = arith.constant 3.200000e+01 : f32
    %167 = vector.broadcast %cst_84 : f32 to vector<7x1xf32>
    %168 = arith.divf %166, %167 : vector<7x1xf32>
    %169 = vector.broadcast %161 : vector<7x1xf32> to vector<7x32xf32>
    %170 = arith.subf %153, %169 : vector<7x32xf32>
    %cst_85 = arith.constant 9.99999974E-6 : f32
    %171 = vector.broadcast %cst_85 : f32 to vector<7x1xf32>
    %172 = arith.addf %168, %171 : vector<7x1xf32>
    %173 = math.rsqrt %172 : vector<7x1xf32>
    %174 = vector.broadcast %173 : vector<7x1xf32> to vector<7x32xf32>
    %175 = arith.mulf %170, %174 : vector<7x32xf32>
    %176 = vector.broadcast %155 : vector<1x32xf32> to vector<7x32xf32>
    %177 = arith.mulf %175, %176 : vector<7x32xf32>
    %178 = vector.broadcast %157 : vector<1x32xf32> to vector<7x32xf32>
    %179 = arith.addf %177, %178 : vector<7x32xf32>
    %180 = arith.addf %3, %4 : vector<16x32xf32>
    %c2_86 = arith.constant 2 : index
    %c0_87 = arith.constant 0 : index
    %c0_88 = arith.constant 0 : index
    %181 = vector.load %arg4[%c2_86, %c0_87, %c0_88] : memref<4x32x96xbf16, #tpu.memory_space<vmem>>, vector<1x32x96xbf16>
    %182 = vector.shape_cast %181 : vector<1x32x96xbf16> to vector<32x96xbf16>
    %c2_89 = arith.constant 2 : index
    %c0_90 = arith.constant 0 : index
    %c0_91 = arith.constant 0 : index
    %183 = vector.load %arg5[%c2_89, %c0_90, %c0_91] : memref<4x1x96xf32, #tpu.memory_space<vmem>>, vector<1x1x96xf32>
    %184 = vector.shape_cast %183 : vector<1x1x96xf32> to vector<1x96xf32>
    %c2_92 = arith.constant 2 : index
    %c0_93 = arith.constant 0 : index
    %c0_94 = arith.constant 0 : index
    %185 = vector.load %arg6[%c2_92, %c0_93, %c0_94] : memref<4x32x32xbf16, #tpu.memory_space<vmem>>, vector<1x32x32xbf16>
    %186 = vector.shape_cast %185 : vector<1x32x32xbf16> to vector<32x32xbf16>
    %c2_95 = arith.constant 2 : index
    %c0_96 = arith.constant 0 : index
    %c0_97 = arith.constant 0 : index
    %187 = vector.load %arg7[%c2_95, %c0_96, %c0_97] : memref<4x1x32xf32, #tpu.memory_space<vmem>>, vector<1x1x32xf32>
    %188 = vector.shape_cast %187 : vector<1x1x32xf32> to vector<1x32xf32>
    %189 = vector.extract_strided_slice %182 {offsets = [0, 0], sizes = [32, 32], strides = [1, 1]} : vector<32x96xbf16> to vector<32x32xbf16>
    %190 = arith.truncf %180 : vector<16x32xf32> to vector<16x32xbf16>
    %cst_98 = arith.constant dense<0.000000e+00> : vector<16x32xf32>
    %191 = tpu.matmul %190, %189, %cst_98 {dimension_numbers = #tpu.dot_dimension_numbers<[1], [0], [0], [1], [0, 0, 1, 1], [], []>} : vector<16x32xbf16>, vector<32x32xbf16>, vector<16x32xf32> -> vector<16x32xf32>
    %192 = vector.extract_strided_slice %184 {offsets = [0, 0], sizes = [1, 32], strides = [1, 1]} : vector<1x96xf32> to vector<1x32xf32>
    %193 = vector.broadcast %192 : vector<1x32xf32> to vector<16x32xf32>
    %194 = arith.addf %191, %193 : vector<16x32xf32>
    %195 = vector.extract_strided_slice %182 {offsets = [0, 32], sizes = [32, 32], strides = [1, 1]} : vector<32x96xbf16> to vector<32x32xbf16>
    %196 = arith.truncf %179 : vector<7x32xf32> to vector<7x32xbf16>
    %cst_99 = arith.constant dense<0.000000e+00> : vector<7x32xf32>
    %197 = tpu.matmul %196, %195, %cst_99 {dimension_numbers = #tpu.dot_dimension_numbers<[1], [0], [0], [1], [0, 0, 1, 1], [], []>} : vector<7x32xbf16>, vector<32x32xbf16>, vector<7x32xf32> -> vector<7x32xf32>
    %198 = vector.extract_strided_slice %184 {offsets = [0, 32], sizes = [1, 32], strides = [1, 1]} : vector<1x96xf32> to vector<1x32xf32>
    %199 = vector.broadcast %198 : vector<1x32xf32> to vector<7x32xf32>
    %200 = arith.addf %197, %199 : vector<7x32xf32>
    %201 = vector.extract_strided_slice %182 {offsets = [0, 64], sizes = [32, 32], strides = [1, 1]} : vector<32x96xbf16> to vector<32x32xbf16>
    %202 = arith.truncf %179 : vector<7x32xf32> to vector<7x32xbf16>
    %cst_100 = arith.constant dense<0.000000e+00> : vector<7x32xf32>
    %203 = tpu.matmul %202, %201, %cst_100 {dimension_numbers = #tpu.dot_dimension_numbers<[1], [0], [0], [1], [0, 0, 1, 1], [], []>} : vector<7x32xbf16>, vector<32x32xbf16>, vector<7x32xf32> -> vector<7x32xf32>
    %204 = vector.extract_strided_slice %184 {offsets = [0, 64], sizes = [1, 32], strides = [1, 1]} : vector<1x96xf32> to vector<1x32xf32>
    %205 = vector.broadcast %204 : vector<1x32xf32> to vector<7x32xf32>
    %206 = arith.addf %203, %205 : vector<7x32xf32>
    %207 = arith.truncf %194 : vector<16x32xf32> to vector<16x32xbf16>
    %208 = arith.truncf %200 : vector<7x32xf32> to vector<7x32xbf16>
    %cst_101 = arith.constant dense<0.000000e+00> : vector<16x7xf32>
    %209 = tpu.matmul %207, %208, %cst_101 {dimension_numbers = #tpu.dot_dimension_numbers<[1], [1], [0], [0], [0, 0, 1, 0], [], []>} : vector<16x32xbf16>, vector<7x32xbf16>, vector<16x7xf32> -> vector<16x7xf32>
    %cst_102 = arith.constant dense<0xFF800000> : vector<16xf32>
    %210 = vector.multi_reduction <maximumf>, %209, %cst_102 [1] : vector<16x7xf32> to vector<16xf32>
    %211 = vector.shape_cast %210 : vector<16xf32> to vector<16x1xf32>
    %212 = vector.broadcast %211 : vector<16x1xf32> to vector<16x7xf32>
    %213 = arith.subf %209, %212 : vector<16x7xf32>
    %214 = math.exp %213 : vector<16x7xf32>
    %cst_103 = arith.constant dense<0.000000e+00> : vector<16xf32>
    %215 = vector.multi_reduction <add>, %214, %cst_103 [1] : vector<16x7xf32> to vector<16xf32>
    %216 = vector.shape_cast %215 : vector<16xf32> to vector<16x1xf32>
    %217 = vector.broadcast %216 : vector<16x1xf32> to vector<16x7xf32>
    %218 = arith.divf %214, %217 : vector<16x7xf32>
    %219 = arith.truncf %218 : vector<16x7xf32> to vector<16x7xbf16>
    %220 = arith.truncf %206 : vector<7x32xf32> to vector<7x32xbf16>
    %cst_104 = arith.constant dense<0.000000e+00> : vector<16x32xf32>
    %221 = tpu.matmul %219, %220, %cst_104 {dimension_numbers = #tpu.dot_dimension_numbers<[1], [0], [0], [1], [0, 0, 1, 1], [], []>} : vector<16x7xbf16>, vector<7x32xbf16>, vector<16x32xf32> -> vector<16x32xf32>
    %222 = arith.truncf %221 : vector<16x32xf32> to vector<16x32xbf16>
    %cst_105 = arith.constant dense<0.000000e+00> : vector<16x32xf32>
    %223 = tpu.matmul %222, %186, %cst_105 {dimension_numbers = #tpu.dot_dimension_numbers<[1], [0], [0], [1], [0, 0, 1, 1], [], []>} : vector<16x32xbf16>, vector<32x32xbf16>, vector<16x32xf32> -> vector<16x32xf32>
    %224 = vector.broadcast %188 : vector<1x32xf32> to vector<16x32xf32>
    %225 = arith.addf %223, %224 : vector<16x32xf32>
    %226 = arith.addf %3, %225 : vector<16x32xf32>
    %c3 = arith.constant 3 : index
    %c0_106 = arith.constant 0 : index
    %c0_107 = arith.constant 0 : index
    %227 = vector.load %arg8[%c3, %c0_106, %c0_107] : memref<5x1x32xf32, #tpu.memory_space<vmem>>, vector<1x1x32xf32>
    %228 = vector.shape_cast %227 : vector<1x1x32xf32> to vector<1x32xf32>
    %c3_108 = arith.constant 3 : index
    %c0_109 = arith.constant 0 : index
    %c0_110 = arith.constant 0 : index
    %229 = vector.load %arg9[%c3_108, %c0_109, %c0_110] : memref<5x1x32xf32, #tpu.memory_space<vmem>>, vector<1x1x32xf32>
    %230 = vector.shape_cast %229 : vector<1x1x32xf32> to vector<1x32xf32>
    %cst_111 = arith.constant dense<0.000000e+00> : vector<16xf32>
    %231 = vector.multi_reduction <add>, %226, %cst_111 [1] : vector<16x32xf32> to vector<16xf32>
    %232 = vector.shape_cast %231 : vector<16xf32> to vector<16x1xf32>
    %cst_112 = arith.constant 3.200000e+01 : f32
    %233 = vector.broadcast %cst_112 : f32 to vector<16x1xf32>
    %234 = arith.divf %232, %233 : vector<16x1xf32>
    %235 = vector.broadcast %234 : vector<16x1xf32> to vector<16x32xf32>
    %236 = arith.subf %226, %235 : vector<16x32xf32>
    %237 = arith.mulf %236, %236 : vector<16x32xf32>
    %cst_113 = arith.constant dense<0.000000e+00> : vector<16xf32>
    %238 = vector.multi_reduction <add>, %237, %cst_113 [1] : vector<16x32xf32> to vector<16xf32>
    %239 = vector.shape_cast %238 : vector<16xf32> to vector<16x1xf32>
    %cst_114 = arith.constant 3.200000e+01 : f32
    %240 = vector.broadcast %cst_114 : f32 to vector<16x1xf32>
    %241 = arith.divf %239, %240 : vector<16x1xf32>
    %242 = vector.broadcast %234 : vector<16x1xf32> to vector<16x32xf32>
    %243 = arith.subf %226, %242 : vector<16x32xf32>
    %cst_115 = arith.constant 9.99999974E-6 : f32
    %244 = vector.broadcast %cst_115 : f32 to vector<16x1xf32>
    %245 = arith.addf %241, %244 : vector<16x1xf32>
    %246 = math.rsqrt %245 : vector<16x1xf32>
    %247 = vector.broadcast %246 : vector<16x1xf32> to vector<16x32xf32>
    %248 = arith.mulf %243, %247 : vector<16x32xf32>
    %249 = vector.broadcast %228 : vector<1x32xf32> to vector<16x32xf32>
    %250 = arith.mulf %248, %249 : vector<16x32xf32>
    %251 = vector.broadcast %230 : vector<1x32xf32> to vector<16x32xf32>
    %252 = arith.addf %250, %251 : vector<16x32xf32>
    %253 = arith.addf %252, %4 : vector<16x32xf32>
    %c3_116 = arith.constant 3 : index
    %c0_117 = arith.constant 0 : index
    %c0_118 = arith.constant 0 : index
    %254 = vector.load %arg4[%c3_116, %c0_117, %c0_118] : memref<4x32x96xbf16, #tpu.memory_space<vmem>>, vector<1x32x96xbf16>
    %255 = vector.shape_cast %254 : vector<1x32x96xbf16> to vector<32x96xbf16>
    %c3_119 = arith.constant 3 : index
    %c0_120 = arith.constant 0 : index
    %c0_121 = arith.constant 0 : index
    %256 = vector.load %arg5[%c3_119, %c0_120, %c0_121] : memref<4x1x96xf32, #tpu.memory_space<vmem>>, vector<1x1x96xf32>
    %257 = vector.shape_cast %256 : vector<1x1x96xf32> to vector<1x96xf32>
    %c3_122 = arith.constant 3 : index
    %c0_123 = arith.constant 0 : index
    %c0_124 = arith.constant 0 : index
    %258 = vector.load %arg6[%c3_122, %c0_123, %c0_124] : memref<4x32x32xbf16, #tpu.memory_space<vmem>>, vector<1x32x32xbf16>
    %259 = vector.shape_cast %258 : vector<1x32x32xbf16> to vector<32x32xbf16>
    %c3_125 = arith.constant 3 : index
    %c0_126 = arith.constant 0 : index
    %c0_127 = arith.constant 0 : index
    %260 = vector.load %arg7[%c3_125, %c0_126, %c0_127] : memref<4x1x32xf32, #tpu.memory_space<vmem>>, vector<1x1x32xf32>
    %261 = vector.shape_cast %260 : vector<1x1x32xf32> to vector<1x32xf32>
    %262 = vector.extract_strided_slice %255 {offsets = [0, 0], sizes = [32, 32], strides = [1, 1]} : vector<32x96xbf16> to vector<32x32xbf16>
    %263 = arith.truncf %179 : vector<7x32xf32> to vector<7x32xbf16>
    %cst_128 = arith.constant dense<0.000000e+00> : vector<7x32xf32>
    %264 = tpu.matmul %263, %262, %cst_128 {dimension_numbers = #tpu.dot_dimension_numbers<[1], [0], [0], [1], [0, 0, 1, 1], [], []>} : vector<7x32xbf16>, vector<32x32xbf16>, vector<7x32xf32> -> vector<7x32xf32>
    %265 = vector.extract_strided_slice %257 {offsets = [0, 0], sizes = [1, 32], strides = [1, 1]} : vector<1x96xf32> to vector<1x32xf32>
    %266 = vector.broadcast %265 : vector<1x32xf32> to vector<7x32xf32>
    %267 = arith.addf %264, %266 : vector<7x32xf32>
    %268 = vector.extract_strided_slice %255 {offsets = [0, 32], sizes = [32, 32], strides = [1, 1]} : vector<32x96xbf16> to vector<32x32xbf16>
    %269 = arith.truncf %253 : vector<16x32xf32> to vector<16x32xbf16>
    %cst_129 = arith.constant dense<0.000000e+00> : vector<16x32xf32>
    %270 = tpu.matmul %269, %268, %cst_129 {dimension_numbers = #tpu.dot_dimension_numbers<[1], [0], [0], [1], [0, 0, 1, 1], [], []>} : vector<16x32xbf16>, vector<32x32xbf16>, vector<16x32xf32> -> vector<16x32xf32>
    %271 = vector.extract_strided_slice %257 {offsets = [0, 32], sizes = [1, 32], strides = [1, 1]} : vector<1x96xf32> to vector<1x32xf32>
    %272 = vector.broadcast %271 : vector<1x32xf32> to vector<16x32xf32>
    %273 = arith.addf %270, %272 : vector<16x32xf32>
    %274 = vector.extract_strided_slice %255 {offsets = [0, 64], sizes = [32, 32], strides = [1, 1]} : vector<32x96xbf16> to vector<32x32xbf16>
    %275 = arith.truncf %252 : vector<16x32xf32> to vector<16x32xbf16>
    %cst_130 = arith.constant dense<0.000000e+00> : vector<16x32xf32>
    %276 = tpu.matmul %275, %274, %cst_130 {dimension_numbers = #tpu.dot_dimension_numbers<[1], [0], [0], [1], [0, 0, 1, 1], [], []>} : vector<16x32xbf16>, vector<32x32xbf16>, vector<16x32xf32> -> vector<16x32xf32>
    %277 = vector.extract_strided_slice %257 {offsets = [0, 64], sizes = [1, 32], strides = [1, 1]} : vector<1x96xf32> to vector<1x32xf32>
    %278 = vector.broadcast %277 : vector<1x32xf32> to vector<16x32xf32>
    %279 = arith.addf %276, %278 : vector<16x32xf32>
    %280 = arith.truncf %267 : vector<7x32xf32> to vector<7x32xbf16>
    %281 = arith.truncf %273 : vector<16x32xf32> to vector<16x32xbf16>
    %cst_131 = arith.constant dense<0.000000e+00> : vector<7x16xf32>
    %282 = tpu.matmul %280, %281, %cst_131 {dimension_numbers = #tpu.dot_dimension_numbers<[1], [1], [0], [0], [0, 0, 1, 0], [], []>} : vector<7x32xbf16>, vector<16x32xbf16>, vector<7x16xf32> -> vector<7x16xf32>
    %cst_132 = arith.constant dense<0xFF800000> : vector<7xf32>
    %283 = vector.multi_reduction <maximumf>, %282, %cst_132 [1] : vector<7x16xf32> to vector<7xf32>
    %284 = vector.shape_cast %283 : vector<7xf32> to vector<7x1xf32>
    %285 = vector.broadcast %284 : vector<7x1xf32> to vector<7x16xf32>
    %286 = arith.subf %282, %285 : vector<7x16xf32>
    %287 = math.exp %286 : vector<7x16xf32>
    %cst_133 = arith.constant dense<0.000000e+00> : vector<7xf32>
    %288 = vector.multi_reduction <add>, %287, %cst_133 [1] : vector<7x16xf32> to vector<7xf32>
    %289 = vector.shape_cast %288 : vector<7xf32> to vector<7x1xf32>
    %290 = vector.broadcast %289 : vector<7x1xf32> to vector<7x16xf32>
    %291 = arith.divf %287, %290 : vector<7x16xf32>
    %292 = arith.truncf %291 : vector<7x16xf32> to vector<7x16xbf16>
    %293 = arith.truncf %279 : vector<16x32xf32> to vector<16x32xbf16>
    %cst_134 = arith.constant dense<0.000000e+00> : vector<7x32xf32>
    %294 = tpu.matmul %292, %293, %cst_134 {dimension_numbers = #tpu.dot_dimension_numbers<[1], [0], [0], [1], [0, 0, 1, 1], [], []>} : vector<7x16xbf16>, vector<16x32xbf16>, vector<7x32xf32> -> vector<7x32xf32>
    %295 = arith.truncf %294 : vector<7x32xf32> to vector<7x32xbf16>
    %cst_135 = arith.constant dense<0.000000e+00> : vector<7x32xf32>
    %296 = tpu.matmul %295, %259, %cst_135 {dimension_numbers = #tpu.dot_dimension_numbers<[1], [0], [0], [1], [0, 0, 1, 1], [], []>} : vector<7x32xbf16>, vector<32x32xbf16>, vector<7x32xf32> -> vector<7x32xf32>
    %297 = vector.broadcast %261 : vector<1x32xf32> to vector<7x32xf32>
    %298 = arith.addf %296, %297 : vector<7x32xf32>
    %299 = arith.addf %179, %298 : vector<7x32xf32>
    %c4 = arith.constant 4 : index
    %c0_136 = arith.constant 0 : index
    %c0_137 = arith.constant 0 : index
    %300 = vector.load %arg8[%c4, %c0_136, %c0_137] : memref<5x1x32xf32, #tpu.memory_space<vmem>>, vector<1x1x32xf32>
    %301 = vector.shape_cast %300 : vector<1x1x32xf32> to vector<1x32xf32>
    %c4_138 = arith.constant 4 : index
    %c0_139 = arith.constant 0 : index
    %c0_140 = arith.constant 0 : index
    %302 = vector.load %arg9[%c4_138, %c0_139, %c0_140] : memref<5x1x32xf32, #tpu.memory_space<vmem>>, vector<1x1x32xf32>
    %303 = vector.shape_cast %302 : vector<1x1x32xf32> to vector<1x32xf32>
    %cst_141 = arith.constant dense<0.000000e+00> : vector<7xf32>
    %304 = vector.multi_reduction <add>, %299, %cst_141 [1] : vector<7x32xf32> to vector<7xf32>
    %305 = vector.shape_cast %304 : vector<7xf32> to vector<7x1xf32>
    %cst_142 = arith.constant 3.200000e+01 : f32
    %306 = vector.broadcast %cst_142 : f32 to vector<7x1xf32>
    %307 = arith.divf %305, %306 : vector<7x1xf32>
    %308 = vector.broadcast %307 : vector<7x1xf32> to vector<7x32xf32>
    %309 = arith.subf %299, %308 : vector<7x32xf32>
    %310 = arith.mulf %309, %309 : vector<7x32xf32>
    %cst_143 = arith.constant dense<0.000000e+00> : vector<7xf32>
    %311 = vector.multi_reduction <add>, %310, %cst_143 [1] : vector<7x32xf32> to vector<7xf32>
    %312 = vector.shape_cast %311 : vector<7xf32> to vector<7x1xf32>
    %cst_144 = arith.constant 3.200000e+01 : f32
    %313 = vector.broadcast %cst_144 : f32 to vector<7x1xf32>
    %314 = arith.divf %312, %313 : vector<7x1xf32>
    %315 = vector.broadcast %307 : vector<7x1xf32> to vector<7x32xf32>
    %316 = arith.subf %299, %315 : vector<7x32xf32>
    %cst_145 = arith.constant 9.99999974E-6 : f32
    %317 = vector.broadcast %cst_145 : f32 to vector<7x1xf32>
    %318 = arith.addf %314, %317 : vector<7x1xf32>
    %319 = math.rsqrt %318 : vector<7x1xf32>
    %320 = vector.broadcast %319 : vector<7x1xf32> to vector<7x32xf32>
    %321 = arith.mulf %316, %320 : vector<7x32xf32>
    %322 = vector.broadcast %301 : vector<1x32xf32> to vector<7x32xf32>
    %323 = arith.mulf %321, %322 : vector<7x32xf32>
    %324 = vector.broadcast %303 : vector<1x32xf32> to vector<7x32xf32>
    %325 = arith.addf %323, %324 : vector<7x32xf32>
    %c0_146 = arith.constant 0 : index
    %c0_147 = arith.constant 0 : index
    %c0_148 = arith.constant 0 : index
    %326 = vector.load %arg20[%c0_146, %c0_147, %c0_148] : memref<1x16x32xf32, #tpu.memory_space<vmem>>, vector<1x16x32xf32>
    %327 = vector.shape_cast %326 : vector<1x16x32xf32> to vector<16x32xf32>
    %328 = vector.shape_cast %252 : vector<16x32xf32> to vector<1x16x32xf32>
    tpu.vector_store %arg20[%c0_146, %c0_147, %c0_148], %328 {strides = array<i32>} : memref<1x16x32xf32, #tpu.memory_space<vmem>>, vector<1x16x32xf32>,
    %329 = vector.extract_strided_slice %325 {offsets = [0, 0], sizes = [1, 32], strides = [1, 1]} : vector<7x32xf32> to vector<1x32xf32>
    %330 = vector.extract_strided_slice %325 {offsets = [1, 0], sizes = [1, 32], strides = [1, 1]} : vector<7x32xf32> to vector<1x32xf32>
    %c0_149 = arith.constant 0 : index
    %c0_150 = arith.constant 0 : index
    %c0_151 = arith.constant 0 : index
    %331 = vector.load %arg14[%c0_149, %c0_150, %c0_151] : memref<2x32x32xbf16, #tpu.memory_space<vmem>>, vector<1x32x32xbf16>
    %332 = vector.shape_cast %331 : vector<1x32x32xbf16> to vector<32x32xbf16>
    %333 = arith.truncf %329 : vector<1x32xf32> to vector<1x32xbf16>
    %cst_152 = arith.constant dense<0.000000e+00> : vector<1x32xf32>
    %334 = tpu.matmul %333, %332, %cst_152 {dimension_numbers = #tpu.dot_dimension_numbers<[1], [0], [0], [1], [0, 0, 1, 1], [], []>} : vector<1x32xbf16>, vector<32x32xbf16>, vector<1x32xf32> -> vector<1x32xf32>
    %c0_153 = arith.constant 0 : index
    %c0_154 = arith.constant 0 : index
    %c0_155 = arith.constant 0 : index
    %335 = vector.load %arg15[%c0_153, %c0_154, %c0_155] : memref<2x1x32xf32, #tpu.memory_space<vmem>>, vector<1x1x32xf32>
    %336 = vector.shape_cast %335 : vector<1x1x32xf32> to vector<1x32xf32>
    %337 = arith.addf %334, %336 : vector<1x32xf32>
    %cst_156 = arith.constant 0.000000e+00 : f32
    %338 = vector.broadcast %cst_156 : f32 to vector<1x32xf32>
    %339 = arith.maximumf %337, %338 : vector<1x32xf32>
    %c0_157 = arith.constant 0 : index
    %c0_158 = arith.constant 0 : index
    %c0_159 = arith.constant 0 : index
    %340 = vector.load %arg16[%c0_157, %c0_158, %c0_159] : memref<2x32x32xbf16, #tpu.memory_space<vmem>>, vector<1x32x32xbf16>
    %341 = vector.shape_cast %340 : vector<1x32x32xbf16> to vector<32x32xbf16>
    %342 = arith.truncf %339 : vector<1x32xf32> to vector<1x32xbf16>
    %cst_160 = arith.constant dense<0.000000e+00> : vector<1x32xf32>
    %343 = tpu.matmul %342, %341, %cst_160 {dimension_numbers = #tpu.dot_dimension_numbers<[1], [0], [0], [1], [0, 0, 1, 1], [], []>} : vector<1x32xbf16>, vector<32x32xbf16>, vector<1x32xf32> -> vector<1x32xf32>
    %c0_161 = arith.constant 0 : index
    %c0_162 = arith.constant 0 : index
    %c0_163 = arith.constant 0 : index
    %344 = vector.load %arg17[%c0_161, %c0_162, %c0_163] : memref<2x1x32xf32, #tpu.memory_space<vmem>>, vector<1x1x32xf32>
    %345 = vector.shape_cast %344 : vector<1x1x32xf32> to vector<1x32xf32>
    %346 = arith.addf %343, %345 : vector<1x32xf32>
    %cst_164 = arith.constant 0.000000e+00 : f32
    %347 = vector.broadcast %cst_164 : f32 to vector<1x32xf32>
    %348 = arith.maximumf %346, %347 : vector<1x32xf32>
    %c0_165 = arith.constant 0 : index
    %c0_166 = arith.constant 0 : index
    %c0_167 = arith.constant 0 : index
    %349 = vector.load %arg18[%c0_165, %c0_166, %c0_167] : memref<2x32x4xbf16, #tpu.memory_space<vmem>>, vector<1x32x4xbf16>
    %350 = vector.shape_cast %349 : vector<1x32x4xbf16> to vector<32x4xbf16>
    %351 = arith.truncf %348 : vector<1x32xf32> to vector<1x32xbf16>
    %cst_168 = arith.constant dense<0.000000e+00> : vector<1x4xf32>
    %352 = tpu.matmul %351, %350, %cst_168 {dimension_numbers = #tpu.dot_dimension_numbers<[1], [0], [0], [1], [0, 0, 1, 1], [], []>} : vector<1x32xbf16>, vector<32x4xbf16>, vector<1x4xf32> -> vector<1x4xf32>
    %c0_169 = arith.constant 0 : index
    %c0_170 = arith.constant 0 : index
    %c0_171 = arith.constant 0 : index
    %353 = vector.load %arg19[%c0_169, %c0_170, %c0_171] : memref<2x1x4xf32, #tpu.memory_space<vmem>>, vector<1x1x4xf32>
    %354 = vector.shape_cast %353 : vector<1x1x4xf32> to vector<1x4xf32>
    %355 = arith.addf %352, %354 : vector<1x4xf32>
    %c0_172 = arith.constant 0 : index
    %c0_173 = arith.constant 0 : index
    %c0_174 = arith.constant 0 : index
    %356 = vector.load %arg22[%c0_172, %c0_173, %c0_174] : memref<1x1x4xf32, #tpu.memory_space<vmem>>, vector<1x1x4xf32>
    %357 = vector.shape_cast %356 : vector<1x1x4xf32> to vector<1x4xf32>
    %358 = vector.shape_cast %355 : vector<1x4xf32> to vector<1x1x4xf32>
    tpu.vector_store %arg22[%c0_172, %c0_173, %c0_174], %358 {strides = array<i32>} : memref<1x1x4xf32, #tpu.memory_space<vmem>>, vector<1x1x4xf32>,
    %c1_175 = arith.constant 1 : index
    %c0_176 = arith.constant 0 : index
    %c0_177 = arith.constant 0 : index
    %359 = vector.load %arg14[%c1_175, %c0_176, %c0_177] : memref<2x32x32xbf16, #tpu.memory_space<vmem>>, vector<1x32x32xbf16>
    %360 = vector.shape_cast %359 : vector<1x32x32xbf16> to vector<32x32xbf16>
    %361 = arith.truncf %330 : vector<1x32xf32> to vector<1x32xbf16>
    %cst_178 = arith.constant dense<0.000000e+00> : vector<1x32xf32>
    %362 = tpu.matmul %361, %360, %cst_178 {dimension_numbers = #tpu.dot_dimension_numbers<[1], [0], [0], [1], [0, 0, 1, 1], [], []>} : vector<1x32xbf16>, vector<32x32xbf16>, vector<1x32xf32> -> vector<1x32xf32>
    %c1_179 = arith.constant 1 : index
    %c0_180 = arith.constant 0 : index
    %c0_181 = arith.constant 0 : index
    %363 = vector.load %arg15[%c1_179, %c0_180, %c0_181] : memref<2x1x32xf32, #tpu.memory_space<vmem>>, vector<1x1x32xf32>
    %364 = vector.shape_cast %363 : vector<1x1x32xf32> to vector<1x32xf32>
    %365 = arith.addf %362, %364 : vector<1x32xf32>
    %cst_182 = arith.constant 0.000000e+00 : f32
    %366 = vector.broadcast %cst_182 : f32 to vector<1x32xf32>
    %367 = arith.maximumf %365, %366 : vector<1x32xf32>
    %c1_183 = arith.constant 1 : index
    %c0_184 = arith.constant 0 : index
    %c0_185 = arith.constant 0 : index
    %368 = vector.load %arg16[%c1_183, %c0_184, %c0_185] : memref<2x32x32xbf16, #tpu.memory_space<vmem>>, vector<1x32x32xbf16>
    %369 = vector.shape_cast %368 : vector<1x32x32xbf16> to vector<32x32xbf16>
    %370 = arith.truncf %367 : vector<1x32xf32> to vector<1x32xbf16>
    %cst_186 = arith.constant dense<0.000000e+00> : vector<1x32xf32>
    %371 = tpu.matmul %370, %369, %cst_186 {dimension_numbers = #tpu.dot_dimension_numbers<[1], [0], [0], [1], [0, 0, 1, 1], [], []>} : vector<1x32xbf16>, vector<32x32xbf16>, vector<1x32xf32> -> vector<1x32xf32>
    %c1_187 = arith.constant 1 : index
    %c0_188 = arith.constant 0 : index
    %c0_189 = arith.constant 0 : index
    %372 = vector.load %arg17[%c1_187, %c0_188, %c0_189] : memref<2x1x32xf32, #tpu.memory_space<vmem>>, vector<1x1x32xf32>
    %373 = vector.shape_cast %372 : vector<1x1x32xf32> to vector<1x32xf32>
    %374 = arith.addf %371, %373 : vector<1x32xf32>
    %cst_190 = arith.constant 0.000000e+00 : f32
    %375 = vector.broadcast %cst_190 : f32 to vector<1x32xf32>
    %376 = arith.maximumf %374, %375 : vector<1x32xf32>
    %c1_191 = arith.constant 1 : index
    %c0_192 = arith.constant 0 : index
    %c0_193 = arith.constant 0 : index
    %377 = vector.load %arg18[%c1_191, %c0_192, %c0_193] : memref<2x32x4xbf16, #tpu.memory_space<vmem>>, vector<1x32x4xbf16>
    %378 = vector.shape_cast %377 : vector<1x32x4xbf16> to vector<32x4xbf16>
    %379 = arith.truncf %376 : vector<1x32xf32> to vector<1x32xbf16>
    %cst_194 = arith.constant dense<0.000000e+00> : vector<1x4xf32>
    %380 = tpu.matmul %379, %378, %cst_194 {dimension_numbers = #tpu.dot_dimension_numbers<[1], [0], [0], [1], [0, 0, 1, 1], [], []>} : vector<1x32xbf16>, vector<32x4xbf16>, vector<1x4xf32> -> vector<1x4xf32>
    %c1_195 = arith.constant 1 : index
    %c0_196 = arith.constant 0 : index
    %c0_197 = arith.constant 0 : index
    %381 = vector.load %arg19[%c1_195, %c0_196, %c0_197] : memref<2x1x4xf32, #tpu.memory_space<vmem>>, vector<1x1x4xf32>
    %382 = vector.shape_cast %381 : vector<1x1x4xf32> to vector<1x4xf32>
    %383 = arith.addf %380, %382 : vector<1x4xf32>
    %c0_198 = arith.constant 0 : index
    %c0_199 = arith.constant 0 : index
    %c0_200 = arith.constant 0 : index
    %384 = vector.load %arg21[%c0_198, %c0_199, %c0_200] : memref<1x1x4xf32, #tpu.memory_space<vmem>>, vector<1x1x4xf32>
    %385 = vector.shape_cast %384 : vector<1x1x4xf32> to vector<1x4xf32>
    %386 = vector.shape_cast %383 : vector<1x4xf32> to vector<1x1x4xf32>
    tpu.vector_store %arg21[%c0_198, %c0_199, %c0_200], %386 {strides = array<i32>} : memref<1x1x4xf32, #tpu.memory_space<vmem>>, vector<1x1x4xf32>,
    return
  }
  func.func @transform_0(%arg0: i32) -> (i32, i32, i32) {
    %c0_i32 = arith.constant 0 : i32
    %c0_i32_0 = arith.constant 0 : i32
    %c0_i32_1 = arith.constant 0 : i32
    return %arg0, %c0_i32, %c0_i32_0 : i32, i32, i32
  }
  func.func @transform_1(%arg0: i32) -> (i32, i32, i32) {
    %c0_i32 = arith.constant 0 : i32
    %c0_i32_0 = arith.constant 0 : i32
    %c0_i32_1 = arith.constant 0 : i32
    return %arg0, %c0_i32, %c0_i32_0 : i32, i32, i32
  }
  func.func @transform_2(%arg0: i32) -> (i32, i32) {
    %c0_i32 = arith.constant 0 : i32
    %c0_i32_0 = arith.constant 0 : i32
    %c0_i32_1 = arith.constant 0 : i32
    return %c0_i32, %c0_i32_0 : i32, i32
  }
  func.func @transform_3(%arg0: i32) -> (i32, i32, i32) {
    %c0_i32 = arith.constant 0 : i32
    %c0_i32_0 = arith.constant 0 : i32
    %c0_i32_1 = arith.constant 0 : i32
    %c0_i32_2 = arith.constant 0 : i32
    return %c0_i32, %c0_i32_0, %c0_i32_1 : i32, i32, i32
  }
  func.func @transform_4(%arg0: i32) -> (i32, i32, i32) {
    %c0_i32 = arith.constant 0 : i32
    %c0_i32_0 = arith.constant 0 : i32
    %c0_i32_1 = arith.constant 0 : i32
    %c0_i32_2 = arith.constant 0 : i32
    return %c0_i32, %c0_i32_0, %c0_i32_1 : i32, i32, i32
  }
  func.func @transform_5(%arg0: i32) -> (i32, i32, i32) {
    %c0_i32 = arith.constant 0 : i32
    %c0_i32_0 = arith.constant 0 : i32
    %c0_i32_1 = arith.constant 0 : i32
    %c0_i32_2 = arith.constant 0 : i32
    return %c0_i32, %c0_i32_0, %c0_i32_1 : i32, i32, i32
  }
  func.func @transform_6(%arg0: i32) -> (i32, i32, i32) {
    %c0_i32 = arith.constant 0 : i32
    %c0_i32_0 = arith.constant 0 : i32
    %c0_i32_1 = arith.constant 0 : i32
    %c0_i32_2 = arith.constant 0 : i32
    return %c0_i32, %c0_i32_0, %c0_i32_1 : i32, i32, i32
  }
  func.func @transform_7(%arg0: i32) -> (i32, i32, i32) {
    %c0_i32 = arith.constant 0 : i32
    %c0_i32_0 = arith.constant 0 : i32
    %c0_i32_1 = arith.constant 0 : i32
    %c0_i32_2 = arith.constant 0 : i32
    return %c0_i32, %c0_i32_0, %c0_i32_1 : i32, i32, i32
  }
  func.func @transform_8(%arg0: i32) -> (i32, i32, i32) {
    %c0_i32 = arith.constant 0 : i32
    %c0_i32_0 = arith.constant 0 : i32
    %c0_i32_1 = arith.constant 0 : i32
    %c0_i32_2 = arith.constant 0 : i32
    return %c0_i32, %c0_i32_0, %c0_i32_1 : i32, i32, i32
  }
  func.func @transform_9(%arg0: i32) -> (i32, i32) {
    %c0_i32 = arith.constant 0 : i32
    %c0_i32_0 = arith.constant 0 : i32
    %c0_i32_1 = arith.constant 0 : i32
    return %c0_i32, %c0_i32_0 : i32, i32
  }
  func.func @transform_10(%arg0: i32) -> (i32, i32) {
    %c0_i32 = arith.constant 0 : i32
    %c0_i32_0 = arith.constant 0 : i32
    %c0_i32_1 = arith.constant 0 : i32
    return %c0_i32, %c0_i32_0 : i32, i32
  }
  func.func @transform_11(%arg0: i32) -> (i32, i32) {
    %c0_i32 = arith.constant 0 : i32
    %c0_i32_0 = arith.constant 0 : i32
    %c0_i32_1 = arith.constant 0 : i32
    return %c0_i32, %c0_i32_0 : i32, i32
  }
  func.func @transform_12(%arg0: i32) -> (i32, i32) {
    %c0_i32 = arith.constant 0 : i32
    %c0_i32_0 = arith.constant 0 : i32
    %c0_i32_1 = arith.constant 0 : i32
    return %c0_i32, %c0_i32_0 : i32, i32
  }
  func.func @transform_13(%arg0: i32) -> (i32, i32, i32) {
    %c0_i32 = arith.constant 0 : i32
    %c0_i32_0 = arith.constant 0 : i32
    %c0_i32_1 = arith.constant 0 : i32
    %c0_i32_2 = arith.constant 0 : i32
    return %c0_i32, %c0_i32_0, %c0_i32_1 : i32, i32, i32
  }
  func.func @transform_14(%arg0: i32) -> (i32, i32, i32) {
    %c0_i32 = arith.constant 0 : i32
    %c0_i32_0 = arith.constant 0 : i32
    %c0_i32_1 = arith.constant 0 : i32
    %c0_i32_2 = arith.constant 0 : i32
    return %c0_i32, %c0_i32_0, %c0_i32_1 : i32, i32, i32
  }
  func.func @transform_15(%arg0: i32) -> (i32, i32, i32) {
    %c0_i32 = arith.constant 0 : i32
    %c0_i32_0 = arith.constant 0 : i32
    %c0_i32_1 = arith.constant 0 : i32
    %c0_i32_2 = arith.constant 0 : i32
    return %c0_i32, %c0_i32_0, %c0_i32_1 : i32, i32, i32
  }
  func.func @transform_16(%arg0: i32) -> (i32, i32, i32) {
    %c0_i32 = arith.constant 0 : i32
    %c0_i32_0 = arith.constant 0 : i32
    %c0_i32_1 = arith.constant 0 : i32
    %c0_i32_2 = arith.constant 0 : i32
    return %c0_i32, %c0_i32_0, %c0_i32_1 : i32, i32, i32
  }
  func.func @transform_17(%arg0: i32) -> (i32, i32, i32) {
    %c0_i32 = arith.constant 0 : i32
    %c0_i32_0 = arith.constant 0 : i32
    %c0_i32_1 = arith.constant 0 : i32
    %c0_i32_2 = arith.constant 0 : i32
    return %c0_i32, %c0_i32_0, %c0_i32_1 : i32, i32, i32
  }
  func.func @transform_18(%arg0: i32) -> (i32, i32, i32) {
    %c0_i32 = arith.constant 0 : i32
    %c0_i32_0 = arith.constant 0 : i32
    %c0_i32_1 = arith.constant 0 : i32
    %c0_i32_2 = arith.constant 0 : i32
    return %c0_i32, %c0_i32_0, %c0_i32_1 : i32, i32, i32
  }
  func.func @transform_19(%arg0: i32) -> (i32, i32, i32) {
    %c0_i32 = arith.constant 0 : i32
    %c0_i32_0 = arith.constant 0 : i32
    %c0_i32_1 = arith.constant 0 : i32
    return %arg0, %c0_i32, %c0_i32_0 : i32, i32, i32
  }
  func.func @transform_20(%arg0: i32) -> (i32, i32, i32) {
    %c0_i32 = arith.constant 0 : i32
    %c0_i32_0 = arith.constant 0 : i32
    %c0_i32_1 = arith.constant 0 : i32
    return %arg0, %c0_i32, %c0_i32_0 : i32, i32, i32
  }
  func.func @transform_21(%arg0: i32) -> (i32, i32, i32) {
    %c0_i32 = arith.constant 0 : i32
    %c0_i32_0 = arith.constant 0 : i32
    %c0_i32_1 = arith.constant 0 : i32
    return %arg0, %c0_i32, %c0_i32_0 : i32, i32, i32
  }
}

module attributes {stable_mosaic.version = 11 : i64} {
  func.func @kernel(%arg0: i32, %arg1: memref<1x16x32xf32, #tpu.memory_space<vmem>>, %arg2: memref<32x32xbf16, #tpu.memory_space<vmem>>, %arg3: memref<1x32xf32, #tpu.memory_space<vmem>>, %arg4: memref<1x16x32xf32, #tpu.memory_space<vmem>>) attributes {dimension_semantics = [#tpu.dimension_semantics<parallel>], iteration_bounds = array<i64: 2>, scalar_prefetch = 0 : i64, scratch_operands = 0 : i64, tpu.core_type = #tpu.core_type<tc>, window_params = [{transform_indices = @transform_0, window_bounds = array<i64: 1, 16, 32>}, {pipeline_mode = #tpu.pipeline_mode<synchronous>, transform_indices = @transform_1, window_bounds = array<i64: 32, 32>}, {pipeline_mode = #tpu.pipeline_mode<synchronous>, transform_indices = @transform_2, window_bounds = array<i64: 1, 32>}, {transform_indices = @transform_3, window_bounds = array<i64: 1, 16, 32>}]} {
    %c0 = arith.constant 0 : index
    %c0_0 = arith.constant 0 : index
    %c0_1 = arith.constant 0 : index
    %0 = vector.load %arg1[%c0, %c0_0, %c0_1] : memref<1x16x32xf32, #tpu.memory_space<vmem>>, vector<1x16x32xf32>
    %1 = vector.shape_cast %0 : vector<1x16x32xf32> to vector<16x32xf32>
    %c0_2 = arith.constant 0 : index
    %c0_3 = arith.constant 0 : index
    %2 = vector.load %arg2[%c0_2, %c0_3] : memref<32x32xbf16, #tpu.memory_space<vmem>>, vector<32x32xbf16>
    %3 = arith.truncf %1 : vector<16x32xf32> to vector<16x32xbf16>
    %cst = arith.constant dense<0.000000e+00> : vector<16x32xf32>
    %4 = tpu.matmul %3, %2, %cst {dimension_numbers = #tpu.dot_dimension_numbers<[1], [0], [0], [1], [0, 0, 1, 1], [], []>} : vector<16x32xbf16>, vector<32x32xbf16>, vector<16x32xf32> -> vector<16x32xf32>
    %c0_4 = arith.constant 0 : index
    %c0_5 = arith.constant 0 : index
    %5 = vector.load %arg3[%c0_4, %c0_5] : memref<1x32xf32, #tpu.memory_space<vmem>>, vector<1x32xf32>
    %6 = vector.broadcast %5 : vector<1x32xf32> to vector<16x32xf32>
    %7 = arith.addf %4, %6 : vector<16x32xf32>
    %8 = arith.mulf %7, %7 : vector<16x32xf32>
    %9 = arith.mulf %7, %8 : vector<16x32xf32>
    %cst_6 = arith.constant 4.471500e-02 : f32
    %10 = vector.broadcast %cst_6 : f32 to vector<16x32xf32>
    %11 = arith.mulf %10, %9 : vector<16x32xf32>
    %12 = arith.addf %7, %11 : vector<16x32xf32>
    %cst_7 = arith.constant 0.797884583 : f32
    %13 = vector.broadcast %cst_7 : f32 to vector<16x32xf32>
    %14 = arith.mulf %13, %12 : vector<16x32xf32>
    %15 = math.tanh %14 : vector<16x32xf32>
    %cst_8 = arith.constant 1.000000e+00 : f32
    %16 = vector.broadcast %cst_8 : f32 to vector<16x32xf32>
    %17 = arith.addf %16, %15 : vector<16x32xf32>
    %cst_9 = arith.constant 5.000000e-01 : f32
    %18 = vector.broadcast %cst_9 : f32 to vector<16x32xf32>
    %19 = arith.mulf %18, %17 : vector<16x32xf32>
    %20 = arith.mulf %7, %19 : vector<16x32xf32>
    %c0_10 = arith.constant 0 : index
    %c0_11 = arith.constant 0 : index
    %c0_12 = arith.constant 0 : index
    %21 = vector.load %arg4[%c0_10, %c0_11, %c0_12] : memref<1x16x32xf32, #tpu.memory_space<vmem>>, vector<1x16x32xf32>
    %22 = vector.shape_cast %21 : vector<1x16x32xf32> to vector<16x32xf32>
    %23 = vector.shape_cast %20 : vector<16x32xf32> to vector<1x16x32xf32>
    tpu.vector_store %arg4[%c0_10, %c0_11, %c0_12], %23 {strides = array<i32>} : memref<1x16x32xf32, #tpu.memory_space<vmem>>, vector<1x16x32xf32>,
    return
  }
  func.func @transform_0(%arg0: i32) -> (i32, i32, i32) {
    %c0_i32 = arith.constant 0 : i32
    %c0_i32_0 = arith.constant 0 : i32
    %c0_i32_1 = arith.constant 0 : i32
    return %arg0, %c0_i32, %c0_i32_0 : i32, i32, i32
  }
  func.func @transform_1(%arg0: i32) -> (i32, i32) {
    %c0_i32 = arith.constant 0 : i32
    %c0_i32_0 = arith.constant 0 : i32
    %c0_i32_1 = arith.constant 0 : i32
    return %c0_i32, %c0_i32_0 : i32, i32
  }
  func.func @transform_2(%arg0: i32) -> (i32, i32) {
    %c0_i32 = arith.constant 0 : i32
    %c0_i32_0 = arith.constant 0 : i32
    %c0_i32_1 = arith.constant 0 : i32
    return %c0_i32, %c0_i32_0 : i32, i32
  }
  func.func @transform_3(%arg0: i32) -> (i32, i32, i32) {
    %c0_i32 = arith.constant 0 : i32
    %c0_i32_0 = arith.constant 0 : i32
    %c0_i32_1 = arith.constant 0 : i32
    return %arg0, %c0_i32, %c0_i32_0 : i32, i32, i32
  }
}

module attributes {stable_mosaic.version = 11 : i64} {
  func.func @kernel(%arg0: i32, %arg1: memref<1x64x8xf32, #tpu.memory_space<vmem>>, %arg2: memref<8x16xbf16, #tpu.memory_space<vmem>>, %arg3: memref<1x16xf32, #tpu.memory_space<vmem>>, %arg4: memref<1x64x16xf32, #tpu.memory_space<vmem>>) attributes {dimension_semantics = [#tpu.dimension_semantics<parallel>], iteration_bounds = array<i64: 2>, scalar_prefetch = 0 : i64, scratch_operands = 0 : i64, tpu.core_type = #tpu.core_type<tc>, window_params = [{transform_indices = @transform_0, window_bounds = array<i64: 1, 64, 8>}, {pipeline_mode = #tpu.pipeline_mode<synchronous>, transform_indices = @transform_1, window_bounds = array<i64: 8, 16>}, {pipeline_mode = #tpu.pipeline_mode<synchronous>, transform_indices = @transform_2, window_bounds = array<i64: 1, 16>}, {transform_indices = @transform_3, window_bounds = array<i64: 1, 64, 16>}]} {
    %c0 = arith.constant 0 : index
    %c0_0 = arith.constant 0 : index
    %c0_1 = arith.constant 0 : index
    %0 = vector.load %arg1[%c0, %c0_0, %c0_1] : memref<1x64x8xf32, #tpu.memory_space<vmem>>, vector<1x64x8xf32>
    %1 = vector.shape_cast %0 : vector<1x64x8xf32> to vector<64x8xf32>
    %c0_2 = arith.constant 0 : index
    %c0_3 = arith.constant 0 : index
    %2 = vector.load %arg2[%c0_2, %c0_3] : memref<8x16xbf16, #tpu.memory_space<vmem>>, vector<8x16xbf16>
    %3 = arith.truncf %1 : vector<64x8xf32> to vector<64x8xbf16>
    %cst = arith.constant dense<0.000000e+00> : vector<64x16xf32>
    %4 = tpu.matmul %3, %2, %cst {dimension_numbers = #tpu.dot_dimension_numbers<[1], [0], [0], [1], [0, 0, 1, 1], [], []>} : vector<64x8xbf16>, vector<8x16xbf16>, vector<64x16xf32> -> vector<64x16xf32>
    %c0_4 = arith.constant 0 : index
    %c0_5 = arith.constant 0 : index
    %5 = vector.load %arg3[%c0_4, %c0_5] : memref<1x16xf32, #tpu.memory_space<vmem>>, vector<1x16xf32>
    %6 = vector.broadcast %5 : vector<1x16xf32> to vector<64x16xf32>
    %7 = arith.addf %4, %6 : vector<64x16xf32>
    %8 = arith.mulf %7, %7 : vector<64x16xf32>
    %9 = arith.mulf %7, %8 : vector<64x16xf32>
    %cst_6 = arith.constant 4.471500e-02 : f32
    %10 = vector.broadcast %cst_6 : f32 to vector<64x16xf32>
    %11 = arith.mulf %10, %9 : vector<64x16xf32>
    %12 = arith.addf %7, %11 : vector<64x16xf32>
    %cst_7 = arith.constant 0.797884583 : f32
    %13 = vector.broadcast %cst_7 : f32 to vector<64x16xf32>
    %14 = arith.mulf %13, %12 : vector<64x16xf32>
    %15 = math.tanh %14 : vector<64x16xf32>
    %cst_8 = arith.constant 1.000000e+00 : f32
    %16 = vector.broadcast %cst_8 : f32 to vector<64x16xf32>
    %17 = arith.addf %16, %15 : vector<64x16xf32>
    %cst_9 = arith.constant 5.000000e-01 : f32
    %18 = vector.broadcast %cst_9 : f32 to vector<64x16xf32>
    %19 = arith.mulf %18, %17 : vector<64x16xf32>
    %20 = arith.mulf %7, %19 : vector<64x16xf32>
    %c0_10 = arith.constant 0 : index
    %c0_11 = arith.constant 0 : index
    %c0_12 = arith.constant 0 : index
    %21 = vector.load %arg4[%c0_10, %c0_11, %c0_12] : memref<1x64x16xf32, #tpu.memory_space<vmem>>, vector<1x64x16xf32>
    %22 = vector.shape_cast %21 : vector<1x64x16xf32> to vector<64x16xf32>
    %23 = vector.shape_cast %20 : vector<64x16xf32> to vector<1x64x16xf32>
    tpu.vector_store %arg4[%c0_10, %c0_11, %c0_12], %23 {strides = array<i32>} : memref<1x64x16xf32, #tpu.memory_space<vmem>>, vector<1x64x16xf32>,
    return
  }
  func.func @transform_0(%arg0: i32) -> (i32, i32, i32) {
    %c0_i32 = arith.constant 0 : i32
    %c0_i32_0 = arith.constant 0 : i32
    %c0_i32_1 = arith.constant 0 : i32
    return %arg0, %c0_i32, %c0_i32_0 : i32, i32, i32
  }
  func.func @transform_1(%arg0: i32) -> (i32, i32) {
    %c0_i32 = arith.constant 0 : i32
    %c0_i32_0 = arith.constant 0 : i32
    %c0_i32_1 = arith.constant 0 : i32
    return %c0_i32, %c0_i32_0 : i32, i32
  }
  func.func @transform_2(%arg0: i32) -> (i32, i32) {
    %c0_i32 = arith.constant 0 : i32
    %c0_i32_0 = arith.constant 0 : i32
    %c0_i32_1 = arith.constant 0 : i32
    return %c0_i32, %c0_i32_0 : i32, i32
  }
  func.func @transform_3(%arg0: i32) -> (i32, i32, i32) {
    %c0_i32 = arith.constant 0 : i32
    %c0_i32_0 = arith.constant 0 : i32
    %c0_i32_1 = arith.constant 0 : i32
    return %arg0, %c0_i32, %c0_i32_0 : i32, i32, i32
  }
}

module attributes {stable_mosaic.version = 11 : i64} {
  func.func @_mask_resize_kernel(%arg0: i32, %arg1: memref<1x1x4xf32, #tpu.memory_space<vmem>>, %arg2: memref<1x16x16x4xf32, #tpu.memory_space<vmem>>, %arg3: memref<32x16xf32, #tpu.memory_space<vmem>>, %arg4: memref<16x32xf32, #tpu.memory_space<vmem>>, %arg5: memref<1x32x32xf32, #tpu.memory_space<vmem>>) attributes {dimension_semantics = [#tpu.dimension_semantics<parallel>], iteration_bounds = array<i64: 2>, scalar_prefetch = 0 : i64, scratch_operands = 0 : i64, tpu.core_type = #tpu.core_type<tc>, window_params = [{transform_indices = @transform_0, window_bounds = array<i64: 1, 1, 4>}, {transform_indices = @transform_1, window_bounds = array<i64: 1, 16, 16, 4>}, {pipeline_mode = #tpu.pipeline_mode<synchronous>, transform_indices = @transform_2, window_bounds = array<i64: 32, 16>}, {pipeline_mode = #tpu.pipeline_mode<synchronous>, transform_indices = @transform_3, window_bounds = array<i64: 16, 32>}, {transform_indices = @transform_4, window_bounds = array<i64: 1, 32, 32>}]} {
    %c0 = arith.constant 0 : index
    %c0_0 = arith.constant 0 : index
    %c0_1 = arith.constant 0 : index
    %c0_2 = arith.constant 0 : index
    %0 = vector.load %arg2[%c0, %c0_0, %c0_1, %c0_2] : memref<1x16x16x4xf32, #tpu.memory_space<vmem>>, vector<1x16x16x4xf32>
    %1 = vector.shape_cast %0 : vector<1x16x16x4xf32> to vector<16x16x4xf32>
    %c0_3 = arith.constant 0 : index
    %c0_4 = arith.constant 0 : index
    %c0_5 = arith.constant 0 : index
    %2 = vector.load %arg1[%c0_3, %c0_4, %c0_5] : memref<1x1x4xf32, #tpu.memory_space<vmem>>, vector<1x1x4xf32>
    %3 = vector.broadcast %2 : vector<1x1x4xf32> to vector<16x16x4xf32>
    %4 = arith.mulf %1, %3 : vector<16x16x4xf32>
    %cst = arith.constant dense<0.000000e+00> : vector<16x16xf32>
    %5 = vector.multi_reduction <add>, %4, %cst [2] : vector<16x16x4xf32> to vector<16x16xf32>
    %c0_6 = arith.constant 0 : index
    %c0_7 = arith.constant 0 : index
    %6 = vector.load %arg3[%c0_6, %c0_7] : memref<32x16xf32, #tpu.memory_space<vmem>>, vector<32x16xf32>
    %cst_8 = arith.constant dense<0.000000e+00> : vector<32x16xf32>
    %7 = tpu.matmul %6, %5, %cst_8 {dimension_numbers = #tpu.dot_dimension_numbers<[1], [0], [0], [1], [0, 0, 1, 1], [], []>} : vector<32x16xf32>, vector<16x16xf32>, vector<32x16xf32> -> vector<32x16xf32>
    %c0_9 = arith.constant 0 : index
    %c0_10 = arith.constant 0 : index
    %8 = vector.load %arg4[%c0_9, %c0_10] : memref<16x32xf32, #tpu.memory_space<vmem>>, vector<16x32xf32>
    %cst_11 = arith.constant dense<0.000000e+00> : vector<32x32xf32>
    %9 = tpu.matmul %7, %8, %cst_11 {dimension_numbers = #tpu.dot_dimension_numbers<[1], [0], [0], [1], [0, 0, 1, 1], [], []>} : vector<32x16xf32>, vector<16x32xf32>, vector<32x32xf32> -> vector<32x32xf32>
    %c0_12 = arith.constant 0 : index
    %c0_13 = arith.constant 0 : index
    %c0_14 = arith.constant 0 : index
    %10 = vector.load %arg5[%c0_12, %c0_13, %c0_14] : memref<1x32x32xf32, #tpu.memory_space<vmem>>, vector<1x32x32xf32>
    %11 = vector.shape_cast %10 : vector<1x32x32xf32> to vector<32x32xf32>
    %12 = vector.shape_cast %9 : vector<32x32xf32> to vector<1x32x32xf32>
    tpu.vector_store %arg5[%c0_12, %c0_13, %c0_14], %12 {strides = array<i32>} : memref<1x32x32xf32, #tpu.memory_space<vmem>>, vector<1x32x32xf32>,
    return
  }
  func.func @transform_0(%arg0: i32) -> (i32, i32, i32) {
    %c0_i32 = arith.constant 0 : i32
    %c0_i32_0 = arith.constant 0 : i32
    %c0_i32_1 = arith.constant 0 : i32
    return %arg0, %c0_i32, %c0_i32_0 : i32, i32, i32
  }
  func.func @transform_1(%arg0: i32) -> (i32, i32, i32, i32) {
    %c0_i32 = arith.constant 0 : i32
    %c0_i32_0 = arith.constant 0 : i32
    %c0_i32_1 = arith.constant 0 : i32
    %c0_i32_2 = arith.constant 0 : i32
    return %arg0, %c0_i32, %c0_i32_0, %c0_i32_1 : i32, i32, i32, i32
  }
  func.func @transform_2(%arg0: i32) -> (i32, i32) {
    %c0_i32 = arith.constant 0 : i32
    %c0_i32_0 = arith.constant 0 : i32
    %c0_i32_1 = arith.constant 0 : i32
    return %c0_i32, %c0_i32_0 : i32, i32
  }
  func.func @transform_3(%arg0: i32) -> (i32, i32) {
    %c0_i32 = arith.constant 0 : i32
    %c0_i32_0 = arith.constant 0 : i32
    %c0_i32_1 = arith.constant 0 : i32
    return %c0_i32, %c0_i32_0 : i32, i32
  }
  func.func @transform_4(%arg0: i32) -> (i32, i32, i32) {
    %c0_i32 = arith.constant 0 : i32
    %c0_i32_0 = arith.constant 0 : i32
    %c0_i32_1 = arith.constant 0 : i32
    return %arg0, %c0_i32, %c0_i32_0 : i32, i32, i32
  }
}

</mosaic_0001>

<bundles_post_ra>
// kernel: _medsam_forward.7
= control target key start
LH: loop header
LB: loop body
LE: loop exit
PB: predicated region body
PF: predicated region fallthrough
CT: control target
= control target key end

     0   :  { %s392_s12 = smov 0   ;;  %s428_s0 = inlined_call_operand.vmem [shape: f32[2,16,32], index: 0, kind: input, shape index: {}]   ;;  %s429_s1 = inlined_call_operand.vmem [shape: bf16[32,32], index: 1, kind: input, shape index: {}]   ;;  %s430_s2 = inlined_call_operand.vmem [shape: f32[1,32], index: 2, kind: input, shape index: {}]   ;;  %s431_s3 = inlined_call_operand.vmem [shape: f32[2,16,32], index: 3, kind: output, shape index: {}]  }
   0x1 LB: > { %s318_s13 = sadd.s32 4294967295, %s368_s12   ;;  %p322_p0 = scmp.ge.s32.totalorder %s368_s12, 1  ;;  %s368_s12 = sphi %s392_s12, %s13_s12  }
   0x2   : > { %p137_p1 = scmp.lt.s32.totalorder %s368_s12, 3 }
   0x4   : > { %p138_p2 = pnand %p322_p0, %p137_p1 }
   0x5   : > { %v356_v0 = vld [vmem:[%s429_s1] sm:$0xff] (!%p138_p2)   ;;  %v370_v1 = vmov (!%p138_p2), 0.0   ;;  %v357_v2 = vld [vmem:[%s429_s1 + $0x8] sm:$0xff] (!%p138_p2)   ;;  %vm371_vm0 = vmmov (!%p138_p2), 0   ;;  %p161_p3 = scmp.lt.s32.totalorder (!%p138_p2), %s318_s13, 1  ;;  %vm198_vm1 = vcmask (!%p138_p2), 261120  }
   0x6   : > { %141 = sbr.rel (%p138_p2) target bundleno = 263 (0x107), region = 32  ;;  %338 = vmatprep.subr.bf16.mxu0 (!%p138_p2), %v370_v1  ;;  %342 = vmatprep.mubr.msk.bf16.mxu0 (!%p138_p2), %vm371_vm0, %v370_v1  ;;  %v327_v6 = vld [vmem:[%s430_s2] ss:$0 sm:$0xff] (!%p138_p2) }
   0x7   : > { %339 = vmatpush3.bf16.msra.mxu0 (!%p138_p2), %v356_v0 }
   0x8   : > { %340 = vmatprep.subr.bf16.mxu0 (!%p138_p2), %v370_v1 }
   0xb   : > { %341 = vmatpush3.bf16.msra.mxu0 (!%p138_p2), %v357_v2 }
   0xd   : > { %s433_s13 = smov (!%p161_p3, %s318_s13), 1 }
   0xe   : > { %s333_s18 = sshll.u32 %s433_s13, 4 }
   0xf   : > { %s165_s21 = scalar_lea.vmem %s428_s0, %s333_s18  ;;  %s170_s26 = scalar_lea.vmem %s431_s3, %s333_s18 }
  0x10   : > { %v172_v3 = vld [vmem:[%s165_s21] sm:$0xff]  ;;  %v173_v4 = vld [vmem:[%s165_s21 + $0x8] sm:$0xff] }
  0x11   : > { %v178_v5 = vpack.c.bf16 %v173_v4, %v172_v3 }
  0x13   : > { %343 = vmatmul.mubr.msk.bf16.vlgmr.msra.gmra.mrb[0].mxu0 %vm198_vm1, %v178_v5 }
  0xe6   : > { %v236_v7 = vpop.f32.mrb[0].mxu0 }
  0xe7   : > { %v237_v8 = vadd.f32 %v327_v6, %v236_v7  ;;  %v344_v9 = vpop.f32.mrb[1].mxu0 }
  0xe8   : > { %v239_v10 = vpop.f32.mrb[2].mxu0 }
  0xe9   : > { %v243_v11 = vmul.f32 %v237_v8, %v237_v8  ;;  %v240_v12 = vadd.f32 %v327_v6, %v239_v10  ;;  %v345_v13 = vpop.f32.mrb[3].mxu0 }
  0xeb   : > { %v245_v14 = vmul.f32 %v243_v11, %v237_v8  ;;  %v244_v15 = vmul.f32 %v240_v12, %v240_v12 }
  0xed   : > { %v247_v16 = vmul.f32 0.044715, %v245_v14  ;;  %v246_v17 = vmul.f32 %v244_v15, %v240_v12 }
  0xef   : > { %v249_v18 = vadd.f32 %v247_v16, %v237_v8  ;;  %v248_v19 = vmul.f32 0.044715, %v246_v17 }
  0xf1   : > { %v251_v20 = vmul.f32 0.7978846, %v249_v18  ;;  %v250_v21 = vadd.f32 %v248_v19, %v240_v12 }
  0xf3   : > { %358 = vtanh.f32 %v251_v20  ;;  %v252_v22 = vmul.f32 0.7978846, %v250_v21 }
  0xf5   : > { %360 = vtanh.f32 %v252_v22 }
  0xfd   : > { %v359_v23 = vpop.eup %358 }
  0xfe   : > { %v255_v24 = vadd.f32 1.0, %v359_v23 }
  0xff   : > { %v361_v25 = vpop.eup %360 }
 0x100   : > { %v257_v26 = vmul.f32 0.5, %v255_v24  ;;  %v256_v27 = vadd.f32 1.0, %v361_v25 }
 0x102   : > { %v259_v28 = vmul.f32 %v257_v26, %v237_v8  ;;  %v258_v29 = vmul.f32 0.5, %v256_v27 }
 0x104   : > { %261 = vst.msk [vmem:[%s170_s26] sm:$0xff] %vm198_vm1, %v259_v28  ;;  %v260_v30 = vmul.f32 %v258_v29, %v240_v12 }
 0x106   : > { %262 = vst.msk [vmem:[%s170_s26 + $0x8] sm:$0xff] %vm198_vm1, %v260_v30 }
 0x107 PF: > { %s13_s12 = sadd.s32 1, %s368_s12  }
 0x108   : > { %p10_p4 = scmp.ge.s32.totalorder %s13_s12, 4  }
 0x10a   :  { %12 = sbr.rel (!%p10_p4) target bundleno = 1 (0x1), region = 62 }

// kernel: _medsam_forward.5
= control target key start
LH: loop header
LB: loop body
LE: loop exit
PB: predicated region body
PF: predicated region fallthrough
CT: control target
= control target key end

     0   :  { %s2031_s0 = inlined_call_operand.vmem [shape: f32[2,16,192], index: 0, kind: input, shape index: {}]   ;;  %s2032_s1 = inlined_call_operand.vmem [shape: bf16[192,32], index: 1, kind: input, shape index: {}]   ;;  %s2033_s2 = inlined_call_operand.vmem [shape: f32[1,32], index: 2, kind: input, shape index: {}]   ;;  %s2034_s3 = inlined_call_operand.vmem [shape: f32[1,32], index: 3, kind: input, shape index: {}]   ;;  %s2035_s4 = inlined_call_operand.vmem [shape: f32[1,32], index: 4, kind: input, shape index: {}]   ;;  %s2036_s5 = inlined_call_operand.vmem [shape: bf16[32,96], index: 5, kind: input, shape index: {}]   ;;  %s2037_s6 = inlined_call_operand.vmem [shape: f32[1,96], index: 6, kind: input, shape index: {}]   ;;  %s2038_s7 = inlined_call_operand.vmem [shape: bf16[32,32], index: 7, kind: input, shape index: {}]   ;;  %s2039_s8 = inlined_call_operand.vmem [shape: f32[1,32], index: 8, kind: input, shape index: {}]   ;;  %s2040_s9 = inlined_call_operand.vmem [shape: f32[1,32], index: 9, kind: input, shape index: {}]   ;;  %s2041_s10 = inlined_call_operand.vmem [shape: f32[1,32], index: 10, kind: input, shape index: {}]   ;;  %s2042_s11 = inlined_call_operand.vmem [shape: bf16[32,128], index: 11, kind: input, shape index: {}]   ;;  %s2043_s12 = inlined_call_operand.vmem [shape: f32[1,128], index: 12, kind: input, shape index: {}]   ;;  %s2044_s13 = inlined_call_operand.vmem [shape: bf16[128,32], index: 13, kind: input, shape index: {}]   ;;  %s2045_s14 = inlined_call_operand.vmem [shape: f32[1,32], index: 14, kind: input, shape index: {}]   ;;  %s2046_s15 = inlined_call_operand.vmem [shape: bf16[32,32], index: 15, kind: input, shape index: {}]   ;;  %s2047_s16 = inlined_call_operand.vmem [shape: f32[1,32], index: 16, kind: input, shape index: {}]   ;;  %s2048_s17 = inlined_call_operand.vmem [shape: f32[1,32], index: 17, kind: input, shape index: {}]   ;;  %s2049_s18 = inlined_call_operand.vmem [shape: f32[1,32], index: 18, kind: input, shape index: {}]   ;;  %s2050_s19 = inlined_call_operand.vmem [shape: f32[2,16,32], index: 19, kind: output, shape index: {}]  }
   0x1   :  { %2052 = sst [smem:[#allocation2_spill]] %s2031_s0  ;;  %s1807_s0 = smov 0  }
   0x2   :  { %2053 = sst [smem:[#allocation3_spill]] %s2032_s1 }
   0x3   :  { %2054 = sst [smem:[#allocation4_spill]] %s2033_s2 }
   0x4   :  { %2055 = sst [smem:[#allocation5_spill]] %s2034_s3 }
   0x5 LB: > { %s1480_s30 = sadd.s32 4294967295, %s1700_s0   ;;  %p1484_p0 = scmp.ge.s32.totalorder %s1700_s0, 1  ;;  %s1700_s0 = sphi %s1807_s0, %s29_s0  }
   0x6   : > { %p537_p1 = scmp.lt.s32.totalorder %s1700_s0, 3 }
   0x8   : > { %p538_p2 = pnand %p1484_p0, %p537_p1 }
   0x9   : > { %s2056_s1 = sld [smem:[#allocation3_spill]] (!%p538_p2)  ;;  %v1702_v1 = vmov (!%p538_p2), 0   ;;  %p593_p3 = scmp.lt.s32.totalorder (!%p538_p2), %s1480_s30, 1  ;;  %vm713_vm0 = vcmask (!%p538_p2), 523264   ;;  %vm760_vm1 = vcmask (!%p538_p2), 261120   ;;  %v1654_v38 = vld [vmem:[%s2036_s5] sm:$0xff] (!%p538_p2)  }
   0xa   : > { %541 = sbr.rel (%p538_p2) target bundleno = 3217 (0xc91), region = 96  ;;  %717 = vmatprep.subr.bf16.mxu0 (!%p538_p2), %v1702_v1  ;;  %s2057_s27 = sld [smem:[#allocation2_spill]] (!%p538_p2)  ;;  %v1703_v39 = vmov (!%p538_p2), 0.0   ;;  %v1655_v40 = vld [vmem:[%s2036_s5 + $0x8] sm:$0xff] (!%p538_p2)   ;;  %vm1704_vm2 = vmmov (!%p538_p2), 0   ;;  %vm928_vm3 = vcmask (!%p538_p2), 130048  }
   0xb   : > { %s2058_s26 = sld [smem:[#allocation4_spill]] (!%p538_p2)  ;;  %1573 = vmatprep.subr.bf16.mxu1 (!%p538_p2), %v1703_v39  ;;  %1575 = vmatprep.mubr.msk.bf16.mxu1 (!%p538_p2), %vm1704_vm2, %v1703_v39  ;;  %s2059_s2 = sld [smem:[#allocation5_spill]] (!%p538_p2)  ;;  %v1504_v53 = vld [vmem:[%s2035_s4] ss:$0 sm:$0xff] (!%p538_p2) }
   0xc   : > { %v1505_v58 = vld [vmem:[%s2037_s6] ss:$0 sm:$0xff] (!%p538_p2) }
   0xf   : > { %v1642_v0 = vld [vmem:[%s2056_s1] sm:$0xff] (!%p538_p2)   ;;  %v1643_v2 = vld [vmem:[%s2056_s1 + $0x8] sm:$0xff] (!%p538_p2)   ;;  %v1644_v3 = vld [vmem:[%s2056_s1 + $0x10] sm:$0xff] (!%p538_p2)  }
  0x10   : > { %718 = vmatpush1.bf16.msra.mxu0 (!%p538_p2), %v1642_v0  ;;  %v1645_v4 = vld [vmem:[%s2056_s1 + $0x18] sm:$0xff] (!%p538_p2)   ;;  %v1646_v7 = vld [vmem:[%s2056_s1 + $0x20] sm:$0xff] (!%p538_p2)   ;;  %v1647_v9 = vld [vmem:[%s2056_s1 + $0x28] sm:$0xff] (!%p538_p2)  }
  0x11   : > { %719 = vmatprep.subr.bf16.mxu0 %v1702_v1  ;;  %s2061_s30 = smov (!%p593_p3, %s1480_s30), 1  ;;  %v1648_v10 = vld [vmem:[%s2056_s1 + $0x30] sm:$0xff]   ;;  %v1649_v11 = vld [vmem:[%s2056_s1 + $0x38] sm:$0xff]   ;;  %v1650_v12 = vld [vmem:[%s2056_s1 + $0x40] sm:$0xff]  }
  0x12   : > { %s1538_s25 = sshll.u32 %s2061_s30, 5  ;;  %v1651_v13 = vld [vmem:[%s2056_s1 + $0x48] sm:$0xff]   ;;  %v1652_v14 = vld [vmem:[%s2056_s1 + $0x50] sm:$0xff]   ;;  %v1653_v15 = vld [vmem:[%s2056_s1 + $0x58] sm:$0xff]   ;;  %s1539_s23 = sshll.u32 %s2061_s30, 4 }
  0x13   : > { %s1830_s28 = scalar_lea.vmem %s2057_s27, %s1538_s25  ;;  %v1489_v19 = vld [vmem:[%s2058_s26] ss:$0 sm:$0xff]  ;;  %s1705_s26 = smov 96  }
  0x14   : > { %720 = vmatpush1.bf16.msra.mxu0 %v1643_v2  ;;  %v605_v5 = vld [vmem:[%s1830_s28 + $0x8] sm:$0xff]  ;;  %v607_v6 = vld [vmem:[%s1830_s28 + $0x18] sm:$0xff]  ;;  %v604_v16 = vld [vmem:[%s1830_s28] sm:$0xff] }
  0x15   : > { %721 = vmatprep.subr.bf16.mxu0 %v1702_v1  ;;  %v633_v8 = vpack.c.bf16 %v607_v6, %v605_v5  ;;  %v606_v17 = vld [vmem:[%s1830_s28 + $0x10] sm:$0xff]  ;;  %v1503_v49 = vld [vmem:[%s2059_s2] ss:$0 sm:$0xff]  ;;  %s1706_s28 = smov 64  }
  0x16   : > { %v632_v18 = vpack.c.bf16 %v606_v17, %v604_v16 }
  0x17   : > { %1502 = vmatprep.mubr.msk.bf16.mxu0 %vm713_vm0, %v633_v8 }
  0x18   : > { %722 = vmatpush1.bf16.msra.mxu0 %v1644_v3 }
  0x19   : > { %723 = vmatprep.subr.bf16.mxu0 %v1702_v1 }
  0x1c   : > { %724 = vmatpush1.bf16.msra.mxu0 %v1645_v4 }
  0x1d   : > { %725 = vmatprep.subr.bf16.mxu0 %v1702_v1 }
  0x20   : > { %726 = vmatpush1.bf16.msra.mxu0 %v1646_v7 }
  0x21   : > { %727 = vmatprep.subr.bf16.mxu0 %v1702_v1 }
  0x24   : > { %728 = vmatpush1.bf16.msra.mxu0 %v1647_v9 }
  0x25   : > { %729 = vmatprep.subr.bf16.mxu0 %v1702_v1 }
  0x28   : > { %730 = vmatpush1.bf16.msra.mxu0 %v1648_v10 }
  0x29   : > { %731 = vmatprep.subr.bf16.mxu0 %v1702_v1 }
  0x2c   : > { %732 = vmatpush1.bf16.msra.mxu0 %v1649_v11 }
  0x2d   : > { %733 = vmatprep.subr.bf16.mxu0 %v1702_v1 }
  0x30   : > { %734 = vmatpush1.bf16.msra.mxu0 %v1650_v12 }
  0x31   : > { %735 = vmatprep.subr.bf16.mxu0 %v1702_v1 }
  0x34   : > { %736 = vmatpush1.bf16.msra.mxu0 %v1651_v13 }
  0x35   : > { %737 = vmatprep.subr.bf16.mxu0 %v1702_v1 }
  0x38   : > { %738 = vmatpush1.bf16.msra.mxu0 %v1652_v14 }
  0x39   : > { %739 = vmatprep.subr.bf16.mxu0 %v1702_v1 }
  0x3c   : > { %740 = vmatpush1.bf16.msra.mxu0 %v1653_v15 }
  0x3d   : > { %1565 = vmatprep.subr.bf16.mxu0 %v1703_v39 }
  0x3f   : > { %750 = vmatmul.mubr.bf16.vlgmr.msra.gmra.mrb[0].mxu0 %v632_v18 }
  0x40   : > { %1566 = vmatpush3.bf16.msra.mxu0 %v1654_v38  ;;  %1569 = vmatprep.mubr.msk.bf16.mxu0 %vm1704_vm2, %v1703_v39 }
  0x41   : > { %1567 = vmatprep.subr.bf16.mxu0 %v1703_v39 }
  0x44   : > { %1568 = vmatpush3.bf16.msra.mxu0 %v1655_v40 }
  0x45   : > { %1621 = vmatprep.subr.bf16.mxu0 %v1703_v39 }
 0x112   : > { %v751_v20 = vpop.f32.mrb[0].mxu0 }
 0x113   : > { %v1866_v21 = vadd.f32 %v1489_v19, %v751_v20  ;;  %v753_v22 = vpop.f32.mrb[1].mxu0 }
 0x114   : > { %v754_v23 = vpop.f32.mrb[2].mxu0 }
 0x115   : > { %v1868_v24 = vadd.f32 %v1489_v19, %v754_v23  ;;  %v756_v25 = vpop.f32.mrb[3].mxu0  ;;  %v761_v26 = vsel %vm760_vm1, %v1866_v21, 0.0 }
 0x116   : > { %762 = vadd.xlane.f32.xlu0 %v761_v26 }
 0x117   : > { %v764_v27 = vsel %vm760_vm1, %v1868_v24, 0.0 }
 0x11a   : > { %765 = vadd.xlane.f32.xlu0 %v764_v27 }
 0x1a3   : > { %v763_v28 = vpop.xlane.xlu0 %762 }
 0x1a4   : > { %v768_v29 = vmul.f32 0.03125, %v763_v28 }
 0x1a6   : > { %v770_v30 = vsub.f32 %v1866_v21, %v768_v29  ;;  %v1656_v29 = vld [vmem:[%s2038_s7] sm:$0xff]  }
 0x1a7   : > { %v766_v31 = vpop.xlane.xlu0 %765 }
 0x1a8   : > { %v769_v32 = vmul.f32 0.03125, %v766_v31  ;;  %v772_v33 = vmul.f32 %v770_v30, %v770_v30  ;;  %v1657_v31 = vld [vmem:[%s2038_s7 + $0x8] sm:$0xff]  }
 0x1aa   : > { %v771_v34 = vsub.f32 %v1868_v24, %v769_v32  ;;  %v774_v35 = vsel %vm760_vm1, %v772_v33, 0.0 }
 0x1ab   : > { %775 = vadd.xlane.f32.xlu1 %v774_v35 }
 0x1ac   : > { %v773_v36 = vmul.f32 %v771_v34, %v771_v34 }
 0x1ae   : > { %v777_v37 = vsel %vm760_vm1, %v773_v36, 0.0 }
 0x1af   : > { %778 = vadd.xlane.f32.xlu1 %v777_v37  ;;  %v1511_v37 = vld [vmem:[%s2039_s8] ss:$0 sm:$0xff] }
 0x238   : > { %v776_v41 = vpop.xlane.xlu1 %775 }
 0x239   : > { %v780_v42 = vmul.f32 0.03125, %v776_v41 }
 0x23b   : > { %v782_v43 = vadd.f32 1e-05, %v780_v42 }
 0x23c   : > { %v779_v44 = vpop.xlane.xlu1 %778 }
 0x23d   : > { %1670 = vrsqrt.f32 %v782_v43  ;;  %v781_v45 = vmul.f32 0.03125, %v779_v44 }
 0x23f   : > { %v783_v46 = vadd.f32 1e-05, %v781_v45 }
 0x241   : > { %1672 = vrsqrt.f32 %v783_v46 }
 0x247   : > { %v1671_v47 = vpop.eup %1670 }
 0x248   : > { %v786_v48 = vmul.f32 %v1671_v47, %v770_v30 }
 0x24a   : > { %v794_v51 = vmul.f32 %v1503_v49, %v786_v48 }
 0x24b   : > { %v1673_v50 = vpop.eup %1672 }
 0x24c   : > { %v787_v52 = vmul.f32 %v1673_v50, %v771_v34  ;;  %v802_v55 = vadd.f32 %v1504_v53, %v794_v51 }
 0x24e   : > { %v795_v54 = vmul.f32 %v1503_v49, %v787_v52 }
 0x250   : > { %v803_v56 = vadd.f32 %v1504_v53, %v795_v54 }
 0x252   : > { %v814_v57 = vpack.c.bf16 %v803_v56, %v802_v55 }
 0x254   : > { %1570 = vmatmul.mubr.msk.bf16.vlgmr.msra.gmra.mrb[4].mxu0 %vm760_vm1, %v814_v57  ;;  %v1658_v57 = vld [vmem:[%s2042_s11] sm:$0xff]  }
 0x255   : > { %1625 = vmatprep.mubr.msk.bf16.mxu0 %vm1704_vm2, %v1703_v39 }
 0x327   : > { %v870_v59 = vpop.f32.mrb[4].mxu0 }
 0x328   : > { %v1571_v60 = vpop.f32.mrb[5].mxu0  ;;  %v871_v62 = vadd.f32 %v1505_v58, %v870_v59 }
 0x329   : > { %v873_v61 = vpop.f32.mrb[6].mxu0 }
 0x32a   : > { %v874_v63 = vadd.f32 %v1505_v58, %v873_v61  ;;  %v1572_v0 = vpop.f32.mrb[7].mxu0  ;;  %v1659_v58 = vld [vmem:[%s2042_s11 + $0x8] sm:$0xff]  }
 0x32c   : > { %v877_v1 = vpack.c.bf16 %v874_v63, %v871_v62 }
 0x32e   : > { %879 = vrot.lane.b32.xlu0 %v877_v1, %s1705_s26 }
 0x3a0   : > { %v880_v2 = vpop.permute.xlu0 %879 }
 0x3a1   : > { %v885_v3 = vsel %vm760_vm1, %v880_v2, 0 }
 0x3a2   : > { %1574 = vmatpush3.bf16.xpose.msra.mxu1 %v885_v3  ;;  %v1515_v3 = vld [vmem:[%s2040_s9] ss:$0 sm:$0xff] }
 0x3a3   : > { %1579 = vmatprep.subr.bf16.mxu1 %v1703_v39 }
 0x3a9   : > { %1576 = vmatmul.mubr.msk.bf16.vlgmr.msra.gmra.mrb[0].mxu1 %vm760_vm1, %v877_v1 }
 0x3aa   : > { %1581 = vmatprep.mubr.msk.bf16.mxu1 %vm1704_vm2, %v1703_v39 }
 0x47c   : > { %v921_v4 = vpop.f32.mrb[0].mxu1 }
 0x47d   : > { %v1577_v5 = vpop.f32.mrb[1].mxu1  ;;  %v929_v6 = vsel %vm928_vm3, %v921_v4, -inf }
 0x47e   : > { %930 = vmax.xlane.f32.xlu1 %v929_v6  ;;  %v924_v7 = vpop.f32.mrb[2].mxu1 }
 0x47f   : > { %v1578_v8 = vpop.f32.mrb[3].mxu1  ;;  %v932_v9 = vsel %vm928_vm3, %v924_v7, -inf }
 0x482   : > { %933 = vmax.xlane.f32.xlu1 %v932_v9 }
 0x50b   : > { %v931_v10 = vpop.xlane.xlu1 %930 }
 0x50c   : > { %v935_v11 = vsub.f32 %v921_v4, %v931_v10 }
 0x50e   : > { %v937_v12 = vmul.f32 1.442695, %v935_v11 }
 0x50f   : > { %v934_v13 = vpop.xlane.xlu1 %933 }
 0x510   : > { %1674 = vpow2.f32 %v937_v12  ;;  %v936_v14 = vsub.f32 %v924_v7, %v934_v13  ;;  %v1516_v7 = vld [vmem:[%s2041_s10] ss:$0 sm:$0xff]  ;;  %v1661_v13 = vld [vmem:[%s2044_s13 + $0x8] sm:$0xff]  }
 0x511   : > { %v1660_v12 = vld [vmem:[%s2044_s13] sm:$0xff]  }
 0x512   : > { %v939_v15 = vmul.f32 1.442695, %v936_v14  ;;  %v1662_v14 = vld [vmem:[%s2044_s13 + $0x10] sm:$0xff]  }
 0x514   : > { %1676 = vpow2.f32 %v939_v15  ;;  %v1663_v15 = vld [vmem:[%s2044_s13 + $0x18] sm:$0xff]  }
 0x51a   : > { %v1675_v16 = vpop.eup %1674 }
 0x51b   : > { %v941_v17 = vsel %vm928_vm3, %v1675_v16, 0.0 }
 0x51c   : > { %942 = vadd.xlane.f32.xlu1 %v941_v17  ;;  %v1665_v17 = vld [vmem:[%s2044_s13 + $0x28] sm:$0xff]  }
 0x51e   : > { %v1677_v18 = vpop.eup %1676 }
 0x51f   : > { %v944_v19 = vsel %vm928_vm3, %v1677_v18, 0.0 }
 0x520   : > { %945 = vadd.xlane.f32.xlu1 %v944_v19  ;;  %v1667_v19 = vld [vmem:[%s2044_s13 + $0x38] sm:$0xff]  }
 0x531   : > { %952 = vrot.lane.b32.xlu1 %v877_v1, %s1706_s28  ;;  %s602_s28 = scalar_lea.vmem %s2050_s19, %s1539_s23 }
 0x5a9   : > { %v943_v20 = vpop.xlane.xlu1 %942 }
 0x5aa   : > { %1678 = vrcp.f32 %v943_v20  ;;  %v1517_v20 = vld [vmem:[%s2043_s12] ss:$0 sm:$0xff] }
 0x5ad   : > { %v946_v22 = vpop.xlane.xlu1 %945 }
 0x5ae   : > { %1680 = vrcp.f32 %v946_v22 }
 0x5b1   : > { %v953_v23 = vpop.permute.xlu1 %952 }
 0x5b2   : > { %1580 = vmatpush3.bf16.msra.mxu1 %v953_v23 }
 0x5b3   : > { %1585 = vmatprep.subr.bf16.mxu1 %v1703_v39 }
 0x5b4   : > { %v1679_v25 = vpop.eup %1678 }
 0x5b5   : > { %v948_v27 = vmul.f32 %v1679_v25, %v1675_v16  ;;  %v1664_v16 = vld [vmem:[%s2044_s13 + $0x20] sm:$0xff]  }
 0x5b8   : > { %v1681_v26 = vpop.eup %1680 }
 0x5b9   : > { %v950_v28 = vmul.f32 %v1681_v26, %v1677_v18  ;;  %v1666_v18 = vld [vmem:[%s2044_s13 + $0x30] sm:$0xff]  }
 0x5bb   : > { %v951_v30 = vpack.c.bf16 %v950_v28, %v948_v27 }
 0x5bd   : > { %1582 = vmatmul.mubr.msk.bf16.vlgmr.msra.gmra.mrb[4].mxu1 %vm928_vm3, %v951_v30 }
 0x5be   : > { %1586 = vmatpush3.bf16.msra.mxu1 %v1656_v29  ;;  %1589 = vmatprep.mubr.msk.bf16.mxu1 %vm1704_vm2, %v1703_v39 }
 0x5bf   : > { %1587 = vmatprep.subr.bf16.mxu1 %v1703_v39 }
 0x5c2   : > { %1588 = vmatpush3.bf16.msra.mxu1 %v1657_v31 }
 0x5c3   : > { %1593 = vmatprep.subr.bf16.mxu1 %v1703_v39 }
 0x690   : > { %v992_v32 = vpop.f32.mrb[4].mxu1 }
 0x691   : > { %v1583_v33 = vpop.f32.mrb[5].mxu1 }
 0x692   : > { %v995_v34 = vpop.f32.mrb[6].mxu1 }
 0x693   : > { %v999_v35 = vpack.c.bf16 %v995_v34, %v992_v32  ;;  %v1584_v36 = vpop.f32.mrb[7].mxu1 }
 0x695   : > { %1590 = vmatmul.mubr.msk.bf16.vlgmr.msra.gmra.mrb[8].mxu1 %vm760_vm1, %v999_v35 }
 0x696   : > { %1597 = vmatprep.mubr.msk.bf16.mxu1 %vm1704_vm2, %v1703_v39  ;;  %1594 = vmatpush3.bf16.msra.mxu1 %v1658_v57 }
 0x697   : > { %1595 = vmatprep.subr.bf16.mxu1 %v1703_v39 }
 0x69a   : > { %1596 = vmatpush3.bf16.msra.mxu1 %v1659_v58 }
 0x69b   : > { %1601 = vmatprep.subr.bf16.mxu1 %v1703_v39 }
 0x768   : > { %v1055_v38 = vpop.f32.mrb[8].mxu1 }
 0x769   : > { %v1056_v40 = vadd.f32 %v1511_v37, %v1055_v38  ;;  %v1591_v41 = vpop.f32.mrb[9].mxu1 }
 0x76a   : > { %v1058_v42 = vpop.f32.mrb[10].mxu1 }
 0x76b   : > { %v1932_v43 = vadd.f32 %v1056_v40, %v1866_v21  ;;  %v1059_v44 = vadd.f32 %v1511_v37, %v1058_v42  ;;  %v1592_v45 = vpop.f32.mrb[11].mxu1 }
 0x76d   : > { %v1935_v46 = vadd.f32 %v1059_v44, %v1868_v24  ;;  %v1066_v47 = vsel %vm760_vm1, %v1932_v43, 0.0 }
 0x76e   : > { %1067 = vadd.xlane.f32.xlu0 %v1066_v47 }
 0x76f   : > { %v1069_v48 = vsel %vm760_vm1, %v1935_v46, 0.0 }
 0x770   : > { %1070 = vadd.xlane.f32.xlu1 %v1069_v48 }
 0x7fb   : > { %v1068_v49 = vpop.xlane.xlu0 %1067 }
 0x7fc   : > { %v1072_v50 = vmul.f32 0.03125, %v1068_v49 }
 0x7fd   : > { %v1071_v51 = vpop.xlane.xlu1 %1070 }
 0x7fe   : > { %v1074_v52 = vsub.f32 %v1932_v43, %v1072_v50  ;;  %v1073_v21 = vmul.f32 0.03125, %v1071_v51  ;;  %v1668_v51 = vld [vmem:[%s2046_s15] sm:$0xff]  }
 0x7ff   : > { %1622 = vmatpush3.bf16.msra.mxu0 %v1668_v51 }
 0x800   : > { %v1075_v53 = vsub.f32 %v1935_v46, %v1073_v21  ;;  %v1076_v54 = vmul.f32 %v1074_v52, %v1074_v52  ;;  %1623 = vmatprep.subr.bf16.mxu0 %v1703_v39 }
 0x802   : > { %v1078_v24 = vsel %vm760_vm1, %v1076_v54, 0.0  ;;  %v1077_v55 = vmul.f32 %v1075_v53, %v1075_v53 }
 0x803   : > { %1079 = vadd.xlane.f32.xlu0 %v1078_v24  ;;  %v1529_v24 = vld [vmem:[%s2045_s14] ss:$0 sm:$0xff] }
 0x804   : > { %v1081_v56 = vsel %vm760_vm1, %v1077_v55, 0.0 }
 0x807   : > { %1082 = vadd.xlane.f32.xlu0 %v1081_v56 }
 0x890   : > { %v1080_v59 = vpop.xlane.xlu0 %1079 }
 0x891   : > { %v1084_v60 = vmul.f32 0.03125, %v1080_v59 }
 0x893   : > { %v1086_v61 = vadd.f32 1e-05, %v1084_v60  ;;  %v1530_v60 = vld [vmem:[%s2047_s16] ss:$0 sm:$0xff] }
 0x894   : > { %v1083_v62 = vpop.xlane.xlu0 %1082 }
 0x895   : > { %1682 = vrsqrt.f32 %v1086_v61  ;;  %v1085_v63 = vmul.f32 0.03125, %v1083_v62 }
 0x897   : > { %v1087_v0 = vadd.f32 1e-05, %v1085_v63 }
 0x899   : > { %1684 = vrsqrt.f32 %v1087_v0 }
 0x89f   : > { %v1683_v1 = vpop.eup %1682 }
 0x8a0   : > { %v1090_v2 = vmul.f32 %v1683_v1, %v1074_v52  ;;  %v1669_v52 = vld [vmem:[%s2046_s15 + $0x8] sm:$0xff]  }
 0x8a1   : > { %1624 = vmatpush3.bf16.msra.mxu0 %v1669_v52 }
 0x8a2   : > { %v1098_v5 = vmul.f32 %v1515_v3, %v1090_v2 }
 0x8a3   : > { %v1685_v4 = vpop.eup %1684 }
 0x8a4   : > { %v1091_v6 = vmul.f32 %v1685_v4, %v1075_v53  ;;  %v1106_v9 = vadd.f32 %v1516_v7, %v1098_v5 }
 0x8a6   : > { %v1099_v8 = vmul.f32 %v1515_v3, %v1091_v6 }
 0x8a8   : > { %v1107_v10 = vadd.f32 %v1516_v7, %v1099_v8 }
 0x8aa   : > { %v1112_v11 = vpack.c.bf16 %v1107_v10, %v1106_v9 }
 0x8ac   : > { %1598 = vmatmul.mubr.msk.bf16.vlgmr.msra.gmra.mrb[12].mxu1 %vm760_vm1, %v1112_v11 }
 0x8ad   : > { %1617 = vmatprep.mubr.msk.bf16.mxu1 %vm1704_vm2, %v1703_v39  ;;  %1602 = vmatpush3.bf16.msra.mxu1 %v1660_v12 }
 0x8ae   : > { %1603 = vmatprep.subr.bf16.mxu1 %v1703_v39 }
 0x8b1   : > { %1604 = vmatpush3.bf16.msra.mxu1 %v1661_v13 }
 0x8b2   : > { %1605 = vmatprep.subr.bf16.mxu1 %v1703_v39 }
 0x8b5   : > { %1606 = vmatpush3.bf16.msra.mxu1 %v1662_v14 }
 0x8b6   : > { %1607 = vmatprep.subr.bf16.mxu1 %v1703_v39 }
 0x8b9   : > { %1608 = vmatpush3.bf16.msra.mxu1 %v1663_v15 }
 0x8ba   : > { %1609 = vmatprep.subr.bf16.mxu1 %v1703_v39 }
 0x8bd   : > { %1610 = vmatpush3.bf16.msra.mxu1 %v1664_v16 }
 0x8be   : > { %1611 = vmatprep.subr.bf16.mxu1 %v1703_v39 }
 0x8c1   : > { %1612 = vmatpush3.bf16.msra.mxu1 %v1665_v17 }
 0x8c2   : > { %1613 = vmatprep.subr.bf16.mxu1 %v1703_v39 }
 0x8c5   : > { %1614 = vmatpush3.bf16.msra.mxu1 %v1666_v18 }
 0x8c6   : > { %1615 = vmatprep.subr.bf16.mxu1 %v1703_v39 }
 0x8c9   : > { %1616 = vmatpush3.bf16.msra.mxu1 %v1667_v19 }
 0x97f   : > { %v1169_v22 = vpop.f32.mrb[12].mxu1 }
 0x980   : > { %v1170_v23 = vadd.f32 %v1517_v20, %v1169_v22  ;;  %v1599_v25 = vpop.f32.mrb[13].mxu1 }
 0x981   : > { %v1172_v26 = vpop.f32.mrb[14].mxu1 }
 0x982   : > { %v1176_v27 = vmul.f32 %v1170_v23, %v1170_v23  ;;  %v1173_v28 = vadd.f32 %v1517_v20, %v1172_v26  ;;  %v1600_v29 = vpop.f32.mrb[15].mxu1  ;;  %v1534_v20 = vld [vmem:[%s2048_s17] ss:$0 sm:$0xff] }
 0x984   : > { %v1178_v30 = vmul.f32 %v1176_v27, %v1170_v23  ;;  %v1177_v31 = vmul.f32 %v1173_v28, %v1173_v28 }
 0x986   : > { %v1180_v32 = vmul.f32 0.044715, %v1178_v30  ;;  %v1179_v33 = vmul.f32 %v1177_v31, %v1173_v28 }
 0x988   : > { %v1182_v34 = vadd.f32 %v1180_v32, %v1170_v23  ;;  %v1181_v35 = vmul.f32 0.044715, %v1179_v33 }
 0x98a   : > { %v1184_v36 = vmul.f32 0.7978846, %v1182_v34  ;;  %v1183_v37 = vadd.f32 %v1181_v35, %v1173_v28 }
 0x98c   : > { %1686 = vtanh.f32 %v1184_v36  ;;  %v1185_v38 = vmul.f32 0.7978846, %v1183_v37 }
 0x98e   : > { %1688 = vtanh.f32 %v1185_v38 }
 0x996   : > { %v1687_v40 = vpop.eup %1686 }
 0x997   : > { %v1188_v41 = vadd.f32 1.0, %v1687_v40 }
 0x998   : > { %v1689_v42 = vpop.eup %1688 }
 0x999   : > { %v1190_v44 = vmul.f32 0.5, %v1188_v41  ;;  %v1189_v45 = vadd.f32 1.0, %v1689_v42 }
 0x99b   : > { %v1191_v47 = vmul.f32 0.5, %v1189_v45  ;;  %v1192_v48 = vmul.f32 %v1190_v44, %v1170_v23  ;;  %v1535_v23 = vld [vmem:[%s2049_s18] ss:$0 sm:$0xff] }
 0x99d   : > { %v1193_v49 = vmul.f32 %v1191_v47, %v1173_v28 }
 0x99f   : > { %v1210_v50 = vpack.c.bf16 %v1193_v49, %v1192_v48 }
 0x9a1   : > { %1618 = vmatmul.mubr.bf16.vlgmr.msra.gmra.mrb[16].mxu1 %v1210_v50 }
 0xa74   : > { %v1293_v21 = vpop.f32.mrb[16].mxu1 }
 0xa75   : > { %v1300_v53 = vadd.f32 %v1293_v21, %v1932_v43  ;;  %v1619_v54 = vpop.f32.mrb[17].mxu1 }
 0xa76   : > { %v1296_v55 = vpop.f32.mrb[18].mxu1 }
 0xa77   : > { %v1301_v56 = vadd.f32 %v1296_v55, %v1935_v46  ;;  %v1620_v57 = vpop.f32.mrb[19].mxu1  ;;  %v1309_v58 = vadd.f32 %v1529_v24, %v1300_v53 }
 0xa79   : > { %v1310_v59 = vadd.f32 %v1529_v24, %v1301_v56 }
 0xa7b   : > { %v1315_v39 = vpack.c.bf16 %v1310_v59, %v1309_v58 }
 0xa7d   : > { %1626 = vmatmul.mubr.msk.bf16.vlgmr.msra.gmra.mrb[8].mxu0 %vm760_vm1, %v1315_v39 }
 0xb50   : > { %v1372_v61 = vpop.f32.mrb[8].mxu0 }
 0xb51   : > { %v1373_v43 = vadd.f32 %v1530_v60, %v1372_v61  ;;  %v1627_v62 = vpop.f32.mrb[9].mxu0 }
 0xb52   : > { %v1375_v63 = vpop.f32.mrb[10].mxu0 }
 0xb53   : > { %v1376_v0 = vadd.f32 %v1530_v60, %v1375_v63  ;;  %v1628_v1 = vpop.f32.mrb[11].mxu0  ;;  %v1381_v2 = vsel %vm760_vm1, %v1373_v43, 0.0 }
 0xb54   : > { %1382 = vadd.xlane.f32.xlu0 %v1381_v2 }
 0xb55   : > { %v1384_v46 = vsel %vm760_vm1, %v1376_v0, 0.0 }
 0xb58   : > { %1385 = vadd.xlane.f32.xlu0 %v1384_v46 }
 0xbe1   : > { %v1383_v3 = vpop.xlane.xlu0 %1382 }
 0xbe2   : > { %v1387_v4 = vmul.f32 0.03125, %v1383_v3 }
 0xbe4   : > { %v1389_v5 = vsub.f32 %v1373_v43, %v1387_v4 }
 0xbe5   : > { %v1386_v6 = vpop.xlane.xlu0 %1385 }
 0xbe6   : > { %v1388_v7 = vmul.f32 0.03125, %v1386_v6  ;;  %v1391_v8 = vmul.f32 %v1389_v5, %v1389_v5 }
 0xbe8   : > { %v1390_v9 = vsub.f32 %v1376_v0, %v1388_v7  ;;  %v1393_v10 = vsel %vm760_vm1, %v1391_v8, 0.0 }
 0xbe9   : > { %1394 = vadd.xlane.f32.xlu0 %v1393_v10 }
 0xbea   : > { %v1392_v11 = vmul.f32 %v1390_v9, %v1390_v9 }
 0xbec   : > { %v1396_v12 = vsel %vm760_vm1, %v1392_v11, 0.0 }
 0xbed   : > { %1397 = vadd.xlane.f32.xlu1 %v1396_v12 }
 0xc76   : > { %v1395_v13 = vpop.xlane.xlu0 %1394 }
 0xc77   : > { %v1399_v14 = vmul.f32 0.03125, %v1395_v13 }
 0xc79   : > { %v1401_v15 = vadd.f32 1e-05, %v1399_v14 }
 0xc7a   : > { %v1398_v16 = vpop.xlane.xlu1 %1397 }
 0xc7b   : > { %1690 = vrsqrt.f32 %v1401_v15  ;;  %v1400_v17 = vmul.f32 0.03125, %v1398_v16 }
 0xc7d   : > { %v1402_v18 = vadd.f32 1e-05, %v1400_v17 }
 0xc7f   : > { %1692 = vrsqrt.f32 %v1402_v18 }
 0xc85   : > { %v1691_v19 = vpop.eup %1690 }
 0xc86   : > { %v1405_v22 = vmul.f32 %v1691_v19, %v1389_v5 }
 0xc88   : > { %v1413_v25 = vmul.f32 %v1534_v20, %v1405_v22 }
 0xc89   : > { %v1693_v26 = vpop.eup %1692 }
 0xc8a   : > { %v1421_v27 = vadd.f32 %v1535_v23, %v1413_v25  ;;  %v1406_v28 = vmul.f32 %v1693_v26, %v1390_v9 }
 0xc8c   : > { %1423 = vst.msk [vmem:[%s602_s28] sm:$0xff] %vm760_vm1, %v1421_v27  ;;  %v1414_v29 = vmul.f32 %v1534_v20, %v1406_v28 }
 0xc8e   : > { %v1422_v30 = vadd.f32 %v1535_v23, %v1414_v29 }
 0xc90   : > { %1424 = vst.msk [vmem:[%s602_s28 + $0x8] sm:$0xff] %vm760_vm1, %v1422_v30 }
 0xc91 PF: > { %s29_s0 = sadd.s32 1, %s1700_s0  }
 0xc92   : > { %p26_p4 = scmp.ge.s32.totalorder %s29_s0, 4  }
 0xc94   :  { %28 = sbr.rel (!%p26_p4) target bundleno = 5 (0x5), region = 126 }

// kernel: _medsam_forward.6
= control target key start
LH: loop header
LB: loop body
LE: loop exit
PB: predicated region body
PF: predicated region fallthrough
CT: control target
= control target key end

     0   :  { %s4164_s0 = inlined_call_operand.vmem [shape: f32[2,7,32], index: 0, kind: input, shape index: {}]   ;;  %s4165_s1 = inlined_call_operand.vmem [shape: f32[2,16,32], index: 1, kind: input, shape index: {}]   ;;  %s4166_s2 = inlined_call_operand.vmem [shape: f32[16,32], index: 2, kind: input, shape index: {}]   ;;  %s4167_s3 = inlined_call_operand.vmem [shape: bf16[4,32,96], index: 3, kind: input, shape index: {}]   ;;  %s4168_s4 = inlined_call_operand.vmem [shape: f32[4,1,96], index: 4, kind: input, shape index: {}]   ;;  %s4169_s5 = inlined_call_operand.vmem [shape: bf16[4,32,32], index: 5, kind: input, shape index: {}]   ;;  %s4170_s6 = inlined_call_operand.vmem [shape: f32[4,1,32], index: 6, kind: input, shape index: {}]   ;;  %s4171_s7 = inlined_call_operand.vmem [shape: f32[5,1,32], index: 7, kind: input, shape index: {}]   ;;  %s4172_s8 = inlined_call_operand.vmem [shape: f32[5,1,32], index: 8, kind: input, shape index: {}]   ;;  %s4173_s9 = inlined_call_operand.vmem [shape: bf16[32,64], index: 9, kind: input, shape index: {}]   ;;  %s4174_s10 = inlined_call_operand.vmem [shape: f32[1,64], index: 10, kind: input, shape index: {}]   ;;  %s4175_s11 = inlined_call_operand.vmem [shape: bf16[64,32], index: 11, kind: input, shape index: {}]   ;;  %s4176_s12 = inlined_call_operand.vmem [shape: f32[1,32], index: 12, kind: input, shape index: {}]   ;;  %s4177_s13 = inlined_call_operand.vmem [shape: bf16[2,32,32], index: 13, kind: input, shape index: {}]   ;;  %s4178_s14 = inlined_call_operand.vmem [shape: f32[2,1,32], index: 14, kind: input, shape index: {}]   ;;  %s4179_s15 = inlined_call_operand.vmem [shape: bf16[2,32,32], index: 15, kind: input, shape index: {}]   ;;  %s4180_s16 = inlined_call_operand.vmem [shape: f32[2,1,32], index: 16, kind: input, shape index: {}]   ;;  %s4181_s17 = inlined_call_operand.vmem [shape: bf16[2,32,4], index: 17, kind: input, shape index: {}]   ;;  %s4182_s18 = inlined_call_operand.vmem [shape: f32[2,1,4], index: 18, kind: input, shape index: {}]   ;;  %s4183_s19 = inlined_call_operand.vmem [shape: f32[2,16,32], index: 19, kind: output, shape index: {0}]   ;;  %s4184_s20 = inlined_call_operand.vmem [shape: f32[2,1,4], index: 20, kind: output, shape index: {1}]   ;;  %s4185_s21 = inlined_call_operand.hbm [shape: f32[2,1,4], index: 21, kind: output, shape index: {2}]  }
   0x1   :  { %4202 = sst [smem:[#allocation12_spill]] %s4164_s0 }
   0x2   :  { %4203 = sst [smem:[#allocation13_spill]] %s4165_s1 }
   0x3   :  { %4204 = sst [smem:[#allocation14_spill]] %s4166_s2 }
   0x4   :  { %4205 = sst [smem:[#allocation15_spill]] %s4167_s3 }
   0x5   :  { %4206 = sst [smem:[#allocation16_spill]] %s4168_s4 }
   0x6   :  { %4207 = sst [smem:[#allocation17_spill]] %s4169_s5 }
   0x7   :  { %4208 = sst [smem:[#allocation18_spill]] %s4170_s6 }
   0x8   :  { %4209 = sst [smem:[#allocation19_spill]] %s4171_s7 }
   0x9   :  { %4210 = sst [smem:[#allocation20_spill]] %s4172_s8 }
   0xa   :  { %4211 = sst [smem:[#allocation21_spill]] %s4173_s9 }
   0xb   :  { %4212 = sst [smem:[#allocation22_spill]] %s4184_s20 }
   0xc   :  { %4213 = sst [smem:[#allocation23_spill]] %s4185_s21 }
   0xd   :  { %27 = vsyncpa [#allocation3], 0 }
   0xe   :  { %29 = vsyncpa [#allocation3 + $0x1], 0  ;;  %s3610_s2 = smov 0   ;;  %s3612_s25 = smov 0  }
   0xf   :  { %s3614_s26 = smov 0   ;;  %s3616_s27 = smov 0  }
  0x10 LB: > { %4214 = sst [smem:[#allocation5_spill]] %s3480_s2  ;;  %s3631_s3 = sadd.s32 4294967295, %s3492_s27   ;;  %s3492_s27 = sphi %s3616_s27, %s4241_s27   ;;  %s3488_s26 = sphi %s3614_s26, %s4243_s26   ;;  %s3484_s25 = sphi %s3612_s25, %s4245_s25   ;;  %s3480_s2 = sphi %s3610_s2, %s4244_s2  }
  0x11   : > { %4215 = sst [smem:[#allocation6_spill]] %s3488_s26  ;;  %s2857_s28 = sadd.s32 4294967294, %s3492_s27  }
  0x12   : > { %4216 = sst [smem:[#allocation7_spill]] %s3492_s27  ;;  %s3635_s29 = sadd.s32 1, %s3492_s27  }
  0x13   : > { %4217 = sst [smem:[#allocation8_spill]] %s3635_s29  ;;  %s503_s0 = sadd.s32 1, %s3488_s26 }
  0x14   : > { %s500_s4 = ssub.s32 %s3492_s27, %s3635_s29  ;;  %p513_p0 = scmp.ne.s32.totalorder %s3488_s26, %s3484_s25 }
  0x15   : > { %p501_p1 = scmp.eq.s32.totalorder %s500_s4, 0  ;;  %p514_p2 = scmp.eq.s32.totalorder %s3631_s3, 1 }
  0x16   : > { %p519_p3 = scmp.ne.s32.totalorder %s3484_s25, %s3480_s2  ;;  %p520_p4 = scmp.eq.s32.totalorder %s2857_s28, 1 }
  0x17   : > { %s3646_s30 = scalar_select %p501_p1, %s3488_s26, %s503_s0  }
  0x18   : > { %p3648_p5 = por %p514_p2, %p513_p0  ;;  %p3652_p6 = por %p520_p4, %p519_p3 }
  0x19   : > { %4218 = sst [smem:[#allocation9_spill]] %s3646_s30  ;;  %p2860_p7 = scmp.ge.s32.totalorder %s3492_s27, 1 }
  0x1a   : > { %s4219_s5 = scalar_select %p3648_p5, 1, 0 }
  0x1b   : > { %s4221_s22 = scalar_select %p3652_p6, 1, 0 }
  0x1c   : > { %4220 = sst [smem:[#allocation10_spill]] %s4219_s5  ;;  %p604_p8 = scmp.lt.s32.totalorder %s3492_s27, 3 }
  0x1d   : > { %4222 = sst [smem:[#allocation11_spill]] %s4221_s22 }
  0x1e   : > { %p605_p9 = pnand %p2860_p7, %p604_p8 }
  0x1f   : > { %s4223_s24 = sld [smem:[#allocation15_spill]] (!%p605_p9)  ;;  %v3494_v1 = vmov (!%p605_p9), 0.0   ;;  %vm3495_vm0 = vmmov (!%p605_p9), 0   ;;  %p675_p10 = scmp.lt.s32.totalorder (!%p605_p9), %s3631_s3, 1  ;;  %vm727_vm1 = vcmask (!%p605_p9), 261120   ;;  %vm821_vm2 = vcmask (!%p605_p9), 55296  }
  0x20   : > { %608 = sbr.rel (%p605_p9) target bundleno = 7781 (0x1e65), region = 96  ;;  %3092 = vmatprep.subr.bf16.mxu0 (!%p605_p9), %v3494_v1  ;;  %3100 = vmatprep.subr.bf16.mxu1 (!%p605_p9), %v3494_v1  ;;  %s4224_s28 = sld [smem:[#allocation12_spill]] (!%p605_p9)  ;;  %vm840_vm3 = vcmask (!%p605_p9), 1042432   ;;  %vm841_vm4 = vcmask (!%p605_p9), 1043456   ;;  %v3498_v25 = vmov (!%p605_p9), 65535   ;;  %vm836_vm5 = vcmask (!%p605_p9), 56320  }
  0x21   : > { %3096 = vmatprep.mubr.msk.bf16.mxu0 (!%p605_p9), %vm3495_vm0, %v3494_v1  ;;  %3102 = vmatprep.mubr.msk.bf16.mxu1 (!%p605_p9), %vm3495_vm0, %v3494_v1  ;;  %s4225_s22 = sld [smem:[#allocation16_spill]] (!%p605_p9)  ;;  %s4197_s30 = smov (!%p605_p9), 96   ;;  %v842_v26 = vsel (!%p605_p9), %vm840_vm3, 4294967295, %v3498_v25  ;;  %vm952_vm6 = vcmask (!%p605_p9), 260096   ;;  %vm1215_vm7 = vcmask (!%p605_p9), 129024   ;;  %vm1229_vm8 = vcmask (!%p605_p9), 130048  }
  0x22   : > { %s3497_s26 = smov (!%p605_p9), 64   ;;  %s4226_s1 = sld [smem:[#allocation17_spill]] (!%p605_p9)  ;;  %v3701_v28 = vsel (!%p605_p9), %vm841_vm4, %v842_v26, 0  ;;  %vm1475_vm9 = vcmask (!%p605_p9), 523264   ;;  %vm2524_vm10 = vcmask (!%p605_p9), 24576  }
  0x23   : > { %s4227_s6 = sld [smem:[#allocation18_spill]] (!%p605_p9)  ;;  %s4228_s27 = sld [smem:[#allocation13_spill]] (!%p605_p9) }
  0x24   : > { %s4229_s21 = sld [smem:[#allocation14_spill]] (!%p605_p9)  ;;  %s4230_s7 = sld [smem:[#allocation19_spill]] (!%p605_p9) }
  0x25   : > { %v3364_v0 = vld [vmem:[%s4223_s24] sm:$0xff] (!%p605_p9)   ;;  %v3365_v2 = vld [vmem:[%s4223_s24 + $0x8] sm:$0xff] (!%p605_p9)   ;;  %v3368_v48 = vld [vmem:[%s4223_s24 + $0x10] sm:$0xff] (!%p605_p9)   ;;  %s4231_s8 = sld [smem:[#allocation20_spill]] (!%p605_p9)  ;;  %s4232_s9 = sld [smem:[#allocation21_spill]] (!%p605_p9) }
  0x26   : > { %3093 = vmatpush3.bf16.msra.mxu0 (!%p605_p9), %v3364_v0  ;;  %v3369_v49 = vld [vmem:[%s4223_s24 + $0x18] sm:$0xff] (!%p605_p9)   ;;  %s3003_s5 = sshll.u32 (!%p605_p9), %s3631_s3, 4 }
  0x27   : > { %3094 = vmatprep.subr.bf16.mxu0 %v3494_v1  ;;  %s3673_s4 = scalar_select %p675_p10, %s3631_s3, 1  ;;  %v2866_v5 = vld [vmem:[%s4225_s22] ss:$0 sm:$0xff]  ;;  %v3734_v55 = vld [vmem:[%s4225_s22 + $0x1] ss:$0 sm:$0xff] }
  0x28   : > { %v3366_v24 = vld [vmem:[%s4226_s1] sm:$0xff]   ;;  %v3367_v34 = vld [vmem:[%s4226_s1 + $0x8] sm:$0xff]  }
  0x29   : > { %s2861_s23 = sshll.u32 %s3673_s4, 3  ;;  %v2872_v40 = vld [vmem:[%s4227_s6] ss:$0 sm:$0xff]  ;;  %s3006_s29 = sshll.u32 %s3673_s4, 4 }
  0x2a   : > { %3095 = vmatpush3.bf16.msra.mxu0 %v3365_v2  ;;  %s678_s0 = scalar_lea.vmem %s4224_s28, %s2861_s23  ;;  %s683_s20 = scalar_lea.vmem %s4228_s27, %s3006_s29  ;;  %v3753_v60 = vld [vmem:[%s4229_s21] sm:$0xff]  ;;  %v3758_v61 = vld [vmem:[%s4229_s21 + $0x8] sm:$0xff] }
  0x2b   : > { %3106 = vmatprep.subr.bf16.mxu0 %v3494_v1  ;;  %v3680_v3 = vld [vmem:[%s678_s0] sm:$0x7f]  ;;  %v3748_v59 = vld [vmem:[%s683_s20 + $0x8] sm:$0xff]  ;;  %s688_s23 = scalar_lea.vmem %s4183_s19, %s3006_s29  ;;  %s673_s29 = sand.u32 1, %s3484_s25  }
  0x2c   : > { %v708_v4 = vpack.c.bf16 %v3680_v3, %v3680_v3  ;;  %v3746_v57 = vld [vmem:[%s683_s20] sm:$0xff]  ;;  %v982_v2 = vadd.f32 %v3758_v61, %v3748_v59  ;;  %s4233_s20 = smov 96   ;;  %s2728_s0 = scalar_lea.sflag [#allocation3], %s673_s29 }
  0x2d   : > { %v981_v0 = vadd.f32 %v3753_v60, %v3746_v57 }
  0x2e   : > { %3097 = vmatmul.mubr.msk.bf16.vlgmr.msra.gmra.mrb[0].mxu0 %vm727_vm1, %v708_v4 }
  0x2f   : > { %3108 = vmatprep.mubr.msk.bf16.mxu0 %vm3495_vm0, %v3494_v1  ;;  %v3765_v4 = vpack.c.bf16 %v982_v2, %v981_v0  ;;  %v2896_v0 = vld [vmem:[%s4227_s6 + $0x1] ss:$0 sm:$0xff] }
 0x101   : > { %v765_v6 = vpop.f32.mrb[0].mxu0 }
 0x102   : > { %v766_v7 = vadd.f32 %v2866_v5, %v765_v6  ;;  %v3098_v8 = vpop.f32.mrb[1].mxu0  ;;  %v2876_v6 = vld [vmem:[%s4230_s7] ss:$0 sm:$0xff] }
 0x103   : > { %v768_v9 = vpop.f32.mrb[2].mxu0  ;;  %v2877_v8 = vld [vmem:[%s4231_s8] ss:$0 sm:$0xff] }
 0x104   : > { %v771_v10 = vpack.c.bf16 %v766_v7, %v766_v7  ;;  %v3099_v11 = vpop.f32.mrb[3].mxu0 }
 0x106   : > { %773 = vrot.lane.b32.xlu0 %v771_v10, %s4197_s30 }
 0x178   : > { %v774_v12 = vpop.permute.xlu0 %773 }
 0x179   : > { %v779_v13 = vsel %vm727_vm1, %v774_v12, 0 }
 0x17a   : > { %3101 = vmatpush3.bf16.xpose.msra.mxu1 %v779_v13 }
 0x17b   : > { %3112 = vmatprep.subr.bf16.mxu1 %v3494_v1 }
 0x181   : > { %3103 = vmatmul.mubr.msk.bf16.vlgmr.msra.gmra.mrb[0].mxu1 %vm727_vm1, %v771_v10 }
 0x182   : > { %3116 = vmatprep.mubr.msk.bf16.mxu1 %vm3495_vm0, %v3494_v1  ;;  %3113 = vmatpush3.bf16.msra.mxu1 %v3366_v24 }
 0x183   : > { %3114 = vmatprep.subr.bf16.mxu1 %v3494_v1 }
 0x186   : > { %3115 = vmatpush3.bf16.msra.mxu1 %v3367_v34 }
 0x187   : > { %3128 = vmatprep.subr.bf16.mxu1 %v3494_v1 }
 0x254   : > { %v815_v14 = vpop.f32.mrb[0].mxu1 }
 0x255   : > { %v3104_v15 = vpop.f32.mrb[1].mxu1  ;;  %v822_v16 = vsel %vm821_vm2, %v815_v14, -inf }
 0x256   : > { %823 = vmax.xlane.f32.xlu0 %v822_v16  ;;  %v818_v17 = vpop.f32.mrb[2].mxu1 }
 0x257   : > { %v3105_v18 = vpop.f32.mrb[3].mxu1 }
 0x2e3   : > { %v824_v19 = vpop.xlane.xlu0 %823 }
 0x2e4   : > { %v825_v20 = vsub.f32 %v815_v14, %v824_v19 }
 0x2e6   : > { %v826_v21 = vmul.f32 1.442695, %v825_v20 }
 0x2e8   : > { %3398 = vpow2.f32 %v826_v21 }
 0x2f2   : > { %v3399_v22 = vpop.eup %3398 }
 0x2f3   : > { %v828_v23 = vsel %vm821_vm2, %v3399_v22, 0.0 }
 0x2f4   : > { %829 = vadd.xlane.f32.xlu1 %v828_v23 }
 0x305   : > { %834 = vrot.lane.b32.xlu1 %v771_v10, %s3497_s26 }
 0x381   : > { %v830_v27 = vpop.xlane.xlu1 %829 }
 0x382   : > { %3400 = vrcp.f32 %v830_v27 }
 0x385   : > { %v835_v29 = vpop.permute.xlu1 %834 }
 0x386   : > { %v845_v30 = vand.u32 %v3701_v28, %v835_v29 }
 0x388   : > { %3107 = vmatpush3.bf16.msra.mxu0 %v845_v30  ;;  %v1113_v30 = vpack.c.bf16 %v3748_v59, %v3746_v57 }
 0x389   : > { %3120 = vmatprep.subr.bf16.mxu0 %v3494_v1 }
 0x38c   : > { %v3401_v31 = vpop.eup %3400 }
 0x38d   : > { %v832_v32 = vmul.f32 %v3401_v31, %v3399_v22 }
 0x38f   : > { %v833_v33 = vpack.c.bf16 %v832_v32, %v832_v32 }
 0x391   : > { %3109 = vmatmul.mubr.msk.bf16.vlgmr.msra.gmra.mrb[4].mxu0 %vm836_vm5, %v833_v33 }
 0x392   : > { %3124 = vmatprep.mubr.msk.bf16.mxu0 %vm3495_vm0, %v3494_v1  ;;  %3121 = vmatpush3.bf16.msra.mxu0 %v3368_v48 }
 0x393   : > { %3122 = vmatprep.subr.bf16.mxu0 %v3494_v1 }
 0x396   : > { %3123 = vmatpush3.bf16.msra.mxu0 %v3369_v49 }
 0x397   : > { %3136 = vmatprep.subr.bf16.mxu0 %v3494_v1 }
 0x464   : > { %v881_v35 = vpop.f32.mrb[4].mxu0 }
 0x465   : > { %v887_v36 = vpack.c.bf16 %v881_v35, %v881_v35  ;;  %v3110_v37 = vpop.f32.mrb[5].mxu0 }
 0x466   : > { %v884_v38 = vpop.f32.mrb[6].mxu0 }
 0x467   : > { %v3111_v39 = vpop.f32.mrb[7].mxu0  ;;  %3117 = vmatmul.mubr.msk.bf16.vlgmr.msra.gmra.mrb[4].mxu1 %vm727_vm1, %v887_v36 }
 0x468   : > { %3132 = vmatprep.mubr.msk.bf16.mxu1 %vm3495_vm0, %v3494_v1 }
 0x53a   : > { %v943_v41 = vpop.f32.mrb[4].mxu1 }
 0x53b   : > { %v944_v42 = vadd.f32 %v2872_v40, %v943_v41  ;;  %v3118_v43 = vpop.f32.mrb[5].mxu1 }
 0x53c   : > { %v946_v44 = vpop.f32.mrb[6].mxu1 }
 0x53d   : > { %v3119_v45 = vpop.f32.mrb[7].mxu1  ;;  %v949_v46 = vadd.f32 %v944_v42, %v3680_v3 }
 0x53f   : > { %v953_v47 = vsel %vm952_vm6, %v949_v46, 0.0 }
 0x540   : > { %954 = vadd.xlane.f32.xlu1 %v953_v47 }
 0x551   : > { %1062 = vrot.lane.b32.xlu1 %v3369_v49, %s4197_s30 }
 0x5cd   : > { %v955_v50 = vpop.xlane.xlu1 %954 }
 0x5ce   : > { %v957_v51 = vmul.f32 0.03125, %v955_v50 }
 0x5d0   : > { %v958_v52 = vsub.f32 %v949_v46, %v957_v51 }
 0x5d1   : > { %v1063_v3 = vpop.permute.xlu1 %1062 }
 0x5d2   : > { %v959_v53 = vmul.f32 %v958_v52, %v958_v52 }
 0x5d4   : > { %v960_v54 = vsel %vm952_vm6, %v959_v53, 0.0 }
 0x5d5   : > { %961 = vadd.xlane.f32.xlu0 %v960_v54  ;;  %v3371_v54 = vld [vmem:[%s4226_s1 + $0x18] sm:$0xff]  }
 0x5eb   : > { %1060 = vrot.lane.b32.xlu0 %v3368_v48, %s4197_s30 }
 0x5ef   : > { %1066 = vrot.lane.b32.xlu0 %v3734_v55, %s4197_s30 }
 0x5f3   : > { %1114 = vrot.lane.b32.xlu0 %v3368_v48, %s3497_s26 }
 0x5f7   : > { %1116 = vrot.lane.b32.xlu0 %v3369_v49, %s3497_s26  ;;  %v3370_v49 = vld [vmem:[%s4226_s1 + $0x10] sm:$0xff]  }
 0x662   : > { %v962_v56 = vpop.xlane.xlu0 %961 }
 0x663   : > { %v963_v58 = vmul.f32 0.03125, %v962_v56 }
 0x665   : > { %v964_v62 = vadd.f32 1e-05, %v963_v58 }
 0x666   : > { %v1061_v63 = vpop.permute.xlu0 %1060 }
 0x667   : > { %3402 = vrsqrt.f32 %v964_v62  ;;  %3129 = vmatpush3.bf16.msra.mxu1 %v1061_v63 }
 0x668   : > { %3130 = vmatprep.subr.bf16.mxu1 %v3494_v1 }
 0x66a   : > { %v1067_v12 = vpop.permute.xlu0 %1066 }
 0x66b   : > { %3131 = vmatpush3.bf16.msra.mxu1 %v1063_v3 }
 0x66c   : > { %3144 = vmatprep.subr.bf16.mxu1 %v3494_v1 }
 0x66e   : > { %3133 = vmatmul.mubr.msk.bf16.vlgmr.msra.gmra.mrb[8].mxu1 %vm727_vm1, %v3765_v4  ;;  %v1115_v27 = vpop.permute.xlu0 %1114 }
 0x66f   : > { %3146 = vmatprep.mubr.msk.bf16.mxu1 %vm3495_vm0, %v3494_v1 }
 0x671   : > { %v3403_v5 = vpop.eup %3402 }
 0x672   : > { %v966_v7 = vmul.f32 %v3403_v5, %v958_v52  ;;  %v1117_v29 = vpop.permute.xlu0 %1116 }
 0x674   : > { %v973_v9 = vmul.f32 %v2876_v6, %v966_v7 }
 0x676   : > { %v3778_v10 = vadd.f32 %v2877_v8, %v973_v9 }
 0x678   : > { %v997_v11 = vpack.c.bf16 %v3778_v10, %v3778_v10 }
 0x67a   : > { %3125 = vmatmul.mubr.msk.bf16.vlgmr.msra.gmra.mrb[8].mxu0 %vm727_vm1, %v997_v11 }
 0x67b   : > { %3140 = vmatprep.mubr.msk.bf16.mxu0 %vm3495_vm0, %v3494_v1  ;;  %3137 = vmatpush3.bf16.msra.mxu0 %v1115_v27 }
 0x67c   : > { %3138 = vmatprep.subr.bf16.mxu0 %v3494_v1 }
 0x67f   : > { %3139 = vmatpush3.bf16.msra.mxu0 %v1117_v29 }
 0x680   : > { %3150 = vmatprep.subr.bf16.mxu0 %v3494_v1 }
 0x682   : > { %3141 = vmatmul.mubr.msk.bf16.vlgmr.msra.gmra.mrb[12].mxu0 %vm727_vm1, %v1113_v30  ;;  %v3376_v30 = vld [vmem:[%s4175_s11 + $0x10] sm:$0xff]  }
 0x683   : > { %3152 = vmatprep.mubr.msk.bf16.mxu0 %vm3495_vm0, %v3494_v1 }
 0x741   : > { %v1106_v13 = vpop.f32.mrb[8].mxu1 }
 0x742   : > { %v3134_v14 = vpop.f32.mrb[9].mxu1  ;;  %v1107_v15 = vadd.f32 %v1106_v13, %v1067_v12 }
 0x743   : > { %v1109_v16 = vpop.f32.mrb[10].mxu1 }
 0x744   : > { %v1110_v17 = vadd.f32 %v1109_v16, %v1067_v12  ;;  %v3135_v18 = vpop.f32.mrb[11].mxu1  ;;  %v3372_v16 = vld [vmem:[%s4232_s9] sm:$0xff]  }
 0x745   : > { %v3375_v18 = vld [vmem:[%s4175_s11 + $0x8] sm:$0xff]  }
 0x746   : > { %v1168_v19 = vpack.c.bf16 %v1110_v17, %v1107_v15  ;;  %v3374_v17 = vld [vmem:[%s4175_s11] sm:$0xff]  }
 0x748   : > { %v1173_v20 = vsel %vm727_vm1, %v1168_v19, 0 }
 0x749   : > { %3145 = vmatpush3.bf16.xpose.msra.mxu1 %v1173_v20 }
 0x74a   : > { %3156 = vmatprep.subr.bf16.mxu1 %v3494_v1 }
 0x74d   : > { %v1053_v21 = vpop.f32.mrb[8].mxu0 }
 0x74e   : > { %v1054_v22 = vadd.f32 %v3734_v55, %v1053_v21  ;;  %v3126_v23 = vpop.f32.mrb[9].mxu0 }
 0x74f   : > { %v1056_v24 = vpop.f32.mrb[10].mxu0  ;;  %v2902_v23 = vld [vmem:[%s4230_s7 + $0x1] ss:$0 sm:$0xff] }
 0x750   : > { %v1167_v25 = vpack.c.bf16 %v1054_v22, %v1054_v22  ;;  %v3127_v26 = vpop.f32.mrb[11].mxu0 }
 0x752   : > { %3147 = vmatmul.mubr.msk.bf16.vlgmr.msra.gmra.mrb[12].mxu1 %vm727_vm1, %v1167_v25  ;;  %v2903_v25 = vld [vmem:[%s4231_s8 + $0x1] ss:$0 sm:$0xff] }
 0x753   : > { %3160 = vmatprep.mubr.msk.bf16.mxu1 %vm3495_vm0, %v3494_v1  ;;  %3157 = vmatpush3.bf16.msra.mxu1 %v3370_v49  ;;  %v3872_v49 = vld [vmem:[%s4225_s22 + $0x2] ss:$0 sm:$0xff] }
 0x754   : > { %3158 = vmatprep.subr.bf16.mxu1 %v3494_v1 }
 0x755   : > { %v1160_v36 = vpop.f32.mrb[12].mxu0 }
 0x756   : > { %v3142_v37 = vpop.f32.mrb[13].mxu0 }
 0x757   : > { %v1163_v43 = vpop.f32.mrb[14].mxu0  ;;  %3159 = vmatpush3.bf16.msra.mxu1 %v3371_v54 }
 0x758   : > { %v3143_v45 = vpop.f32.mrb[15].mxu0  ;;  %3172 = vmatprep.subr.bf16.mxu1 %v3494_v1 }
 0x825   : > { %v1209_v31 = vpop.f32.mrb[12].mxu1 }
 0x826   : > { %v3148_v32 = vpop.f32.mrb[13].mxu1  ;;  %v1216_v33 = vsel %vm1215_vm7, %v1209_v31, -inf }
 0x827   : > { %1217 = vmax.xlane.f32.xlu0 %v1216_v33  ;;  %v1212_v34 = vpop.f32.mrb[14].mxu1  ;;  %v2904_v32 = vld [vmem:[%s4174_s10] ss:$0 sm:$0xff] }
 0x828   : > { %v3149_v35 = vpop.f32.mrb[15].mxu1 }
 0x83d   : > { %1120 = vrot.lane.b32.xlu0 %v3734_v55, %s3497_s26 }
 0x8b4   : > { %v1218_v38 = vpop.xlane.xlu0 %1217 }
 0x8b5   : > { %v1219_v39 = vsub.f32 %v1209_v31, %v1218_v38  ;;  %v3377_v31 = vld [vmem:[%s4175_s11 + $0x18] sm:$0xff]  }
 0x8b7   : > { %v1220_v40 = vmul.f32 1.442695, %v1219_v39 }
 0x8b8   : > { %v1121_v44 = vpop.permute.xlu0 %1120 }
 0x8b9   : > { %3404 = vpow2.f32 %v1220_v40  ;;  %v1161_v46 = vadd.f32 %v1160_v36, %v1121_v44  ;;  %v1164_v47 = vadd.f32 %v1163_v43, %v1121_v44  ;;  %v2908_v40 = vld [vmem:[%s4176_s12] ss:$0 sm:$0xff] }
 0x8bb   : > { %v1228_v48 = vpack.c.bf16 %v1164_v47, %v1161_v46 }
 0x8bd   : > { %3151 = vmatpush3.bf16.msra.mxu0 %v1228_v48  ;;  %v3378_v48 = vld [vmem:[%s4223_s24 + $0x20] sm:$0xff]  }
 0x8be   : > { %3164 = vmatprep.subr.bf16.mxu0 %v3494_v1  ;;  %1625 = vrot.lane.b32.xlu0 %v3378_v48, %s4233_s20 }
 0x8c2   : > { %1631 = vrot.lane.b32.xlu0 %v3872_v49, %s4233_s20 }
 0x8c3   : > { %v3405_v41 = vpop.eup %3404 }
 0x8c4   : > { %v1222_v42 = vsel %vm1215_vm7, %v3405_v41, 0.0 }
 0x8c5   : > { %1223 = vadd.xlane.f32.xlu1 %v1222_v42 }
 0x8c6   : > { %1677 = vrot.lane.b32.xlu0 %v3378_v48, %s3497_s26 }
 0x952   : > { %v1224_v50 = vpop.xlane.xlu1 %1223 }
 0x953   : > { %3406 = vrcp.f32 %v1224_v50  ;;  %v3379_v50 = vld [vmem:[%s4223_s24 + $0x28] sm:$0xff]  }
 0x954   : > { %1679 = vrot.lane.b32.xlu0 %v3379_v50, %s3497_s26 }
 0x95d   : > { %v3407_v51 = vpop.eup %3406 }
 0x95e   : > { %v1226_v52 = vmul.f32 %v3407_v51, %v3405_v41 }
 0x960   : > { %v1227_v53 = vpack.c.bf16 %v1226_v52, %v1226_v52 }
 0x962   : > { %3153 = vmatmul.mubr.msk.bf16.vlgmr.msra.gmra.mrb[16].mxu0 %vm1229_vm8, %v1227_v53 }
 0x963   : > { %3168 = vmatprep.mubr.msk.bf16.mxu0 %vm3495_vm0, %v3494_v1  ;;  %3165 = vmatpush3.bf16.msra.mxu0 %v3372_v16  ;;  %v2917_v16 = vld [vmem:[%s4231_s8 + $0x2] ss:$0 sm:$0xff] }
 0x964   : > { %3166 = vmatprep.subr.bf16.mxu0 %v3494_v1 }
 0xa35   : > { %v1267_v55 = vpop.f32.mrb[16].mxu0 }
 0xa36   : > { %v1273_v56 = vpack.c.bf16 %v1267_v55, %v1267_v55  ;;  %v3154_v58 = vpop.f32.mrb[17].mxu0 }
 0xa37   : > { %v1270_v62 = vpop.f32.mrb[18].mxu0 }
 0xa38   : > { %v3155_v63 = vpop.f32.mrb[19].mxu0  ;;  %3161 = vmatmul.mubr.msk.bf16.vlgmr.msra.gmra.mrb[16].mxu1 %vm727_vm1, %v1273_v56  ;;  %v1626_v56 = vpop.permute.xlu0 %1625 }
 0xa39   : > { %3180 = vmatprep.mubr.msk.bf16.mxu1 %vm3495_vm0, %v3494_v1  ;;  %3173 = vmatpush3.bf16.msra.mxu1 %v3374_v17 }
 0xa3a   : > { %3174 = vmatprep.subr.bf16.mxu1 %v3494_v1 }
 0xa3d   : > { %3175 = vmatpush3.bf16.msra.mxu1 %v3375_v18 }
 0xa3e   : > { %3176 = vmatprep.subr.bf16.mxu1 %v3494_v1 }
 0xa41   : > { %3177 = vmatpush3.bf16.msra.mxu1 %v3376_v30 }
 0xa42   : > { %3178 = vmatprep.subr.bf16.mxu1 %v3494_v1 }
 0xa45   : > { %3179 = vmatpush3.bf16.msra.mxu1 %v3377_v31 }
 0xa46   : > { %3200 = vmatprep.subr.bf16.mxu1 %v3494_v1 }
 0xb0b   : > { %v1329_v2 = vpop.f32.mrb[16].mxu1 }
 0xb0c   : > { %v1330_v3 = vadd.f32 %v2896_v0, %v1329_v2  ;;  %v3162_v5 = vpop.f32.mrb[17].mxu1 }
 0xb0d   : > { %v1332_v6 = vpop.f32.mrb[18].mxu1 }
 0xb0e   : > { %v3163_v7 = vpop.f32.mrb[19].mxu1  ;;  %v1335_v8 = vadd.f32 %v1330_v3, %v3778_v10  ;;  %v3373_v10 = vld [vmem:[%s4232_s9 + $0x8] sm:$0xff]  }
 0xb0f   : > { %3167 = vmatpush3.bf16.msra.mxu0 %v3373_v10 }
 0xb10   : > { %v1340_v9 = vsel %vm952_vm6, %v1335_v8, 0.0  ;;  %3184 = vmatprep.subr.bf16.mxu0 %v3494_v1 }
 0xb11   : > { %1341 = vadd.xlane.f32.xlu1 %v1340_v9 }
 0xb9e   : > { %v1342_v11 = vpop.xlane.xlu1 %1341 }
 0xb9f   : > { %v1343_v12 = vmul.f32 0.03125, %v1342_v11 }
 0xba1   : > { %v1344_v13 = vsub.f32 %v1335_v8, %v1343_v12 }
 0xba3   : > { %v1345_v14 = vmul.f32 %v1344_v13, %v1344_v13 }
 0xba5   : > { %v1346_v15 = vsel %vm952_vm6, %v1345_v14, 0.0  ;;  %v2916_v14 = vld [vmem:[%s4230_s7 + $0x2] ss:$0 sm:$0xff] }
 0xba6   : > { %1347 = vadd.xlane.f32.xlu1 %v1346_v15 }
 0xc33   : > { %v1348_v19 = vpop.xlane.xlu1 %1347 }
 0xc34   : > { %v1349_v20 = vmul.f32 0.03125, %v1348_v19 }
 0xc36   : > { %v1350_v21 = vadd.f32 1e-05, %v1349_v20 }
 0xc38   : > { %3408 = vrsqrt.f32 %v1350_v21 }
 0xc42   : > { %v3409_v22 = vpop.eup %3408 }
 0xc43   : > { %v1352_v24 = vmul.f32 %v3409_v22, %v1344_v13 }
 0xc45   : > { %v1359_v26 = vmul.f32 %v2902_v23, %v1352_v24 }
 0xc47   : > { %v1366_v27 = vadd.f32 %v2903_v25, %v1359_v26 }
 0xc49   : > { %v1371_v29 = vpack.c.bf16 %v1366_v27, %v1366_v27 }
 0xc4b   : > { %3169 = vmatmul.mubr.msk.bf16.vlgmr.msra.gmra.mrb[20].mxu0 %vm727_vm1, %v1371_v29 }
 0xc4c   : > { %3188 = vmatprep.mubr.msk.bf16.mxu0 %vm3495_vm0, %v3494_v1  ;;  %3185 = vmatpush3.bf16.msra.mxu0 %v3378_v48 }
 0xc4d   : > { %3186 = vmatprep.subr.bf16.mxu0 %v3494_v1 }
 0xc50   : > { %3187 = vmatpush3.bf16.msra.mxu0 %v3379_v50 }
 0xc51   : > { %3192 = vmatprep.subr.bf16.mxu0 %v3494_v1 }
 0xc53   : > { %3189 = vmatmul.mubr.msk.bf16.vlgmr.msra.gmra.mrb[24].mxu0 %vm727_vm1, %v3765_v4  ;;  %v1632_v4 = vpop.permute.xlu0 %1631 }
 0xc54   : > { %3196 = vmatprep.mubr.msk.bf16.mxu0 %vm3495_vm0, %v3494_v1  ;;  %3193 = vmatpush3.bf16.msra.mxu0 %v1626_v56 }
 0xc55   : > { %3194 = vmatprep.subr.bf16.mxu0 %v3494_v1 }
 0xc57   : > { %v1678_v58 = vpop.permute.xlu0 %1677 }
 0xc5b   : > { %v1680_v62 = vpop.permute.xlu0 %1679 }
 0xd1e   : > { %v1428_v33 = vpop.f32.mrb[20].mxu0 }
 0xd1f   : > { %v1429_v34 = vadd.f32 %v2904_v32, %v1428_v33  ;;  %v3170_v35 = vpop.f32.mrb[21].mxu0 }
 0xd20   : > { %v1431_v36 = vpop.f32.mrb[22].mxu0 }
 0xd21   : > { %v1434_v37 = vmax.f32 %v1429_v34, 0.0  ;;  %v3171_v38 = vpop.f32.mrb[23].mxu0 }
 0xd23   : > { %v1443_v39 = vpack.c.bf16 %v1434_v37, %v1434_v37 }
 0xd25   : > { %3181 = vmatmul.mubr.msk.bf16.vlgmr.msra.gmra.mrb[20].mxu1 %vm1475_vm9, %v1443_v39 }
 0xd26   : > { %3204 = vmatprep.mubr.msk.bf16.mxu1 %vm3495_vm0, %v3494_v1  ;;  %3201 = vmatpush3.bf16.msra.mxu1 %v1678_v58  ;;  %v1617_v63 = vpop.f32.mrb[24].mxu0 }
 0xd27   : > { %3202 = vmatprep.subr.bf16.mxu1 %v3494_v1  ;;  %v1618_v0 = vadd.f32 %v3872_v49, %v1617_v63  ;;  %v3190_v2 = vpop.f32.mrb[25].mxu0  ;;  %v3383_v63 = vld [vmem:[%s4226_s1 + $0x28] sm:$0xff]  }
 0xd28   : > { %v1620_v3 = vpop.f32.mrb[26].mxu0 }
 0xd29   : > { %v1621_v5 = vadd.f32 %v3872_v49, %v1620_v3  ;;  %v3191_v6 = vpop.f32.mrb[27].mxu0 }
 0xd2a   : > { %3203 = vmatpush3.bf16.msra.mxu1 %v1680_v62  ;;  %v3381_v62 = vld [vmem:[%s4223_s24 + $0x38] sm:$0xff]  }
 0xd2b   : > { %3214 = vmatprep.subr.bf16.mxu1 %v3494_v1  ;;  %v1726_v7 = vpack.c.bf16 %v1621_v5, %v1618_v0  ;;  %v3955_v0 = vld [vmem:[%s4225_s22 + $0x3] ss:$0 sm:$0xff] }
 0xdf8   : > { %v1513_v41 = vpop.f32.mrb[20].mxu1 }
 0xdf9   : > { %v1514_v42 = vadd.f32 %v2908_v40, %v1513_v41  ;;  %v3182_v43 = vpop.f32.mrb[21].mxu1 }
 0xdfa   : > { %v1516_v44 = vpop.f32.mrb[22].mxu1 }
 0xdfb   : > { %v3183_v45 = vpop.f32.mrb[23].mxu1  ;;  %v1519_v46 = vadd.f32 %v1514_v42, %v1366_v27 }
 0xdfd   : > { %v1524_v47 = vsel %vm952_vm6, %v1519_v46, 0.0 }
 0xdfe   : > { %1525 = vadd.xlane.f32.xlu1 %v1524_v47 }
 0xe8b   : > { %v1526_v51 = vpop.xlane.xlu1 %1525 }
 0xe8c   : > { %v1527_v52 = vmul.f32 0.03125, %v1526_v51  ;;  %v3380_v51 = vld [vmem:[%s4223_s24 + $0x30] sm:$0xff]  }
 0xe8e   : > { %v1528_v53 = vsub.f32 %v1519_v46, %v1527_v52 }
 0xe90   : > { %v1529_v54 = vmul.f32 %v1528_v53, %v1528_v53 }
 0xe92   : > { %v1530_v55 = vsel %vm952_vm6, %v1529_v54, 0.0 }
 0xe93   : > { %1531 = vadd.xlane.f32.xlu1 %v1530_v55 }
 0xea4   : > { %1627 = vrot.lane.b32.xlu1 %v3379_v50, %s4233_s20 }
 0xf20   : > { %v1532_v8 = vpop.xlane.xlu1 %1531 }
 0xf21   : > { %v1533_v9 = vmul.f32 0.03125, %v1532_v8 }
 0xf23   : > { %v1534_v11 = vadd.f32 1e-05, %v1533_v9 }
 0xf24   : > { %v1628_v12 = vpop.permute.xlu1 %1627 }
 0xf25   : > { %3410 = vrsqrt.f32 %v1534_v11  ;;  %3195 = vmatpush3.bf16.msra.mxu0 %v1628_v12 }
 0xf26   : > { %3208 = vmatprep.subr.bf16.mxu0 %v3494_v1 }
 0xf2f   : > { %v3411_v13 = vpop.eup %3410 }
 0xf30   : > { %v1536_v15 = vmul.f32 %v3411_v13, %v1528_v53  ;;  %v2936_v13 = vld [vmem:[%s4227_s6 + $0x2] ss:$0 sm:$0xff] }
 0xf32   : > { %v1543_v10 = vmul.f32 %v2916_v14, %v1536_v15 }
 0xf34   : > { %v3901_v17 = vadd.f32 %v2917_v16, %v1543_v10 }
 0xf36   : > { %v3905_v18 = vpack.c.bf16 %v3901_v17, %v3901_v17 }
 0xf38   : > { %3197 = vmatmul.mubr.msk.bf16.vlgmr.msra.gmra.mrb[28].mxu0 %vm727_vm1, %v3905_v18  ;;  %3205 = vmatmul.mubr.msk.bf16.vlgmr.msra.gmra.mrb[24].mxu1 %vm727_vm1, %v3905_v18 }
 0xf39   : > { %3210 = vmatprep.mubr.msk.bf16.mxu0 %vm3495_vm0, %v3494_v1  ;;  %3216 = vmatprep.mubr.msk.bf16.mxu1 %vm3495_vm0, %v3494_v1 }
0x100b   : > { %v1671_v19 = vpop.f32.mrb[28].mxu0  ;;  %v1720_v20 = vpop.f32.mrb[24].mxu1 }
0x100c   : > { %v1672_v21 = vadd.f32 %v1671_v19, %v1632_v4  ;;  %v3198_v22 = vpop.f32.mrb[29].mxu0  ;;  %v3206_v23 = vpop.f32.mrb[25].mxu1 }
0x100d   : > { %v1674_v24 = vpop.f32.mrb[30].mxu0  ;;  %v1723_v25 = vpop.f32.mrb[26].mxu1 }
0x100e   : > { %v1727_v26 = vpack.c.bf16 %v1672_v21, %v1672_v21  ;;  %v3199_v27 = vpop.f32.mrb[31].mxu0  ;;  %v3207_v29 = vpop.f32.mrb[27].mxu1 }
0x1010   : > { %v1732_v30 = vsel %vm727_vm1, %v1727_v26, 0 }
0x1011   : > { %3209 = vmatpush3.bf16.xpose.msra.mxu0 %v1732_v30 }
0x1012   : > { %3220 = vmatprep.subr.bf16.mxu0 %v3494_v1 }
0x1018   : > { %3211 = vmatmul.mubr.msk.bf16.vlgmr.msra.gmra.mrb[32].mxu0 %vm727_vm1, %v1726_v7 }
0x1019   : > { %3224 = vmatprep.mubr.msk.bf16.mxu0 %vm3495_vm0, %v3494_v1 }
0x10eb   : > { %v1768_v31 = vpop.f32.mrb[32].mxu0 }
0x10ec   : > { %v3212_v32 = vpop.f32.mrb[33].mxu0  ;;  %v1775_v33 = vsel %vm836_vm5, %v1768_v31, -inf }
0x10ed   : > { %1776 = vmax.xlane.f32.xlu0 %v1775_v33  ;;  %v1771_v34 = vpop.f32.mrb[34].mxu0 }
0x10ee   : > { %v3213_v35 = vpop.f32.mrb[35].mxu0  ;;  %v1778_v36 = vsel %vm836_vm5, %v1771_v34, -inf }
0x10ef   : > { %1779 = vmax.xlane.f32.xlu1 %v1778_v36 }
0x1100   : > { %1683 = vrot.lane.b32.xlu1 %v3872_v49, %s3497_s26 }
0x1104   : > { %2032 = vrot.lane.b32.xlu1 %v3380_v51, %s4233_s20 }
0x1108   : > { %2038 = vrot.lane.b32.xlu1 %v3955_v0, %s4233_s20 }
0x110c   : > { %2086 = vrot.lane.b32.xlu1 %v3380_v51, %s3497_s26 }
0x1110   : > { %2088 = vrot.lane.b32.xlu1 %v3381_v62, %s3497_s26 }
0x117a   : > { %v1777_v37 = vpop.xlane.xlu0 %1776 }
0x117b   : > { %v1781_v38 = vsub.f32 %v1768_v31, %v1777_v37 }
0x117c   : > { %v1780_v39 = vpop.xlane.xlu1 %1779 }
0x117d   : > { %v1783_v40 = vmul.f32 1.442695, %v1781_v38  ;;  %v1782_v41 = vsub.f32 %v1771_v34, %v1780_v39 }
0x117f   : > { %3412 = vpow2.f32 %v1783_v40  ;;  %v1785_v42 = vmul.f32 1.442695, %v1782_v41 }
0x1180   : > { %v1684_v43 = vpop.permute.xlu1 %1683 }
0x1181   : > { %3414 = vpow2.f32 %v1785_v42  ;;  %v1721_v44 = vadd.f32 %v1720_v20, %v1684_v43 }
0x1183   : > { %v1798_v45 = vpack.c.bf16 %v1721_v44, %v1721_v44 }
0x1184   : > { %v2033_v34 = vpop.permute.xlu1 %2032 }
0x1185   : > { %v1803_v46 = vand.u32 %v1798_v45, %v3701_v28  ;;  %v3382_v28 = vld [vmem:[%s4226_s1 + $0x20] sm:$0xff]  }
0x1186   : > { %3221 = vmatpush3.bf16.msra.mxu0 %v3382_v28  ;;  %v2942_v45 = vld [vmem:[%s4230_s7 + $0x3] ss:$0 sm:$0xff] }
0x1187   : > { %3215 = vmatpush3.bf16.msra.mxu1 %v1803_v46  ;;  %3222 = vmatprep.subr.bf16.mxu0 %v3494_v1 }
0x1188   : > { %3228 = vmatprep.subr.bf16.mxu1 %v3494_v1 }
0x1189   : > { %v3413_v47 = vpop.eup %3412 }
0x118a   : > { %v1787_v48 = vsel %vm836_vm5, %v3413_v47, 0.0  ;;  %3223 = vmatpush3.bf16.msra.mxu0 %v3383_v63 }
0x118b   : > { %v3415_v49 = vpop.eup %3414  ;;  %1788 = vadd.xlane.f32.xlu0 %v1787_v48  ;;  %3236 = vmatprep.subr.bf16.mxu0 %v3494_v1 }
0x118c   : > { %v1790_v50 = vsel %vm836_vm5, %v3415_v49, 0.0 }
0x118f   : > { %1791 = vadd.xlane.f32.xlu0 %v1790_v50 }
0x1218   : > { %v1789_v52 = vpop.xlane.xlu0 %1788 }
0x1219   : > { %3416 = vrcp.f32 %v1789_v52 }
0x121c   : > { %v1792_v53 = vpop.xlane.xlu0 %1791 }
0x121d   : > { %3418 = vrcp.f32 %v1792_v53 }
0x1223   : > { %v3417_v54 = vpop.eup %3416 }
0x1224   : > { %v1794_v56 = vmul.f32 %v3417_v54, %v3413_v47  ;;  %v2943_v47 = vld [vmem:[%s4231_s8 + $0x3] ss:$0 sm:$0xff] }
0x1227   : > { %v3419_v55 = vpop.eup %3418 }
0x1228   : > { %v1796_v4 = vmul.f32 %v3419_v55, %v3415_v49 }
0x122a   : > { %v1797_v58 = vpack.c.bf16 %v1796_v4, %v1794_v56 }
0x122c   : > { %3217 = vmatmul.mubr.msk.bf16.vlgmr.msra.gmra.mrb[28].mxu1 %vm836_vm5, %v1797_v58 }
0x122d   : > { %3229 = vmatpush3.bf16.msra.mxu1 %v3380_v51  ;;  %3232 = vmatprep.mubr.msk.bf16.mxu1 %vm3495_vm0, %v3494_v1 }
0x122e   : > { %3230 = vmatprep.subr.bf16.mxu1 %v3494_v1 }
0x1231   : > { %3231 = vmatpush3.bf16.msra.mxu1 %v3381_v62 }
0x1232   : > { %3244 = vmatprep.subr.bf16.mxu1 %v3494_v1 }
0x1234   : > { %3233 = vmatmul.mubr.msk.bf16.vlgmr.msra.gmra.mrb[32].mxu1 %vm727_vm1, %v3905_v18 }
0x1235   : > { %3248 = vmatprep.mubr.msk.bf16.mxu1 %vm3495_vm0, %v3494_v1 }
0x12ff   : > { %v1839_v2 = vpop.f32.mrb[28].mxu1 }
0x1300   : > { %v3218_v3 = vpop.f32.mrb[29].mxu1 }
0x1301   : > { %v1842_v5 = vpop.f32.mrb[30].mxu1 }
0x1302   : > { %v1846_v6 = vpack.c.bf16 %v1842_v5, %v1839_v2  ;;  %v3219_v7 = vpop.f32.mrb[31].mxu1 }
0x1304   : > { %3225 = vmatmul.mubr.msk.bf16.vlgmr.msra.gmra.mrb[36].mxu0 %vm727_vm1, %v1846_v6 }
0x1305   : > { %3240 = vmatprep.mubr.msk.bf16.mxu0 %vm3495_vm0, %v3494_v1  ;;  %3237 = vmatpush3.bf16.msra.mxu0 %v2033_v34 }
0x1306   : > { %3238 = vmatprep.subr.bf16.mxu0 %v3494_v1 }
0x1307   : > { %v3964_v8 = vpop.f32.mrb[32].mxu1 }
0x1308   : > { %v3234_v9 = vpop.f32.mrb[33].mxu1 }
0x1309   : > { %v2028_v11 = vpop.f32.mrb[34].mxu1 }
0x130a   : > { %v3235_v12 = vpop.f32.mrb[35].mxu1  ;;  %v2026_v11 = vadd.f32 %v3955_v0, %v3964_v8 }
0x130c   : > { %v2139_v12 = vpack.c.bf16 %v2026_v11, %v2026_v11  ;;  %v3391_v11 = vld [vmem:[%s4177_s13 + $0x18] sm:$0xff]  }
0x13d7   : > { %v1902_v14 = vpop.f32.mrb[36].mxu0 }
0x13d8   : > { %v1903_v15 = vadd.f32 %v2936_v13, %v1902_v14  ;;  %v3226_v16 = vpop.f32.mrb[37].mxu0 }
0x13d9   : > { %v1905_v10 = vpop.f32.mrb[38].mxu0 }
0x13da   : > { %v1906_v18 = vadd.f32 %v2936_v13, %v1905_v10  ;;  %v3227_v19 = vpop.f32.mrb[39].mxu0  ;;  %v1909_v20 = vadd.f32 %v1903_v15, %v3746_v57 }
0x13dc   : > { %v1915_v21 = vsel %vm727_vm1, %v1909_v20, 0.0  ;;  %v1910_v22 = vadd.f32 %v1906_v18, %v3748_v59  ;;  %v2039_v59 = vpop.permute.xlu1 %2038 }
0x13dd   : > { %1916 = vadd.xlane.f32.xlu0 %v1915_v21 }
0x13de   : > { %v1918_v23 = vsel %vm727_vm1, %v1910_v22, 0.0 }
0x13e0   : > { %v2087_v35 = vpop.permute.xlu1 %2086 }
0x13e1   : > { %1919 = vadd.xlane.f32.xlu0 %v1918_v23  ;;  %3245 = vmatpush3.bf16.msra.mxu1 %v2087_v35  ;;  %v2962_v35 = vld [vmem:[%s4227_s6 + $0x3] ss:$0 sm:$0xff] }
0x13e2   : > { %3246 = vmatprep.subr.bf16.mxu1 %v3494_v1 }
0x13e4   : > { %v2089_v36 = vpop.permute.xlu1 %2088 }
0x13e5   : > { %3247 = vmatpush3.bf16.msra.mxu1 %v2089_v36 }
0x13e6   : > { %3258 = vmatprep.subr.bf16.mxu1 %v3494_v1 }
0x146a   : > { %v1917_v24 = vpop.xlane.xlu0 %1916 }
0x146b   : > { %v1921_v25 = vmul.f32 0.03125, %v1917_v24 }
0x146d   : > { %v1923_v26 = vsub.f32 %v1909_v20, %v1921_v25 }
0x146e   : > { %v1920_v27 = vpop.xlane.xlu0 %1919 }
0x146f   : > { %v1922_v29 = vmul.f32 0.03125, %v1920_v27  ;;  %v1925_v30 = vmul.f32 %v1923_v26, %v1923_v26 }
0x1471   : > { %v1924_v31 = vsub.f32 %v1910_v22, %v1922_v29  ;;  %v1927_v32 = vsel %vm727_vm1, %v1925_v30, 0.0 }
0x1472   : > { %1928 = vadd.xlane.f32.xlu0 %v1927_v32 }
0x1473   : > { %v1926_v33 = vmul.f32 %v1924_v31, %v1924_v31 }
0x1475   : > { %v1930_v57 = vsel %vm727_vm1, %v1926_v33, 0.0 }
0x1476   : > { %1931 = vadd.xlane.f32.xlu0 %v1930_v57 }
0x148c   : > { %2034 = vrot.lane.b32.xlu0 %v3381_v62, %s4233_s20  ;;  %s674_s20 = scalar_lea.vmem [#allocation2], %s673_s29 }
0x148d   : > { %s2746_s30 = sshll.u32 %s674_s20, 4  ;;  %s2747_s30 = int_to_ptr.vmem [resolvable:$true] %s2746_s30 }
0x148e   : > { %s3430_s2 = scalar_lea.vmem %s2747_s30, 16 }
0x148f   : > { %p3431_p11 = scmp.ne.s32.totalorder %s2747_s30, %s3430_s2 }
0x1491   : > { %p3432_p12 = pnand %p3431_p11, %p3648_p5 }
0x1493   : > { %p3433_p13 = pneg %p3432_p12 }
0x14ff   : > { %v1929_v37 = vpop.xlane.xlu0 %1928 }
0x1500   : > { %v1933_v38 = vmul.f32 0.03125, %v1929_v37 }
0x1502   : > { %v1935_v39 = vadd.f32 1e-05, %v1933_v38 }
0x1503   : > { %v1932_v40 = vpop.xlane.xlu0 %1931 }
0x1504   : > { %3420 = vrsqrt.f32 %v1935_v39  ;;  %v1934_v41 = vmul.f32 0.03125, %v1932_v40 }
0x1506   : > { %v1936_v42 = vadd.f32 1e-05, %v1934_v41 }
0x1507   : > { %v2035_v43 = vpop.permute.xlu0 %2034 }
0x1508   : > { %3422 = vrsqrt.f32 %v1936_v42  ;;  %3239 = vmatpush3.bf16.msra.mxu0 %v2035_v43 }
0x1509   : > { %3252 = vmatprep.subr.bf16.mxu0 %v3494_v1 }
0x150e   : > { %v3421_v44 = vpop.eup %3420 }
0x150f   : > { %v1939_v46 = vmul.f32 %v3421_v44, %v1923_v26  ;;  %v3384_v26 = vld [vmem:[%s4226_s1 + $0x30] sm:$0xff]  }
0x1511   : > { %v1947_v48 = vmul.f32 %v2942_v45, %v1939_v46 }
0x1512   : > { %v3423_v49 = vpop.eup %3422 }
0x1513   : > { %v1940_v50 = vmul.f32 %v3423_v49, %v1924_v31  ;;  %v1955_v51 = vadd.f32 %v2943_v47, %v1947_v48  ;;  %v3385_v31 = vld [vmem:[%s4226_s1 + $0x38] sm:$0xff]   ;;  %v3386_v48 = vld [vmem:[%s4177_s13] sm:$0xff]  }
0x1515   : > { %v1948_v28 = vmul.f32 %v2942_v45, %v1940_v50  ;;  %2337 = vst.msk [vmem:[%s688_s23] sm:$0xff] %vm727_vm1, %v1955_v51  ;;  %v1957_v54 = vadd.f32 %v1955_v51, %v3753_v60 }
0x1517   : > { %v1956_v52 = vadd.f32 %v2943_v47, %v1948_v28 }
0x1519   : > { %v2085_v53 = vpack.c.bf16 %v1956_v52, %v1955_v51  ;;  %2338 = vst.msk [vmem:[%s688_s23 + $0x8] sm:$0xff] %vm727_vm1, %v1956_v52  ;;  %v1958_v55 = vadd.f32 %v1956_v52, %v3758_v61  ;;  %v2968_v52 = vld [vmem:[%s4230_s7 + $0x4] ss:$0 sm:$0xff]  ;;  %s3499_s7 = smov [#allocation2]  }
0x151b   : > { %3249 = vmatmul.mubr.msk.bf16.vlgmr.msra.gmra.mrb[36].mxu1 %vm727_vm1, %v2085_v53  ;;  %v2031_v56 = vpack.c.bf16 %v1958_v55, %v1957_v54  ;;  %v2969_v54 = vld [vmem:[%s4231_s8 + $0x4] ss:$0 sm:$0xff]  ;;  %s3434_s8 = sshll.u32 %s3499_s7, 4  ;;  %s3435_s8 = int_to_ptr.vmem [resolvable:$false] %s3434_s8 }
0x151c   : > { %3260 = vmatprep.mubr.msk.bf16.mxu1 %vm3495_vm0, %v3494_v1  ;;  %s3436_s9 = scalar_lea.vmem %s3435_s8, 32  ;;  %p3437_p0 = scmp.lt.s32.totalorder %s2747_s30, %s3435_s8 }
0x151d   : > { %3241 = vmatmul.mubr.msk.bf16.vlgmr.msra.gmra.mrb[40].mxu0 %vm727_vm1, %v2031_v56  ;;  %p3438_p1 = scmp.lt.s32.totalorder %s3436_s9, %s3430_s2 }
0x151e   : > { %3254 = vmatprep.mubr.msk.bf16.mxu0 %vm3495_vm0, %v3494_v1 }
0x151f   : > { %p3439_p2 = por %p3438_p1, %p3437_p0 }
0x1521   : > { %p3440_p3 = pnand %p3439_p2, %p3433_p13 }
0x15ee   : > { %v2132_v4 = vpop.f32.mrb[36].mxu1 }
0x15ef   : > { %v3250_v58 = vpop.f32.mrb[37].mxu1 }
0x15f0   : > { %v2078_v62 = vpop.f32.mrb[40].mxu0  ;;  %v2135_v63 = vpop.f32.mrb[38].mxu1  ;;  %v3388_v58 = vld [vmem:[%s4179_s15] sm:$0xff]  }
0x15f1   : > { %v3242_v2 = vpop.f32.mrb[41].mxu0  ;;  %v3251_v3 = vpop.f32.mrb[39].mxu1  ;;  %v2079_v5 = vadd.f32 %v2078_v62, %v2039_v59  ;;  %v3389_v62 = vld [vmem:[%s4179_s15 + $0x8] sm:$0xff]  }
0x15f2   : > { %v2081_v60 = vpop.f32.mrb[42].mxu0 }
0x15f3   : > { %v2082_v61 = vadd.f32 %v2081_v60, %v2039_v59  ;;  %v3243_v6 = vpop.f32.mrb[43].mxu0 }
0x15f5   : > { %v2140_v7 = vpack.c.bf16 %v2082_v61, %v2079_v5 }
0x15f7   : > { %v2145_v9 = vsel %vm727_vm1, %v2140_v7, 0  ;;  %v3390_v7 = vld [vmem:[%s4177_s13 + $0x10] sm:$0xff]  }
0x15f8   : > { %3253 = vmatpush3.bf16.xpose.msra.mxu0 %v2145_v9 }
0x15f9   : > { %3264 = vmatprep.subr.bf16.mxu0 %v3494_v1 }
0x15ff   : > { %3255 = vmatmul.mubr.msk.bf16.vlgmr.msra.gmra.mrb[44].mxu0 %vm727_vm1, %v2139_v12 }
0x1600   : > { %3268 = vmatprep.mubr.msk.bf16.mxu0 %vm3495_vm0, %v3494_v1  ;;  %3265 = vmatpush3.bf16.msra.mxu0 %v3384_v26 }
0x1601   : > { %3266 = vmatprep.subr.bf16.mxu0 %v3494_v1 }
0x1604   : > { %3267 = vmatpush3.bf16.msra.mxu0 %v3385_v31 }
0x1605   : > { %3280 = vmatprep.subr.bf16.mxu0 %v3494_v1 }
0x16d2   : > { %v2181_v13 = vpop.f32.mrb[44].mxu0 }
0x16d3   : > { %v3256_v14 = vpop.f32.mrb[45].mxu0  ;;  %v2187_v15 = vsel %vm1215_vm7, %v2181_v13, -inf }
0x16d4   : > { %2188 = vmax.xlane.f32.xlu1 %v2187_v15  ;;  %v2184_v16 = vpop.f32.mrb[46].mxu0  ;;  %v3393_v14 = vld [vmem:[%s4181_s17 + $0x8] sm:$0xff]   ;;  %v2406_v15 = vld [vmem:[%s4180_s16] sm:$0x1] }
0x16d5   : > { %v3257_v10 = vpop.f32.mrb[47].mxu0 }
0x16e5   : > { %2092 = vrot.lane.b32.xlu1 %v3955_v0, %s3497_s26  ;;  %s4235_s26 = sld [smem:[#allocation23_spill]] }
0x16eb   : > { %s4236_s1 = smov %s4235_s26  ;;  %s4120_s6 = scalar_lea.hbm %s4235_s26, %s3003_s5 }
0x1761   : > { %v2189_v18 = vpop.xlane.xlu1 %2188 }
0x1762   : > { %v2190_v8 = vsub.f32 %v2181_v13, %v2189_v18  ;;  %v3392_v13 = vld [vmem:[%s4181_s17] sm:$0xff]  }
0x1764   : > { %v2191_v19 = vmul.f32 1.442695, %v2190_v8 }
0x1765   : > { %v2093_v20 = vpop.permute.xlu1 %2092 }
0x1766   : > { %3424 = vpow2.f32 %v2191_v19  ;;  %v2133_v21 = vadd.f32 %v2132_v4, %v2093_v20  ;;  %v2136_v22 = vadd.f32 %v2135_v63, %v2093_v20  ;;  %v2344_v63 = vld [vmem:[%s4178_s14] sm:$0x1] }
0x1768   : > { %v2199_v23 = vpack.c.bf16 %v2136_v22, %v2133_v21  ;;  %v3394_v21 = vld [vmem:[%s4179_s15 + $0x10] sm:$0xff]  }
0x176a   : > { %3259 = vmatpush3.bf16.msra.mxu1 %v2199_v23  ;;  %v2983_v23 = vld [vmem:[%s4178_s14 + $0x1] sm:$0x1] }
0x176b   : > { %3272 = vmatprep.subr.bf16.mxu1 %v3494_v1 }
0x1770   : > { %v3425_v24 = vpop.eup %3424 }
0x1771   : > { %v2193_v25 = vsel %vm1215_vm7, %v3425_v24, 0.0 }
0x1772   : > { %2194 = vadd.xlane.f32.xlu0 %v2193_v25  ;;  %v3395_v25 = vld [vmem:[%s4179_s15 + $0x18] sm:$0xff]  }
0x17ff   : > { %v2195_v0 = vpop.xlane.xlu0 %2194 }
0x1800   : > { %3426 = vrcp.f32 %v2195_v0 }
0x180a   : > { %v3427_v27 = vpop.eup %3426 }
0x180b   : > { %v2197_v29 = vmul.f32 %v3427_v27, %v3425_v24 }
0x180d   : > { %v2198_v30 = vpack.c.bf16 %v2197_v29, %v2197_v29 }
0x180f   : > { %3261 = vmatmul.mubr.msk.bf16.vlgmr.msra.gmra.mrb[40].mxu1 %vm1229_vm8, %v2198_v30 }
0x1810   : > { %3276 = vmatprep.mubr.msk.bf16.mxu1 %vm3495_vm0, %v3494_v1  ;;  %3273 = vmatpush3.bf16.msra.mxu1 %v3386_v48 }
0x1811   : > { %3274 = vmatprep.subr.bf16.mxu1 %v3494_v1 }
0x18e2   : > { %v2237_v32 = vpop.f32.mrb[40].mxu1 }
0x18e3   : > { %v2243_v33 = vpack.c.bf16 %v2237_v32, %v2237_v32  ;;  %v3262_v57 = vpop.f32.mrb[41].mxu1  ;;  %v3396_v32 = vld [vmem:[%s4181_s17 + $0x10] sm:$0xff]  }
0x18e4   : > { %v2240_v34 = vpop.f32.mrb[42].mxu1  ;;  %v2468_v57 = vld [vmem:[%s4182_s18] sm:$0x1] }
0x18e5   : > { %v3263_v59 = vpop.f32.mrb[43].mxu1  ;;  %3269 = vmatmul.mubr.msk.bf16.vlgmr.msra.gmra.mrb[48].mxu0 %vm727_vm1, %v2243_v33  ;;  %v3397_v33 = vld [vmem:[%s4181_s17 + $0x18] sm:$0xff]  }
0x18e6   : > { %3284 = vmatprep.mubr.msk.bf16.mxu0 %vm3495_vm0, %v3494_v1  ;;  %3281 = vmatpush3.bf16.msra.mxu0 %v3388_v58 }
0x18e7   : > { %3282 = vmatprep.subr.bf16.mxu0 %v3494_v1 }
0x18ea   : > { %3283 = vmatpush3.bf16.msra.mxu0 %v3389_v62 }
0x18eb   : > { %3296 = vmatprep.subr.bf16.mxu0 %v3494_v1 }
0x19b8   : > { %v2299_v36 = vpop.f32.mrb[48].mxu0 }
0x19b9   : > { %v2300_v37 = vadd.f32 %v2962_v35, %v2299_v36  ;;  %v3270_v38 = vpop.f32.mrb[49].mxu0 }
0x19ba   : > { %v2302_v39 = vpop.f32.mrb[50].mxu0 }
0x19bb   : > { %v3271_v40 = vpop.f32.mrb[51].mxu0  ;;  %v2305_v41 = vadd.f32 %v2300_v37, %v3901_v17  ;;  %v3387_v17 = vld [vmem:[%s4177_s13 + $0x8] sm:$0xff]  }
0x19bc   : > { %3275 = vmatpush3.bf16.msra.mxu1 %v3387_v17 }
0x19bd   : > { %v2310_v42 = vsel %vm952_vm6, %v2305_v41, 0.0  ;;  %3288 = vmatprep.subr.bf16.mxu1 %v3494_v1 }
0x19be   : > { %2311 = vadd.xlane.f32.xlu0 %v2310_v42 }
0x1a4b   : > { %v2312_v43 = vpop.xlane.xlu0 %2311 }
0x1a4c   : > { %v2313_v44 = vmul.f32 0.03125, %v2312_v43 }
0x1a4e   : > { %v2314_v45 = vsub.f32 %v2305_v41, %v2313_v44 }
0x1a50   : > { %v2315_v46 = vmul.f32 %v2314_v45, %v2314_v45 }
0x1a52   : > { %v2316_v47 = vsel %vm952_vm6, %v2315_v46, 0.0 }
0x1a53   : > { %2317 = vadd.xlane.f32.xlu0 %v2316_v47 }
0x1ae0   : > { %v2318_v49 = vpop.xlane.xlu0 %2317 }
0x1ae1   : > { %v2319_v50 = vmul.f32 0.03125, %v2318_v49 }
0x1ae3   : > { %v2320_v51 = vadd.f32 1e-05, %v2319_v50 }
0x1ae5   : > { %3428 = vrsqrt.f32 %v2320_v51 }
0x1aef   : > { %v3429_v28 = vpop.eup %3428 }
0x1af0   : > { %v2322_v53 = vmul.f32 %v3429_v28, %v2314_v45 }
0x1af2   : > { %v2329_v55 = vmul.f32 %v2968_v52, %v2322_v53 }
0x1af4   : > { %v2336_v56 = vadd.f32 %v2969_v54, %v2329_v55 }
0x1af6   : > { %v2343_v4 = vpack.c.bf16 %v2336_v56, %v2336_v56 }
0x1af8   : > { %3277 = vmatmul.mubr.msk.bf16.vlgmr.msra.gmra.mrb[44].mxu1 %vm727_vm1, %v2343_v4  ;;  %v2533_v12 = vshrl.u32 %v2343_v4, 16 }
0x1af9   : > { %3292 = vmatprep.mubr.msk.bf16.mxu1 %vm3495_vm0, %v3494_v1  ;;  %3289 = vmatpush3.bf16.msra.mxu1 %v3392_v13 }
0x1afa   : > { %3290 = vmatprep.subr.bf16.mxu1 %v3494_v1 }
0x1afd   : > { %3291 = vmatpush3.bf16.msra.mxu1 %v3393_v14 }
0x1afe   : > { %3304 = vmatprep.subr.bf16.mxu1 %v3494_v1 }
0x1bcb   : > { %v2394_v2 = vpop.f32.mrb[44].mxu1 }
0x1bcc   : > { %v2395_v3 = vadd.f32 %v2394_v2, %v2344_v63  ;;  %v3278_v60 = vpop.f32.mrb[45].mxu1 }
0x1bcd   : > { %v2397_v5 = vpop.f32.mrb[46].mxu1 }
0x1bce   : > { %v2400_v61 = vmax.f32 %v2395_v3, 0.0  ;;  %v3279_v6 = vpop.f32.mrb[47].mxu1 }
0x1bd0   : > { %v2405_v9 = vpack.c.bf16 %v2400_v61, %v2400_v61 }
0x1bd2   : > { %3285 = vmatmul.mubr.msk.bf16.vlgmr.msra.gmra.mrb[52].mxu0 %vm727_vm1, %v2405_v9 }
0x1bd3   : > { %3297 = vmatpush3.bf16.msra.mxu0 %v3390_v7  ;;  %3300 = vmatprep.mubr.msk.bf16.mxu0 %vm3495_vm0, %v3494_v1 }
0x1bd4   : > { %3298 = vmatprep.subr.bf16.mxu0 %v3494_v1 }
0x1bd7   : > { %3299 = vmatpush3.bf16.msra.mxu0 %v3391_v11 }
0x1bd8   : > { %3312 = vmatprep.subr.bf16.mxu0 %v3494_v1 }
0x1bda   : > { %3301 = vmatmul.mubr.msk.bf16.vlgmr.msra.gmra.mrb[56].mxu0 %vm727_vm1, %v2533_v12 }
0x1bdb   : > { %3316 = vmatprep.mubr.msk.bf16.mxu0 %vm3495_vm0, %v3494_v1  ;;  %3313 = vmatpush3.bf16.msra.mxu0 %v3396_v32 }
0x1bdc   : > { %3314 = vmatprep.subr.bf16.mxu0 %v3494_v1 }
0x1bdf   : > { %3315 = vmatpush3.bf16.msra.mxu0 %v3397_v33 }
0x1ca5   : > { %v2456_v16 = vpop.f32.mrb[52].mxu0 }
0x1ca6   : > { %v2457_v10 = vadd.f32 %v2456_v16, %v2406_v15  ;;  %v3286_v18 = vpop.f32.mrb[53].mxu0 }
0x1ca7   : > { %v2459_v8 = vpop.f32.mrb[54].mxu0 }
0x1ca8   : > { %v2462_v19 = vmax.f32 %v2457_v10, 0.0  ;;  %v3287_v20 = vpop.f32.mrb[55].mxu0 }
0x1caa   : > { %v2467_v22 = vpack.c.bf16 %v2462_v19, %v2462_v19 }
0x1cac   : > { %3293 = vmatmul.mubr.msk.bf16.vlgmr.msra.gmra.mrb[48].mxu1 %vm727_vm1, %v2467_v22 }
0x1cad   : > { %v2584_v24 = vpop.f32.mrb[56].mxu0  ;;  %3305 = vmatpush3.bf16.msra.mxu1 %v3394_v21  ;;  %3308 = vmatprep.mubr.msk.bf16.mxu1 %vm3495_vm0, %v3494_v1 }
0x1cae   : > { %v2585_v26 = vadd.f32 %v2983_v23, %v2584_v24  ;;  %v3302_v0 = vpop.f32.mrb[57].mxu0  ;;  %3306 = vmatprep.subr.bf16.mxu1 %v3494_v1  ;;  %v2991_v1 = vld [vmem:[%s4180_s16 + $0x1] sm:$0x1] }
0x1caf   : > { %v2587_v27 = vpop.f32.mrb[58].mxu0 }
0x1cb0   : > { %v2590_v29 = vmax.f32 %v2585_v26, 0.0  ;;  %v3303_v30 = vpop.f32.mrb[59].mxu0 }
0x1cb1   : > { %3307 = vmatpush3.bf16.msra.mxu1 %v3395_v25 }
0x1cb2   : > { %v2596_v31 = vpack.c.bf16 %v2590_v29, %v2590_v29 }
0x1cb4   : > { %3309 = vmatmul.mubr.msk.bf16.vlgmr.msra.gmra.mrb[52].mxu1 %vm727_vm1, %v2596_v31 }
0x1d7f   : > { %v2518_v34 = vpop.f32.mrb[48].mxu1 }
0x1d80   : > { %v2519_v59 = vadd.f32 %v2518_v34, %v2468_v57  ;;  %v3294_v35 = vpop.f32.mrb[49].mxu1 }
0x1d81   : > { %v2521_v36 = vpop.f32.mrb[50].mxu1 }
0x1d82   : > { %v3295_v37 = vpop.f32.mrb[51].mxu1  ;;  %2525 = vst.msk [vmem:[%s674_s20] sm:$0x1] %vm2524_vm10, %v2519_v59 }
0x1d87   : > { %v2648_v38 = vpop.f32.mrb[52].mxu1 }
0x1d88   : > { %v2649_v39 = vadd.f32 %v2991_v1, %v2648_v38  ;;  %v3310_v40 = vpop.f32.mrb[53].mxu1 }
0x1d89   : > { %v2651_v41 = vpop.f32.mrb[54].mxu1 }
0x1d8a   : > { %v2654_v42 = vmax.f32 %v2649_v39, 0.0  ;;  %v3311_v43 = vpop.f32.mrb[55].mxu1 }
0x1d8c   : > { %v2660_v44 = vpack.c.bf16 %v2654_v42, %v2654_v42 }
0x1d8e   : > { %3317 = vmatmul.mubr.msk.bf16.vlgmr.msra.gmra.mrb[60].mxu0 %vm727_vm1, %v2660_v44 }
0x1d8f   : > { %3443 = shalt.err (!%p3440_p3)
}
0x1d90   : > { %s3444_s3 = scalar_lea.hbm %s4120_s6, 16  ;;  %s3448_s7 = scalar_lea.hbm %s4236_s1, 32 }
0x1d91   : > { %p3445_p4 = scmp.ne.s32.totalorder %s4120_s6, %s3444_s3  ;;  %p3449_p9 = scmp.lt.u32.totalorder %s4120_s6, %s4236_s1 }
0x1d92   : > { %p3450_p10 = scmp.lt.u32.totalorder %s3448_s7, %s3444_s3  ;;  %p3452_p12 = scmp.lt.u32.totalorder %s3444_s3, %s4120_s6 }
0x1d93   : > { %p3446_p7 = pnand %p3445_p4, %p3648_p5 }
0x1d94   : > { %p3451_p11 = por %p3450_p10, %p3449_p9 }
0x1d95   : > { %p3447_p8 = pneg %p3446_p7 }
0x1d96   : > { %p3453_p13 = por %p3452_p12, %p3451_p11 }
0x1d98   : > { %p3454_p0 = pnand %p3453_p13, %p3447_p8 }
0x1d9a   : > { %3457 = shalt.err (!%p3454_p0)
}
0x1d9b   : > { %3320 = dma.vmem_to_hbm [thread:$0]  (%p3648_p5), %s2747_s30, 16, %s4120_s6, %s2728_s0   ;;  %v2999_v45 = vld [vmem:[%s4182_s18 + $0x1] sm:$0x1] }
0x1d9c   : > { %s4237_s2 = sld [smem:[#allocation22_spill]] }
0x1da2   : > { %s691_s29 = scalar_lea.vmem %s4237_s2, %s3673_s4 }
0x1e61   : > { %v2712_v46 = vpop.f32.mrb[60].mxu0 }
0x1e62   : > { %v2713_v47 = vadd.f32 %v2999_v45, %v2712_v46  ;;  %v3318_v48 = vpop.f32.mrb[61].mxu0 }
0x1e63   : > { %v2715_v17 = vpop.f32.mrb[62].mxu0 }
0x1e64   : > { %2718 = vst.msk [vmem:[%s691_s29] sm:$0x1] %vm2524_vm10, %v2713_v47  ;;  %v3319_v49 = vpop.f32.mrb[63].mxu0 }
0x1e65 PF: > { %s4238_s27 = sld [smem:[#allocation7_spill]]  ;;  %s4239_s3 = sld [smem:[#allocation5_spill]] }
0x1e6b   : > { %p3326_p5 = scmp.ge.s32.totalorder %s4238_s27, 2  ;;  %s2772_s6 = sand.u32 1, %s4239_s3  }
0x1e6c   : > { %s2773_s30 = scalar_lea.sflag [#allocation3], %s2772_s6 }
0x1e6d   : > { %p3323_p1 = pnand %p3326_p5, %p3652_p6 }
0x1e6f   : > { %3475 = dma.done.wait (!%p3323_p1), %s2773_s30, 16  }
0x1e70   : > { %3477 = vsyncadd (!%p3323_p1), %s2773_s30, 4294967280  ;;  %s4241_s27 = sld [smem:[#allocation8_spill]]  ;;  %s4242_s4 = sld [smem:[#allocation6_spill]] }
0x1e71   : > { %s4243_s26 = sld [smem:[#allocation9_spill]]  ;;  %s4244_s2 = smov %s3484_s25 }
0x1e76   : > { %p32_p2 = scmp.ge.s32.totalorder %s4241_s27, 4   ;;  %s4245_s25 = smov %s4242_s4 }
0x1e78   :  { %34 = sbr.rel (!%p32_p2) target bundleno = 16 (0x10), region = 184 }
0x1e7f   :  { %2777 = vsyncpa [#allocation3], 1 }
0x1e80   :  { %2779 = vsyncpa [#allocation3 + $0x1], 1 }

// kernel: _medsam_forward.8
= control target key start
LH: loop header
LB: loop body
LE: loop exit
PB: predicated region body
PF: predicated region fallthrough
CT: control target
= control target key end

     0   :  { %s499_s12 = smov 0   ;;  %s603_s0 = inlined_call_operand.vmem [shape: f32[2,64,8], index: 0, kind: input, shape index: {}]   ;;  %s604_s1 = inlined_call_operand.vmem [shape: bf16[8,16], index: 1, kind: input, shape index: {}]   ;;  %s605_s2 = inlined_call_operand.vmem [shape: f32[1,16], index: 2, kind: input, shape index: {}]   ;;  %s606_s3 = inlined_call_operand.vmem [shape: f32[2,64,16], index: 3, kind: output, shape index: {}]  }
   0x1 LB: > { %s410_s13 = sadd.s32 4294967295, %s477_s12   ;;  %p414_p0 = scmp.ge.s32.totalorder %s477_s12, 1  ;;  %s477_s12 = sphi %s499_s12, %s13_s12  }
   0x2   : > { %p137_p1 = scmp.lt.s32.totalorder %s477_s12, 3 }
   0x4   : > { %p138_p2 = pnand %p414_p0, %p137_p1 }
   0x5   : > { %v180_v0 = vld [vmem:[%s604_s1] sm:$0xf] (!%p138_p2)  ;;  %vm205_vm0 = vcmask (!%p138_p2), 1043456   ;;  %p161_p3 = scmp.lt.s32.totalorder (!%p138_p2), %s410_s13, 1  ;;  %vm192_vm1 = vcmask (!%p138_p2), 64512   ;;  %vm346_vm2 = vcmask (!%p138_p2), 130048  }
   0x6   : > { %141 = sbr.rel (%p138_p2) target bundleno = 269 (0x10d), region = 32  ;;  %445 = vmatprep.subr.msk.bf16.mxu0 (!%p138_p2), %vm205_vm0, %v180_v0  ;;  %446 = vmatprep.subr.msk.bf16.mxu1 (!%p138_p2), %vm205_vm0, %v180_v0  ;;  %v207_v1 = vsel (!%p138_p2), %vm205_vm0, %v180_v0, 0  ;;  %v419_v14 = vld [vmem:[%s605_s2] ss:$0 sm:$0xff] (!%p138_p2) }
   0x7   : > { %434 = vmatpush3.bf16.msra.mxu0 (!%p138_p2), %v207_v1  ;;  %444 = vmatpush3.bf16.msra.mxu1 (!%p138_p2), %v207_v1 }
   0xd   : > { %s608_s13 = smov (!%p161_p3, %s410_s13), 1 }
   0xe   : > { %s426_s16 = sshll.u32 %s608_s13, 6 }
   0xf   : > { %s165_s19 = scalar_lea.vmem %s603_s0, %s426_s16  ;;  %s574_s24 = scalar_lea.vmem %s606_s3, %s426_s16 }
  0x10   : > { %v172_v2 = vld [vmem:[%s165_s19] sm:$0xff]  ;;  %v173_v3 = vld [vmem:[%s165_s19 + $0x8] sm:$0xff]  ;;  %v174_v7 = vld [vmem:[%s165_s19 + $0x10] sm:$0xff] }
  0x11   : > { %v176_v4 = vld [vmem:[%s165_s19 + $0x20] sm:$0xff]  ;;  %v181_v5 = vpack.c.bf16 %v173_v3, %v172_v2  ;;  %v177_v6 = vld [vmem:[%s165_s19 + $0x28] sm:$0xff]  ;;  %v175_v8 = vld [vmem:[%s165_s19 + $0x18] sm:$0xff] }
  0x12   : > { %v183_v9 = vpack.c.bf16 %v177_v6, %v176_v4  ;;  %v182_v10 = vpack.c.bf16 %v175_v8, %v174_v7  ;;  %v178_v11 = vld [vmem:[%s165_s19 + $0x30] sm:$0xff]  ;;  %v179_v12 = vld [vmem:[%s165_s19 + $0x38] sm:$0xff] }
  0x13   : > { %435 = vmatprep.mubr.msk.bf16.mxu0 %vm192_vm1, %v181_v5  ;;  %v184_v13 = vpack.c.bf16 %v179_v12, %v178_v11 }
  0x14   : > { %439 = vmatprep.mubr.msk.bf16.mxu1 %vm192_vm1, %v183_v9  ;;  %436 = vmatmul.mubr.msk.bf16.vlgmr.msra.gmra.mrb[0].mxu0 %vm192_vm1, %v182_v10 }
  0x15   : > { %440 = vmatmul.mubr.msk.bf16.vlgmr.msra.gmra.mrb[0].mxu1 %vm192_vm1, %v184_v13 }
  0xe7   : > { %v437_v15 = vpop.f32.mrb[0].mxu0 }
  0xe8   : > { %v521_v16 = vadd.f32 %v437_v15, %v419_v14  ;;  %v441_v17 = vpop.f32.mrb[0].mxu1  ;;  %v243_v18 = vpop.f32.mrb[1].mxu0 }
  0xe9   : > { %v523_v19 = vadd.f32 %v441_v17, %v419_v14  ;;  %v525_v20 = vadd.f32 %v419_v14, %v243_v18  ;;  %v259_v21 = vpop.f32.mrb[1].mxu1  ;;  %v438_v22 = vpop.f32.mrb[2].mxu0 }
  0xea   : > { %v276_v23 = vmul.f32 %v521_v16, %v521_v16  ;;  %v529_v24 = vadd.f32 %v419_v14, %v259_v21  ;;  %v531_v25 = vadd.f32 %v438_v22, %v419_v14  ;;  %v442_v26 = vpop.f32.mrb[2].mxu1  ;;  %v246_v27 = vpop.f32.mrb[3].mxu0 }
  0xeb   : > { %v280_v28 = vmul.f32 %v523_v19, %v523_v19  ;;  %v274_v29 = vmul.f32 %v525_v20, %v525_v20  ;;  %v537_v30 = vadd.f32 %v442_v26, %v419_v14  ;;  %v539_v31 = vadd.f32 %v419_v14, %v246_v27  ;;  %v262_v32 = vpop.f32.mrb[3].mxu1 }
  0xec   : > { %v284_v33 = vmul.f32 %v276_v23, %v521_v16  ;;  %v278_v34 = vmul.f32 %v529_v24, %v529_v24  ;;  %v277_v35 = vmul.f32 %v531_v25, %v531_v25  ;;  %v546_v36 = vadd.f32 %v419_v14, %v262_v32 }
  0xed   : > { %v288_v37 = vmul.f32 %v280_v28, %v523_v19  ;;  %v282_v38 = vmul.f32 %v274_v29, %v525_v20  ;;  %v281_v39 = vmul.f32 %v537_v30, %v537_v30  ;;  %v275_v40 = vmul.f32 %v539_v31, %v539_v31 }
  0xee   : > { %v292_v41 = vmul.f32 0.044715, %v284_v33  ;;  %v286_v42 = vmul.f32 %v278_v34, %v529_v24  ;;  %v285_v43 = vmul.f32 %v277_v35, %v531_v25  ;;  %v279_v44 = vmul.f32 %v546_v36, %v546_v36 }
  0xef   : > { %v296_v45 = vmul.f32 0.044715, %v288_v37  ;;  %v290_v46 = vmul.f32 0.044715, %v282_v38  ;;  %v289_v47 = vmul.f32 %v281_v39, %v537_v30  ;;  %v283_v48 = vmul.f32 %v275_v40, %v539_v31 }
  0xf0   : > { %v300_v49 = vadd.f32 %v292_v41, %v521_v16  ;;  %v294_v50 = vmul.f32 0.044715, %v286_v42  ;;  %v293_v51 = vmul.f32 0.044715, %v285_v43  ;;  %v287_v52 = vmul.f32 %v279_v44, %v546_v36 }
  0xf1   : > { %v304_v53 = vadd.f32 %v296_v45, %v523_v19  ;;  %v298_v54 = vadd.f32 %v290_v46, %v525_v20  ;;  %v297_v55 = vmul.f32 0.044715, %v289_v47  ;;  %v291_v56 = vmul.f32 0.044715, %v283_v48 }
  0xf2   : > { %v308_v57 = vmul.f32 0.7978846, %v300_v49  ;;  %v302_v58 = vadd.f32 %v294_v50, %v529_v24  ;;  %v301_v59 = vadd.f32 %v293_v51, %v531_v25  ;;  %v295_v60 = vmul.f32 0.044715, %v287_v52 }
  0xf3   : > { %v312_v61 = vmul.f32 0.7978846, %v304_v53  ;;  %v306_v62 = vmul.f32 0.7978846, %v298_v54  ;;  %v305_v63 = vadd.f32 %v297_v55, %v537_v30  ;;  %v299_v0 = vadd.f32 %v291_v56, %v539_v31 }
  0xf4   : > { %455 = vtanh.f32 %v308_v57  ;;  %v310_v1 = vmul.f32 0.7978846, %v302_v58  ;;  %v309_v2 = vmul.f32 0.7978846, %v301_v59  ;;  %v303_v3 = vadd.f32 %v295_v60, %v546_v36 }
  0xf5   : > { %457 = vtanh.f32 %v312_v61  ;;  %v313_v4 = vmul.f32 0.7978846, %v305_v63  ;;  %v307_v5 = vmul.f32 0.7978846, %v299_v0 }
  0xf6   : > { %459 = vtanh.f32 %v306_v62  ;;  %v311_v6 = vmul.f32 0.7978846, %v303_v3 }
  0xf7   : > { %461 = vtanh.f32 %v310_v1 }
  0xf8   : > { %463 = vtanh.f32 %v309_v2 }
  0xf9   : > { %465 = vtanh.f32 %v313_v4 }
  0xfa   : > { %467 = vtanh.f32 %v307_v5 }
  0xfb   : > { %469 = vtanh.f32 %v311_v6 }
  0xfe   : > { %v456_v7 = vpop.eup %455 }
  0xff   : > { %v458_v8 = vpop.eup %457  ;;  %v324_v9 = vadd.f32 1.0, %v456_v7 }
 0x100   : > { %v460_v10 = vpop.eup %459  ;;  %v328_v11 = vadd.f32 1.0, %v458_v8 }
 0x101   : > { %v462_v12 = vpop.eup %461  ;;  %v332_v13 = vmul.f32 0.5, %v324_v9  ;;  %v322_v14 = vadd.f32 1.0, %v460_v10 }
 0x102   : > { %v464_v15 = vpop.eup %463  ;;  %v336_v17 = vmul.f32 0.5, %v328_v11  ;;  %v326_v18 = vadd.f32 1.0, %v462_v12 }
 0x103   : > { %v466_v21 = vpop.eup %465  ;;  %v340_v22 = vmul.f32 %v332_v13, %v521_v16  ;;  %v330_v23 = vmul.f32 0.5, %v322_v14  ;;  %v325_v26 = vadd.f32 1.0, %v464_v15 }
 0x104   : > { %v468_v27 = vpop.eup %467  ;;  %v344_v28 = vmul.f32 %v336_v17, %v523_v19  ;;  %v334_v29 = vmul.f32 0.5, %v326_v18  ;;  %v329_v32 = vadd.f32 1.0, %v466_v21 }
 0x105   : > { %v470_v33 = vpop.eup %469  ;;  %349 = vst.msk [vmem:[%s574_s24 + $0x10] sm:$0xff] %vm346_vm2, %v340_v22  ;;  %v338_v34 = vmul.f32 %v330_v23, %v525_v20  ;;  %v333_v35 = vmul.f32 0.5, %v325_v26  ;;  %v323_v37 = vadd.f32 1.0, %v468_v27 }
 0x106   : > { %353 = vst.msk [vmem:[%s574_s24 + $0x30] sm:$0xff] %vm346_vm2, %v344_v28  ;;  %v342_v16 = vmul.f32 %v334_v29, %v529_v24  ;;  %v337_v38 = vmul.f32 0.5, %v329_v32  ;;  %v327_v39 = vadd.f32 1.0, %v470_v33 }
 0x107   : > { %347 = vst.msk [vmem:[%s574_s24] sm:$0xff] %vm346_vm2, %v338_v34  ;;  %v341_v19 = vmul.f32 %v333_v35, %v531_v25  ;;  %v331_v40 = vmul.f32 0.5, %v323_v37 }
 0x108   : > { %351 = vst.msk [vmem:[%s574_s24 + $0x20] sm:$0xff] %vm346_vm2, %v342_v16  ;;  %v345_v41 = vmul.f32 %v337_v38, %v537_v30  ;;  %v335_v20 = vmul.f32 0.5, %v327_v39 }
 0x109   : > { %350 = vst.msk [vmem:[%s574_s24 + $0x18] sm:$0xff] %vm346_vm2, %v341_v19  ;;  %v339_v42 = vmul.f32 %v331_v40, %v539_v31 }
 0x10a   : > { %354 = vst.msk [vmem:[%s574_s24 + $0x38] sm:$0xff] %vm346_vm2, %v345_v41  ;;  %v343_v24 = vmul.f32 %v335_v20, %v546_v36 }
 0x10b   : > { %348 = vst.msk [vmem:[%s574_s24 + $0x8] sm:$0xff] %vm346_vm2, %v339_v42 }
 0x10c   : > { %352 = vst.msk [vmem:[%s574_s24 + $0x28] sm:$0xff] %vm346_vm2, %v343_v24 }
 0x10d PF: > { %s13_s12 = sadd.s32 1, %s477_s12  }
 0x10e   : > { %p10_p4 = scmp.ge.s32.totalorder %s13_s12, 4  }
 0x110   :  { %12 = sbr.rel (!%p10_p4) target bundleno = 1 (0x1), region = 62 }

// kernel: _medsam_forward.9
= control target key start
LH: loop header
LB: loop body
LE: loop exit
PB: predicated region body
PF: predicated region fallthrough
CT: control target
= control target key end

     0   :  { %9 = vsyncpa [#allocation3], 0  ;;  %s1396_s0 = inlined_call_operand.vmem [shape: f32[2,1,4], index: 0, kind: input, shape index: {}]   ;;  %s1397_s1 = inlined_call_operand.vmem [shape: f32[2,16,16,4], index: 1, kind: input, shape index: {}]   ;;  %s1398_s2 = inlined_call_operand.vmem [shape: f32[32,16], index: 2, kind: input, shape index: {}]   ;;  %s1399_s3 = inlined_call_operand.vmem [shape: f32[16,32], index: 3, kind: input, shape index: {}]   ;;  %s1400_s4 = inlined_call_operand.hbm [shape: f32[2,32,32], index: 4, kind: output, shape index: {}]  }
   0x1   :  { %11 = vsyncpa [#allocation3 + $0x1], 0  ;;  %s1068_s15 = smov 0   ;;  %s1070_s16 = smov 0  }
   0x2   :  { %s1072_s17 = smov 0   ;;  %s1074_s18 = smov 0  }
   0x3 LB: > { %s1089_s19 = sadd.s32 4294967295, %s1038_s18   ;;  %s872_s20 = sadd.s32 4294967294, %s1038_s18   ;;  %s1038_s18 = sphi %s1074_s18, %s1406_s18   ;;  %s1034_s17 = sphi %s1072_s17, %s1405_s17   ;;  %s1030_s16 = sphi %s1070_s16, %s1404_s16   ;;  %s1026_s15 = sphi %s1068_s15, %s1403_s15  }
   0x4   : > { %s1093_s21 = sadd.s32 1, %s1038_s18   ;;  %s118_s22 = sadd.s32 1, %s1034_s17 }
   0x5   : > { %s115_s23 = ssub.s32 %s1038_s18, %s1093_s21  ;;  %p128_p0 = scmp.ne.s32.totalorder %s1034_s17, %s1030_s16 }
   0x6   : > { %p116_p1 = scmp.eq.s32.totalorder %s115_s23, 0  ;;  %p129_p2 = scmp.eq.s32.totalorder %s1089_s19, 1 }
   0x7   : > { %p134_p3 = scmp.ne.s32.totalorder %s1030_s16, %s1026_s15  ;;  %p135_p4 = scmp.eq.s32.totalorder %s872_s20, 1 }
   0x8   : > { %s1104_s24 = scalar_select %p116_p1, %s1034_s17, %s118_s22  }
   0x9   : > { %p1106_p5 = por %p129_p2, %p128_p0  ;;  %p1110_p6 = por %p135_p4, %p134_p3 }
   0xa   : > { %p875_p7 = scmp.ge.s32.totalorder %s1038_s18, 1  ;;  %p173_p8 = scmp.lt.s32.totalorder %s1038_s18, 3 }
   0xc   : > { %p174_p9 = pnand %p875_p7, %p173_p8 }
   0xd   : > { %p202_p10 = scmp.lt.s32.totalorder (!%p174_p9), %s1089_s19, 1  ;;  %vm281_vm0 = vcmask (!%p174_p9), 31744   ;;  %vm585_vm1 = vcmask (!%p174_p9), 130048   ;;  %vm425_vm2 = vcmask (!%p174_p9), 130112   ;;  %vm562_vm3 = vcmask (!%p174_p9), 1041409   ;;  %s1040_s13 = smov (!%p174_p9), [#allocation2]  }
   0xe   : > { %177 = sbr.rel (%p174_p9) target bundleno = 687 (0x2af), region = 36  ;;  %vm564_vm4 = vcmask (!%p174_p9), 1042434   ;;  %vm566_vm5 = vcmask (!%p174_p9), 1043459   ;;  %vm568_vm6 = vcmask (!%p174_p9), 1044484   ;;  %vm570_vm7 = vcmask (!%p174_p9), 1045509   ;;  %s980_s14 = sshll.u32 (!%p174_p9), %s1040_s13, 4  ;;  %s981_s14 = int_to_ptr.vmem [resolvable:$false] %s980_s14 }
   0xf   : > { %vm572_vm8 = vcmask (!%p174_p9), 1046534   ;;  %vm574_vm9 = vcmask (!%p174_p9), 1047559   ;;  %vm782_vm10 = vcmask (!%p174_p9), 261120   ;;  %s982_s20 = scalar_lea.vmem (!%p174_p9), %s981_s14, 1024 }
  0x15   : > { %s203_s27 = scalar_select %p202_p10, %s1089_s19, 1 }
  0x17   : > { %s204_s30 = scalar_lea.vmem %s1396_s0, %s203_s27  ;;  %s893_s5 = sshll.u32 %s203_s27, 8 }
  0x18   : > { %s1124_s8 = scalar_lea.vmem %s1397_s1, %s893_s5  ;;  %v1126_v0 = vld [vmem:[%s204_s30] ss:$0 sm:$0xff]  ;;  %s199_s30 = sand.u32 1, %s1030_s16  }
  0x19   : > { %v212_v1 = vld [vmem:[%s1124_s8 + $0x10] sm:$0xff]  ;;  %v210_v2 = vld [vmem:[%s1124_s8] sm:$0xff]  ;;  %v213_v3 = vld [vmem:[%s1124_s8 + $0x18] sm:$0xff]  ;;  %s876_s5 = sshll.u32 %s199_s30, 5  ;;  %s1355_s12 = scalar_lea.sflag [#allocation3], %s199_s30 }
  0x1a   : > { %v251_v4 = vmul.f32 %v1126_v0, %v212_v1  ;;  %v249_v5 = vmul.f32 %v1126_v0, %v210_v2  ;;  %v252_v6 = vmul.f32 %v1126_v0, %v213_v3  ;;  %v211_v7 = vld [vmem:[%s1124_s8 + $0x8] sm:$0xff]  ;;  %v226_v10 = vld [vmem:[%s1124_s8 + $0x80] sm:$0xff]  ;;  %v229_v17 = vld [vmem:[%s1124_s8 + $0x98] sm:$0xff]  ;;  %s201_s6 = scalar_lea.vmem [#allocation2], %s876_s5 }
  0x1b   : > { %v250_v8 = vmul.f32 %v1126_v0, %v211_v7  ;;  %v227_v9 = vld [vmem:[%s1124_s8 + $0x88] sm:$0xff]  ;;  %v265_v16 = vmul.f32 %v1126_v0, %v226_v10  ;;  %v228_v18 = vld [vmem:[%s1124_s8 + $0x90] sm:$0xff]  ;;  %v268_v21 = vmul.f32 %v1126_v0, %v229_v17  ;;  %v214_v24 = vld [vmem:[%s1124_s8 + $0x20] sm:$0xff]  ;;  %s801_s7 = sshll.u32 %s201_s6, 4  ;;  %s1348_s7 = int_to_ptr.vmem [resolvable:$true] %s801_s7 }
  0x1c   : > { %v288_v11 = vsel %vm281_vm0, %v251_v4, 0.0  ;;  %v282_v12 = vsel %vm281_vm0, %v249_v5, 0.0  ;;  %v291_v13 = vsel %vm281_vm0, %v252_v6, 0.0  ;;  %v266_v15 = vmul.f32 %v1126_v0, %v227_v9  ;;  %v215_v23 = vld [vmem:[%s1124_s8 + $0x28] sm:$0xff]  ;;  %v230_v30 = vld [vmem:[%s1124_s8 + $0xa0] sm:$0xff]  ;;  %v217_v35 = vld [vmem:[%s1124_s8 + $0x38] sm:$0xff]  ;;  %p983_p0 = scmp.lt.s32.totalorder %s1348_s7, %s981_s14 }
  0x1d   : > { %289 = vadd.xlane.f32.xlu1 %v288_v11  ;;  %283 = vadd.xlane.f32.xlu0 %v282_v12  ;;  %v285_v14 = vsel %vm281_vm0, %v250_v8, 0.0  ;;  %v330_v20 = vsel %vm281_vm0, %v265_v16, 0.0  ;;  %v267_v22 = vmul.f32 %v1126_v0, %v228_v18  ;;  %v339_v25 = vsel %vm281_vm0, %v268_v21, 0.0  ;;  %v231_v29 = vld [vmem:[%s1124_s8 + $0xa8] sm:$0xff]  ;;  %v216_v36 = vld [vmem:[%s1124_s8 + $0x30] sm:$0xff]  ;;  %v233_v41 = vld [vmem:[%s1124_s8 + $0xb8] sm:$0xff] }
  0x1e   : > { %v333_v19 = vsel %vm281_vm0, %v266_v15, 0.0  ;;  %v254_v27 = vmul.f32 %v1126_v0, %v215_v23  ;;  %v253_v28 = vmul.f32 %v1126_v0, %v214_v24  ;;  %v270_v33 = vmul.f32 %v1126_v0, %v231_v29  ;;  %v232_v42 = vld [vmem:[%s1124_s8 + $0xb0] sm:$0xff]  ;;  %v219_v47 = vld [vmem:[%s1124_s8 + $0x48] sm:$0xff]  ;;  %v218_v48 = vld [vmem:[%s1124_s8 + $0x40] sm:$0xff] }
  0x1f   : > { %v336_v26 = vsel %vm281_vm0, %v267_v22, 0.0  ;;  %v269_v34 = vmul.f32 %v1126_v0, %v230_v30  ;;  %v256_v39 = vmul.f32 %v1126_v0, %v217_v35  ;;  %v255_v40 = vmul.f32 %v1126_v0, %v216_v36  ;;  %v235_v53 = vld [vmem:[%s1124_s8 + $0xc8] sm:$0xff]  ;;  %v234_v54 = vld [vmem:[%s1124_s8 + $0xc0] sm:$0xff]  ;;  %v221_v59 = vld [vmem:[%s1124_s8 + $0x58] sm:$0xff] }
  0x20   : > { %v297_v31 = vsel %vm281_vm0, %v254_v27, 0.0  ;;  %v294_v32 = vsel %vm281_vm0, %v253_v28, 0.0  ;;  %v345_v37 = vsel %vm281_vm0, %v270_v33, 0.0  ;;  %v272_v45 = vmul.f32 %v1126_v0, %v233_v41  ;;  %v220_v60 = vld [vmem:[%s1124_s8 + $0x50] sm:$0xff]  ;;  %v237_v2 = vld [vmem:[%s1124_s8 + $0xd8] sm:$0xff]  ;;  %v223_v8 = vld [vmem:[%s1124_s8 + $0x68] sm:$0xff] }
  0x21   : > { %292 = vadd.xlane.f32.xlu1 %v291_v13  ;;  %286 = vadd.xlane.f32.xlu0 %v285_v14  ;;  %v342_v38 = vsel %vm281_vm0, %v269_v34, 0.0  ;;  %v303_v43 = vsel %vm281_vm0, %v256_v39, 0.0  ;;  %v300_v44 = vsel %vm281_vm0, %v255_v40, 0.0  ;;  %v271_v46 = vmul.f32 %v1126_v0, %v232_v42  ;;  %v236_v3 = vld [vmem:[%s1124_s8 + $0xd0] sm:$0xff]  ;;  %v222_v9 = vld [vmem:[%s1124_s8 + $0x60] sm:$0xff]  ;;  %v239_v14 = vld [vmem:[%s1124_s8 + $0xe8] sm:$0xff] }
  0x22   : > { %v351_v49 = vsel %vm281_vm0, %v272_v45, 0.0  ;;  %v258_v51 = vmul.f32 %v1126_v0, %v219_v47  ;;  %v257_v52 = vmul.f32 %v1126_v0, %v218_v48  ;;  %v274_v57 = vmul.f32 %v1126_v0, %v235_v53  ;;  %v238_v15 = vld [vmem:[%s1124_s8 + $0xe0] sm:$0xff]  ;;  %v224_v21 = vld [vmem:[%s1124_s8 + $0x70] sm:$0xff] }
  0x23   : > { %v348_v50 = vsel %vm281_vm0, %v271_v46, 0.0  ;;  %v273_v58 = vmul.f32 %v1126_v0, %v234_v54  ;;  %v260_v63 = vmul.f32 %v1126_v0, %v221_v59  ;;  %v259_v1 = vmul.f32 %v1126_v0, %v220_v60  ;;  %v240_v27 = vld [vmem:[%s1124_s8 + $0xf0] sm:$0xff]  ;;  %v378_v34 = vld [vmem:[%s1398_s2] sm:$0xff] }
  0x24   : > { %v309_v55 = vsel %vm281_vm0, %v258_v51, 0.0  ;;  %v306_v56 = vsel %vm281_vm0, %v257_v52, 0.0  ;;  %v357_v61 = vsel %vm281_vm0, %v274_v57, 0.0  ;;  %v276_v6 = vmul.f32 %v1126_v0, %v237_v2  ;;  %911 = vmatprep.mubr.msk.f32.mxu0 %vm585_vm1, %v378_v34  ;;  %v683_v35 = vld [vmem:[%s1399_s3] sm:$0xff] }
  0x25   : > { %334 = vadd.xlane.f32.xlu1 %v333_v19  ;;  %331 = vadd.xlane.f32.xlu0 %v330_v20  ;;  %v354_v62 = vsel %vm281_vm0, %v273_v58, 0.0  ;;  %v315_v4 = vsel %vm281_vm0, %v260_v63, 0.0  ;;  %v312_v5 = vsel %vm281_vm0, %v259_v1, 0.0  ;;  %v275_v7 = vmul.f32 %v1126_v0, %v236_v3  ;;  %v225_v20 = vld [vmem:[%s1124_s8 + $0x78] sm:$0xff] }
  0x26   : > { %v363_v10 = vsel %vm281_vm0, %v276_v6, 0.0  ;;  %v262_v12 = vmul.f32 %v1126_v0, %v223_v8  ;;  %v261_v13 = vmul.f32 %v1126_v0, %v222_v9  ;;  %v278_v18 = vmul.f32 %v1126_v0, %v239_v14 }
  0x27   : > { %v360_v11 = vsel %vm281_vm0, %v275_v7, 0.0  ;;  %v277_v19 = vmul.f32 %v1126_v0, %v238_v15  ;;  %v264_v24 = vmul.f32 %v1126_v0, %v225_v20  ;;  %v414_v53 = vlaneseq }
  0x28   : > { %v321_v16 = vsel %vm281_vm0, %v262_v12, 0.0  ;;  %v318_v17 = vsel %vm281_vm0, %v261_v13, 0.0  ;;  %v369_v22 = vsel %vm281_vm0, %v278_v18, 0.0 }
  0x29   : > { %340 = vadd.xlane.f32.xlu1 %v339_v25  ;;  %337 = vadd.xlane.f32.xlu0 %v336_v26  ;;  %v366_v23 = vsel %vm281_vm0, %v277_v19, 0.0  ;;  %v263_v25 = vmul.f32 %v1126_v0, %v224_v21  ;;  %v241_v26 = vld [vmem:[%s1124_s8 + $0xf8] sm:$0xff]  ;;  %v327_v28 = vsel %vm281_vm0, %v264_v24, 0.0  ;;  %v417_v60 = vshrl.u32 %v414_v53, 7  ;;  %s894_s8 = sshll.u32 %s1089_s19, 9  ;;  %s976_s19 = scalar_lea.vmem %s1348_s7, 512 }
  0x2a   : > { %v280_v30 = vmul.f32 %v1126_v0, %v241_v26  ;;  %s1353_s11 = scalar_lea.hbm %s1400_s4, %s894_s8  ;;  %p977_p11 = scmp.ne.s32.totalorder %s1348_s7, %s976_s19 }
  0x2b   : > { %v324_v29 = vsel %vm281_vm0, %v263_v25, 0.0  ;;  %p984_p1 = scmp.lt.s32.totalorder %s982_s20, %s976_s19 }
  0x2c   : > { %p978_p12 = pnand %p977_p11, %p1106_p5 }
  0x2d   : > { %298 = vadd.xlane.f32.xlu1 %v297_v31  ;;  %295 = vadd.xlane.f32.xlu0 %v294_v32  ;;  %v279_v31 = vmul.f32 %v1126_v0, %v240_v27  ;;  %v375_v32 = vsel %vm281_vm0, %v280_v30, 0.0  ;;  %v684_v0 = vld [vmem:[%s1399_s3 + $0x8] sm:$0xff]  ;;  %p985_p2 = por %p984_p1, %p983_p0 }
  0x2e   : > { %v931_v36 = vpack.c.bf16 %v684_v0, %v683_v35  ;;  %p979_p13 = pneg %p978_p12 }
  0x2f   : > { %v372_v33 = vsel %vm281_vm0, %v279_v31, 0.0 }
  0x30   : > { %932 = vmatprep.subr.bf16.mxu1 %v931_v36  ;;  %p986_p3 = pnand %p985_p2, %p979_p13 }
  0x31   : > { %346 = vadd.xlane.f32.xlu1 %v345_v37  ;;  %343 = vadd.xlane.f32.xlu0 %v342_v38 }
  0x32   : > { %934 = vmatpush3.bf16.msra.mxu1 %v931_v36 }
  0x35   : > { %304 = vadd.xlane.f32.xlu1 %v303_v43  ;;  %301 = vadd.xlane.f32.xlu0 %v300_v44 }
  0x39   : > { %352 = vadd.xlane.f32.xlu1 %v351_v49  ;;  %349 = vadd.xlane.f32.xlu0 %v348_v50 }
  0x3d   : > { %310 = vadd.xlane.f32.xlu1 %v309_v55  ;;  %307 = vadd.xlane.f32.xlu0 %v306_v56  ;;  %v415_v56 = vand.u32 127, %v414_v53 }
  0x3f   : > { %v420_v59 = vadd.s32 4294967288, %v415_v56  ;;  %v1252_v1 = vsub.s32 %v415_v56, %v417_v60 }
  0x41   : > { %358 = vadd.xlane.f32.xlu1 %v357_v61  ;;  %355 = vadd.xlane.f32.xlu0 %v354_v62  ;;  %v1250_v63 = vsub.s32 %v420_v59, %v417_v60 }
  0x45   : > { %316 = vadd.xlane.f32.xlu1 %v315_v4  ;;  %313 = vadd.xlane.f32.xlu0 %v312_v5 }
  0x49   : > { %364 = vadd.xlane.f32.xlu1 %v363_v10  ;;  %361 = vadd.xlane.f32.xlu0 %v360_v11 }
  0x4d   : > { %322 = vadd.xlane.f32.xlu1 %v321_v16  ;;  %319 = vadd.xlane.f32.xlu0 %v318_v17 }
  0x51   : > { %370 = vadd.xlane.f32.xlu1 %v369_v22  ;;  %367 = vadd.xlane.f32.xlu0 %v366_v23 }
  0x55   : > { %328 = vadd.xlane.f32.xlu1 %v327_v28  ;;  %325 = vadd.xlane.f32.xlu0 %v324_v29 }
  0x59   : > { %376 = vadd.xlane.f32.xlu1 %v375_v32  ;;  %373 = vadd.xlane.f32.xlu0 %v372_v33 }
  0xaa   : > { %v290_v37 = vpop.xlane.xlu1 %289  ;;  %v284_v38 = vpop.xlane.xlu0 %283 }
  0xab   : > { %v430_v6 = vrot.slane %v290_v37, %v1252_v1  ;;  %v419_v7 = vrot.slane %v284_v38, %v1252_v1 }
  0xae   : > { %v293_v39 = vpop.xlane.xlu1 %292  ;;  %v287_v40 = vpop.xlane.xlu0 %286 }
  0xaf   : > { %v434_v4 = vrot.slane %v293_v39, %v1250_v63  ;;  %v424_v5 = vrot.slane %v287_v40, %v1250_v63 }
  0xb1   : > { %v435_v16 = vsel %vm425_vm2, %v434_v4, %v430_v6  ;;  %v426_v17 = vsel %vm425_vm2, %v424_v5, %v419_v7 }
  0xb2   : > { %v335_v41 = vpop.xlane.xlu1 %334  ;;  %v332_v42 = vpop.xlane.xlu0 %331  ;;  %v563_v22 = vsel %vm562_vm3, %v435_v16, %v426_v17 }
  0xb3   : > { %v497_v8 = vrot.slane %v335_v41, %v1250_v63  ;;  %v493_v9 = vrot.slane %v332_v42, %v1252_v1 }
  0xb5   : > { %v498_v23 = vsel %vm425_vm2, %v497_v8, %v493_v9 }
  0xb6   : > { %v341_v43 = vpop.xlane.xlu1 %340  ;;  %v338_v44 = vpop.xlane.xlu0 %337 }
  0xb7   : > { %v506_v10 = vrot.slane %v341_v43, %v1250_v63  ;;  %v502_v11 = vrot.slane %v338_v44, %v1252_v1 }
  0xb9   : > { %v507_v24 = vsel %vm425_vm2, %v506_v10, %v502_v11 }
  0xba   : > { %v299_v45 = vpop.xlane.xlu1 %298  ;;  %v296_v46 = vpop.xlane.xlu0 %295 }
  0xbb   : > { %v443_v12 = vrot.slane %v299_v45, %v1250_v63  ;;  %v439_v13 = vrot.slane %v296_v46, %v1252_v1 }
  0xbd   : > { %v444_v25 = vsel %vm425_vm2, %v443_v12, %v439_v13  ;;  %v381_v13 = vld [vmem:[%s1398_s2 + $0x18] sm:$0xff] }
  0xbe   : > { %v347_v47 = vpop.xlane.xlu1 %346  ;;  %v344_v48 = vpop.xlane.xlu0 %343 }
  0xbf   : > { %v515_v18 = vrot.slane %v347_v47, %v1250_v63  ;;  %v511_v19 = vrot.slane %v344_v48, %v1252_v1 }
  0xc1   : > { %v516_v32 = vsel %vm425_vm2, %v515_v18, %v511_v19 }
  0xc2   : > { %v305_v49 = vpop.xlane.xlu1 %304  ;;  %v302_v50 = vpop.xlane.xlu0 %301 }
  0xc3   : > { %v452_v20 = vrot.slane %v305_v49, %v1250_v63  ;;  %v448_v21 = vrot.slane %v302_v50, %v1252_v1  ;;  %v576_v49 = vsel %vm562_vm3, %v507_v24, %v498_v23  ;;  %v565_v50 = vsel %vm564_vm4, %v444_v25, %v563_v22 }
  0xc5   : > { %v453_v33 = vsel %vm425_vm2, %v452_v20, %v448_v21 }
  0xc6   : > { %v1234_v51 = vpop.xlane.xlu1 %352  ;;  %v1236_v52 = vpop.xlane.xlu0 %349  ;;  %v567_v53 = vsel %vm566_vm5, %v453_v33, %v565_v50 }
  0xc7   : > { %v524_v28 = vrot.slane %v1234_v51, %v1250_v63  ;;  %v520_v29 = vrot.slane %v1236_v52, %v1252_v1  ;;  %v577_v52 = vsel %vm564_vm4, %v516_v32, %v576_v49 }
  0xc9   : > { %v525_v45 = vsel %vm425_vm2, %v524_v28, %v520_v29 }
  0xca   : > { %v1238_v54 = vpop.xlane.xlu1 %310  ;;  %v1240_v55 = vpop.xlane.xlu0 %307  ;;  %v578_v56 = vsel %vm566_vm5, %v525_v45, %v577_v52 }
  0xcb   : > { %v461_v30 = vrot.slane %v1238_v54, %v1250_v63  ;;  %v457_v31 = vrot.slane %v1240_v55, %v1252_v1 }
  0xcd   : > { %v462_v46 = vsel %vm425_vm2, %v461_v30, %v457_v31 }
  0xce   : > { %v1242_v57 = vpop.xlane.xlu1 %358  ;;  %v1244_v58 = vpop.xlane.xlu0 %355 }
  0xcf   : > { %v533_v34 = vrot.slane %v1242_v57, %v1250_v63  ;;  %v529_v35 = vrot.slane %v1244_v58, %v1252_v1  ;;  %v569_v57 = vsel %vm568_vm6, %v462_v46, %v567_v53 }
  0xd1   : > { %v534_v51 = vsel %vm425_vm2, %v533_v34, %v529_v35 }
  0xd2   : > { %v1246_v61 = vpop.xlane.xlu1 %316  ;;  %v1248_v62 = vpop.xlane.xlu0 %313 }
  0xd3   : > { %v470_v0 = vrot.slane %v1246_v61, %v1250_v63  ;;  %v466_v36 = vrot.slane %v1248_v62, %v1252_v1  ;;  %v579_v62 = vsel %vm568_vm6, %v534_v51, %v578_v56 }
  0xd5   : > { %v471_v54 = vsel %vm425_vm2, %v470_v0, %v466_v36 }
  0xd6   : > { %v1254_v2 = vpop.xlane.xlu1 %364  ;;  %v1256_v3 = vpop.xlane.xlu0 %361  ;;  %v571_v5 = vsel %vm570_vm7, %v471_v54, %v569_v57 }
  0xd7   : > { %v542_v37 = vrot.slane %v1254_v2, %v1250_v63  ;;  %v538_v38 = vrot.slane %v1256_v3, %v1252_v1 }
  0xd9   : > { %v543_v55 = vsel %vm425_vm2, %v542_v37, %v538_v38 }
  0xda   : > { %v323_v14 = vpop.xlane.xlu1 %322  ;;  %v320_v15 = vpop.xlane.xlu0 %319  ;;  %v580_v6 = vsel %vm570_vm7, %v543_v55, %v579_v62 }
  0xdb   : > { %v479_v39 = vrot.slane %v323_v14, %v1250_v63  ;;  %v475_v40 = vrot.slane %v320_v15, %v1252_v1 }
  0xdd   : > { %v480_v58 = vsel %vm425_vm2, %v479_v39, %v475_v40 }
  0xde   : > { %v371_v26 = vpop.xlane.xlu1 %370  ;;  %v368_v27 = vpop.xlane.xlu0 %367  ;;  %v573_v8 = vsel %vm572_vm8, %v480_v58, %v571_v5 }
  0xdf   : > { %v551_v41 = vrot.slane %v371_v26, %v1250_v63  ;;  %v547_v42 = vrot.slane %v368_v27, %v1252_v1 }
  0xe1   : > { %v552_v59 = vsel %vm425_vm2, %v551_v41, %v547_v42 }
  0xe2   : > { %v329_v43 = vpop.xlane.xlu1 %328  ;;  %v326_v44 = vpop.xlane.xlu0 %325  ;;  %v581_v9 = vsel %vm572_vm8, %v552_v59, %v580_v6 }
  0xe3   : > { %v488_v47 = vrot.slane %v329_v43, %v1250_v63  ;;  %v484_v48 = vrot.slane %v326_v44, %v1252_v1 }
  0xe5   : > { %v489_v4 = vsel %vm425_vm2, %v488_v47, %v484_v48 }
  0xe6   : > { %v377_v60 = vpop.xlane.xlu1 %376  ;;  %v374_v61 = vpop.xlane.xlu0 %373  ;;  %v575_v10 = vsel %vm574_vm9, %v489_v4, %v573_v8 }
  0xe7   : > { %v560_v2 = vrot.slane %v377_v60, %v1250_v63  ;;  %v556_v3 = vrot.slane %v374_v61, %v1252_v1  ;;  %v379_v63 = vld [vmem:[%s1398_s2 + $0x8] sm:$0xff]  ;;  %v380_v1 = vld [vmem:[%s1398_s2 + $0x10] sm:$0xff] }
  0xe9   : > { %v561_v7 = vsel %vm425_vm2, %v560_v2, %v556_v3 }
  0xea   : > { %v582_v11 = vsel %vm574_vm9, %v561_v7, %v581_v9 }
  0xeb   : > { %v927_v12 = vpack.c.bf16 %v582_v11, %v575_v10 }
  0xed   : > { %928 = vmatprep.subr.bf16.mxu0 %v927_v12 }
  0xee   : > { %930 = vmatpush3.bf16.msra.mxu0 %v927_v12 }
  0xf1   : > { %912 = vmatmul.mubr.msk.f32.vlgmr.msra.gmra.mrb[0].mxu0 %vm585_vm1, %v379_v63 }
  0xf2   : > { %914 = vmatprep.mubr.msk.f32.mxu0 %vm585_vm1, %v380_v1 }
  0xf5   : > { %915 = vmatmul.mubr.msk.f32.gmra.mrb[2].mxu0 %vm585_vm1, %v381_v13 }
 0x1c4   : > { %v913_v14 = vpop.f32.mrb[0].mxu0 }
 0x1c5   : > { %v664_v15 = vpop.f32.mrb[1].mxu0 }
 0x1c6   : > { %921 = vmatprep.mubr.msk.f32.mxu1 %vm585_vm1, %v664_v15 }
 0x1c7   : > { %922 = vmatmul.mubr.msk.f32.vlgmr.msra.gmra.mrb[0].mxu1 %vm585_vm1, %v913_v14 }
 0x1c8   : > { %v916_v16 = vpop.f32.mrb[2].mxu0 }
 0x1c9   : > { %v674_v17 = vpop.f32.mrb[3].mxu0 }
 0x1ca   : > { %924 = vmatprep.mubr.msk.f32.mxu1 %vm585_vm1, %v674_v17 }
 0x1cb   : > { %925 = vmatmul.mubr.msk.f32.gmra.mrb[2].mxu1 %vm585_vm1, %v916_v16 }
 0x29a   : > { %v923_v18 = vpop.f32.mrb[0].mxu1 }
 0x29b   : > { %784 = vst.msk [vmem:[%s201_s6 + $0x8] sm:$0xff] %vm782_vm10, %v923_v18  ;;  %v763_v19 = vpop.f32.mrb[1].mxu1 }
 0x29c   : > { %783 = vst.msk [vmem:[%s201_s6] sm:$0xff] %vm782_vm10, %v763_v19 }
 0x29e   : > { %v926_v20 = vpop.f32.mrb[2].mxu1 }
 0x29f   : > { %786 = vst.msk [vmem:[%s201_s6 + $0x18] sm:$0xff] %vm782_vm10, %v926_v20  ;;  %v773_v21 = vpop.f32.mrb[3].mxu1 }
 0x2a0   : > { %785 = vst.msk [vmem:[%s201_s6 + $0x10] sm:$0xff] %vm782_vm10, %v773_v21 }
 0x2a1   : > { %989 = shalt.err (!%p986_p3)
}
 0x2a2   : > { %s990_s22 = scalar_lea.hbm %s1353_s11, 512  ;;  %s994_s28 = scalar_lea.hbm %s1400_s4, 1024 }
 0x2a3   : > { %p991_p4 = scmp.ne.s32.totalorder %s1353_s11, %s990_s22  ;;  %p995_p9 = scmp.lt.u32.totalorder %s1353_s11, %s1400_s4 }
 0x2a4   : > { %p996_p10 = scmp.lt.u32.totalorder %s994_s28, %s990_s22  ;;  %p998_p12 = scmp.lt.u32.totalorder %s990_s22, %s1353_s11 }
 0x2a5   : > { %p992_p7 = pnand %p991_p4, %p1106_p5 }
 0x2a6   : > { %p997_p11 = por %p996_p10, %p995_p9 }
 0x2a7   : > { %p993_p8 = pneg %p992_p7 }
 0x2a8   : > { %p999_p13 = por %p998_p12, %p997_p11 }
 0x2aa   : > { %p1000_p0 = pnand %p999_p13, %p993_p8 }
 0x2ac   : > { %1003 = shalt.err (!%p1000_p0)
}
 0x2ad   : > { %s1041_s5 = smov 128   ;;  %s1042_s6 = smov 8  }
 0x2ae   : > { %935 = dma.vmem_to_hbm [thread:$0]  (%p1106_p5), %s1348_s7, 512, %s1353_s11, %s1355_s12, %s1041_s5, %s1041_s5, %s1042_s6  }
 0x2af PF: > { %p941_p1 = scmp.ge.s32.totalorder %s1038_s18, 2  ;;  %s816_s8 = sand.u32 1, %s1026_s15  }
 0x2b0   : > { %s817_s9 = scalar_lea.sflag [#allocation3], %s816_s8 }
 0x2b1   : > { %p938_p2 = pnand %p941_p1, %p1110_p6 }
 0x2b3   : > { %1021 = dma.done.wait (!%p938_p2), %s817_s9, 512  }
 0x2b4   : > { %1023 = vsyncadd (!%p938_p2), %s817_s9, 4294966784  ;;  %p14_p3 = scmp.ge.s32.totalorder %s1093_s21, 4   ;;  %s1403_s15 = smov %s1030_s16 }
 0x2b5   : > { %s1404_s16 = smov %s1034_s17  ;;  %s1405_s17 = smov %s1104_s24 }
 0x2b6   : > { %s1406_s18 = smov %s1093_s21  ;;  %16 = sbr.rel (!%p14_p3) target bundleno = 3 (0x3), region = 74 }
 0x2bd   :  { %822 = vsyncpa [#allocation3], 1 }
 0x2be   :  { %824 = vsyncpa [#allocation3 + $0x1], 1 }

</bundles_post_ra>
